<compile_context>
chip_gen: v6e
topology: v6e:2x2x1
jax: 0.10.0
libtpu: 0.0.40
codegen_flags: <defaults>
</compile_context>

<pallas_src>
import functools
import math

import jax
import jax.numpy as jnp
from jax import lax
from jax.experimental import pallas as pl
from jax.experimental.pallas import tpu as pltpu


_GELU_C = math.sqrt(2.0 / math.pi)
_LANE = 128


def _vmem_limit_bytes():
    # Generation-aware scoped-VMEM limit: ~100 MiB on the 128 MiB parts
    # (v5e / v6e), ~40 MiB on v7x (64 MiB physical).
    try:
        cap = int(pltpu.get_tpu_info().vmem_capacity_bytes)
        return int(min(100 * 1024 * 1024,
                       max(32 * 1024 * 1024, cap - 24 * 1024 * 1024)))
    except Exception:
        return 64 * 1024 * 1024


_VMEM_LIMIT = _vmem_limit_bytes()


def _round_up(n, m):
    return -(-n // m) * m


def _largest_divisor(n, cap, multiple_of=1):
    """Largest divisor of n that is <= cap, preferring multiples of
    `multiple_of`.  Falls back to any divisor (then n) so blocks never go OOB."""
    cap = int(max(1, min(n, cap)))
    for d in range(cap, 0, -1):
        if n % d == 0 and d % multiple_of == 0:
            return d
    for d in range(cap, 0, -1):
        if n % d == 0:
            return d
    return n


# ---------------------------------------------------------------------------
# Downsample: nn.Conv2d(C, C, kernel_size=2, stride=2) on NHWC input
# ---------------------------------------------------------------------------
def _downsample_pallas(x_nhwc, weight, bias):
    """2x2/stride-2 conv as MXU matmuls over patch-row tiles; the space-to-depth
    patch matrix is never materialized in HBM (only a free row-major reshape)."""
    N, H, W, C = x_nhwc.shape
    cout = weight.shape[0]
    assert H % 2 == 0 and W % 2 == 0, "Conv2d(k=2, s=2) expects even H and W"
    ho, wo = H // 2, W // 2
    cout_p = _round_up(cout, _LANE)          # lane-dense (unmasked vst) output
    k2 = 2 * C

    # bf16 sublane tile is 16 rows: pad Wo to a multiple of 16 so the in-kernel
    # (trh, wo_pad, 2C) -> (tm, 2C) collapse is layout-free with NO f32 upcast.
    # TODO(synk): handle the ragged tail in-kernel instead of this jnp.pad pass.
    wo_pad = _round_up(wo, 16)
    if wo_pad != wo:
        x_nhwc = jnp.pad(x_nhwc, ((0, 0), (0, 0), (0, 2 * (wo_pad - wo)), (0, 0)))

    rows = N * ho
    xr = x_nhwc.reshape(rows, 2, wo_pad, k2).astype(jnp.bfloat16)   # free reshape
    # PyTorch weight [Cout, Cin, kh, kw] -> [kh, kw*Cin, Cout_p]: matches the
    # (kw, ci) ordering of each contiguous 2C slab of a patch row.
    w_k = jnp.transpose(weight, (2, 3, 1, 0)).reshape(2, k2, cout)
    w_k = jnp.pad(w_k, ((0, 0), (0, 0), (0, cout_p - cout))).astype(jnp.bfloat16)
    b_row = jnp.pad(bias, (0, cout_p - cout)).reshape(1, cout_p).astype(jnp.float32)

    weight_bytes = 2 * k2 * cout_p * 2 + cout_p * 4
    bytes_per_row = wo_pad * (2 * k2 * 2 * 2          # bf16 input slab, 2x buffered
                              + cout_p * 2 * 2        # bf16 output, 2x buffered
                              + cout_p * 4 + k2 * 4)  # f32 accumulator + headroom
    budget = max(4 * 1024 * 1024, int(_VMEM_LIMIT * 0.6) - weight_bytes)
    trh_cap = max(1, budget // bytes_per_row)
    trh_cap = min(trh_cap, max(1, 4096 // wo_pad))    # ~4K matmul rows per tile
    if rows >= 2:
        trh_cap = min(trh_cap, rows // 2)             # >=2 grid steps (v7x megacore)
    trh = _largest_divisor(rows, trh_cap)
    tm = trh * wo_pad
    grid = (rows // trh,)

    def kernel(x_ref, w_ref, b_ref, o_ref):
        x = x_ref[...]                                # (trh, 2, wo_pad, k2) bf16
        x0 = x[:, 0].reshape(tm, k2)                  # kh = 0 slab (layout-free)
        x1 = x[:, 1].reshape(tm, k2)                  # kh = 1 slab
        acc = jnp.dot(x0, w_ref[0], preferred_element_type=jnp.float32)
        acc = acc + jnp.dot(x1, w_ref[1], preferred_element_type=jnp.float32)
        o_ref[...] = (acc + b_ref[...]).astype(o_ref.dtype)

    m_total = rows * wo_pad
    out = pl.pallas_call(
        kernel,
        out_shape=jax.ShapeDtypeStruct((m_total, cout_p), jnp.bfloat16),
        grid=grid,
        in_specs=[
            pl.BlockSpec((trh, 2, wo_pad, k2), lambda i: (i, 0, 0, 0)),
            pl.BlockSpec((2, k2, cout_p), lambda i: (0, 0, 0),
                         pipeline_mode=pl.Buffered(1)),   # resident weight
            pl.BlockSpec((1, cout_p), lambda i: (0, 0),
                         pipeline_mode=pl.Buffered(1)),   # resident bias
        ],
        out_specs=pl.BlockSpec((tm, cout_p), lambda i: (i, 0)),
        compiler_params=pltpu.CompilerParams(
            dimension_semantics=("parallel",),
            vmem_limit_bytes=_VMEM_LIMIT),
        cost_estimate=pl.CostEstimate(
            flops=int(2 * m_total * 2 * k2 * cout_p),
            transcendentals=0,
            bytes_accessed=int(2 * rows * 2 * wo_pad * k2
                               + 2 * 2 * k2 * cout_p + 2 * m_total * cout_p)),
    )(xr, w_k, b_row)

    return out.reshape(N, ho, wo_pad, cout_p)[:, :, :wo, :cout]


# ---------------------------------------------------------------------------
# ConvBlock: fused residual-conv + LayerNorm2d + 1x1 conv + GELU + 1x1 conv +
#            layer_scale + residual add over [tm, C] pixel tiles.
# ---------------------------------------------------------------------------
def _convblock_pallas(xin_m, xdw_m, wres, bres, gamma, beta, w1, b1, w2, b2,
                      scale, eps):
    M, cin = xin_m.shape
    cout_p = wres.shape[1]

    weight_bytes = ((2 * cin * cout_p + cout_p * cout_p) * 2
                    + 5 * cout_p * 4 + 2 * cin * 4)
    # Channel-aware pixel tile: bf16 in/out double-buffers + live f32
    # intermediates + LN working set, per pixel row.
    per_m = 14 * cin + 14 * cout_p + 32
    budget = max(4 * 1024 * 1024, int(_VMEM_LIMIT * 0.6) - weight_bytes)
    cap = max(16, min(4096, budget // per_m))
    if M >= 32:
        cap = min(cap, M // 2)                 # >=2 grid steps (v7x megacore)
    tm = _largest_divisor(M, cap, multiple_of=16)   # bf16 sublane tile = 16
    grid = (M // tm,)

    def kernel(xin_ref, xdw_ref, wres_ref, bres_ref, g_ref, bt_ref,
               w1_ref, b1_ref, w2_ref, b2_ref, sc_ref, o_ref):
        # LayerNorm2d over the channel (lane) dim, f32 statistics.
        xdw = xdw_ref[...].astype(jnp.float32)
        u = jnp.mean(xdw, axis=-1, keepdims=True)
        d = xdw - u
        var = jnp.mean(d * d, axis=-1, keepdims=True)
        hb = (d * lax.rsqrt(var + eps) * g_ref[...] + bt_ref[...]).astype(jnp.bfloat16)
        # pointwise_conv1 + GELU (tanh approx) + pointwise_conv2 + layer_scale
        h1 = jnp.dot(hb, w1_ref[...], preferred_element_type=jnp.float32) + b1_ref[...]
        hg = (0.5 * h1 * (1.0 + jnp.tanh(_GELU_C * (h1 + 0.044715 * h1 * h1 * h1)))
              ).astype(jnp.bfloat16)
        h2 = jnp.dot(hg, w2_ref[...], preferred_element_type=jnp.float32) + b2_ref[...]
        h2 = h2 * sc_ref[...]
        # residual_conv(x) done last so its f32 accumulator is not live across
        # the whole body; drop_path (Dropout2d) is identity in eval mode.
        res = jnp.dot(xin_ref[...], wres_ref[...],
                      preferred_element_type=jnp.float32) + bres_ref[...]
        o_ref[...] = (h2 + res).astype(o_ref.dtype)

    def resident(shape):
        return pl.BlockSpec(shape, lambda i: (0,) * len(shape),
                            pipeline_mode=pl.Buffered(1))

    flops = 2 * M * (2 * cin * cout_p + cout_p * cout_p)
    return pl.pallas_call(
        kernel,
        out_shape=jax.ShapeDtypeStruct((M, cout_p), jnp.bfloat16),
        grid=grid,
        in_specs=[
            pl.BlockSpec((tm, cin), lambda i: (i, 0)),
            pl.BlockSpec((tm, cin), lambda i: (i, 0)),
            resident((cin, cout_p)), resident((1, cout_p)),
            resident((1, cin)), resident((1, cin)),
            resident((cin, cout_p)), resident((1, cout_p)),
            resident((cout_p, cout_p)), resident((1, cout_p)),
            resident((1, cout_p)),
        ],
        out_specs=pl.BlockSpec((tm, cout_p), lambda i: (i, 0)),
        compiler_params=pltpu.CompilerParams(
            dimension_semantics=("parallel",),
            vmem_limit_bytes=_VMEM_LIMIT),
        cost_estimate=pl.CostEstimate(
            flops=int(flops),
            transcendentals=int(M * cout_p),
            bytes_accessed=int(2 * 2 * M * cin + 2 * M * cout_p
                               + 2 * (2 * cin * cout_p + cout_p * cout_p))),
    )(xin_m, xdw_m, wres, bres, gamma, beta, w1, b1, w2, b2, scale)


def _depthwise_conv3x3_nhwc(x, dw_weight, dw_bias):
    # TODO(synk): fuse into the ConvBlock Pallas kernel with 1-row halos; until
    # then it stays in XLA but runs fully in bf16 so the HBM intermediate is
    # half-sized and feeds the Pallas call directly.
    c = x.shape[-1]
    w = jnp.transpose(dw_weight, (2, 3, 1, 0)).astype(jnp.bfloat16)  # (3,3,1,C) HWIO
    y = lax.conv_general_dilated(
        x.astype(jnp.bfloat16), w, window_strides=(1, 1), padding=((1, 1), (1, 1)),
        dimension_numbers=("NHWC", "HWIO", "NHWC"), feature_group_count=c,
        preferred_element_type=jnp.float32)
    return (y + dw_bias.reshape(1, 1, 1, c)).astype(jnp.bfloat16)


def _convblock_forward_nhwc(x, p, eps=1e-6):
    n, h, w, cin = x.shape
    cout = p["pw1_w"].shape[0]
    cout_p = _round_up(cout, _LANE)
    pc = cout_p - cout
    xdw = _depthwise_conv3x3_nhwc(x, p["dw_w"], p["dw_b"])
    m = n * h * w
    xin_m = x.reshape(m, cin).astype(jnp.bfloat16)
    xdw_m = xdw.reshape(m, cin)                              # already bf16

    def padw(a):   # (cin_or_cout, cout) -> lane-padded bf16
        return jnp.pad(a, ((0, 0), (0, pc))).astype(jnp.bfloat16)

    def padv(a):   # (cout,) -> (1, cout_p) f32
        return jnp.pad(a, (0, pc)).reshape(1, cout_p).astype(jnp.float32)

    wres = padw(jnp.transpose(p["res_w"][:, :, 0, 0]))
    w1 = padw(jnp.transpose(p["pw1_w"][:, :, 0, 0]))
    w2 = jnp.pad(jnp.transpose(p["pw2_w"][:, :, 0, 0]),
                 ((0, pc), (0, pc))).astype(jnp.bfloat16)
    out = _convblock_pallas(
        xin_m, xdw_m,
        wres, padv(p["res_b"]),
        p["ln_w"].reshape(1, cin).astype(jnp.float32),
        p["ln_b"].reshape(1, cin).astype(jnp.float32),
        w1, padv(p["pw1_b"]),
        w2, padv(p["pw2_b"]),
        padv(p["scale"].reshape(-1)),
        eps)
    return out[:, :cout].reshape(n, h, w, cout)


def convnext_encoder_forward(x_nchw, layers):
    """ConvNextEncoder forward (inference).  Takes / returns NCHW (PyTorch
    layout); the NCHW<->NHWC conversion happens exactly once per boundary."""
    x = jnp.transpose(x_nchw, (0, 2, 3, 1))
    for kind, p in layers:
        if kind == "down":
            x = _downsample_pallas(x, p["w"], p["b"])
        else:
            x = _convblock_forward_nhwc(x, p)
    return jnp.transpose(x, (0, 3, 1, 2)).astype(jnp.float32)


# ---------------------------------------------------------------------------
# Pure-JAX (XLA) reference mirroring the PyTorch module math and the same
# bf16-matmul / f32-accumulate / bf16-interlayer precision policy.
# ---------------------------------------------------------------------------
def _reference_forward(x_nchw, layers, eps=1e-6):
    x = jnp.transpose(x_nchw, (0, 2, 3, 1))
    for kind, p in layers:
        if kind == "down":
            cout = p["w"].shape[0]
            rhs = jnp.transpose(p["w"], (2, 3, 1, 0)).astype(jnp.bfloat16)
            y = lax.conv_general_dilated(
                x.astype(jnp.bfloat16), rhs, window_strides=(2, 2),
                padding="VALID", dimension_numbers=("NHWC", "HWIO", "NHWC"),
                preferred_element_type=jnp.float32)
            x = (y + p["b"].reshape(1, 1, 1, cout)).astype(jnp.bfloat16)
            x = x.astype(jnp.float32)
        else:
            n, h, w, cin = x.shape
            cout = p["pw1_w"].shape[0]
            xin = x.reshape(-1, cin).astype(jnp.bfloat16)
            res = jnp.dot(xin, jnp.transpose(p["res_w"][:, :, 0, 0]).astype(jnp.bfloat16),
                          preferred_element_type=jnp.float32) + p["res_b"]
            xdw = _depthwise_conv3x3_nhwc(x, p["dw_w"], p["dw_b"])
            xd = xdw.reshape(-1, cin).astype(jnp.float32)
            u = jnp.mean(xd, axis=-1, keepdims=True)
            d = xd - u
            var = jnp.mean(d * d, axis=-1, keepdims=True)
            hn = d * lax.rsqrt(var + eps) * p["ln_w"] + p["ln_b"]
            h1 = jnp.dot(hn.astype(jnp.bfloat16),
                         jnp.transpose(p["pw1_w"][:, :, 0, 0]).astype(jnp.bfloat16),
                         preferred_element_type=jnp.float32) + p["pw1_b"]
            hg = 0.5 * h1 * (1.0 + jnp.tanh(_GELU_C * (h1 + 0.044715 * h1 ** 3)))
            h2 = jnp.dot(hg.astype(jnp.bfloat16),
                         jnp.transpose(p["pw2_w"][:, :, 0, 0]).astype(jnp.bfloat16),
                         preferred_element_type=jnp.float32) + p["pw2_b"]
            out = h2 * p["scale"].reshape(1, cout) + res
            x = out.astype(jnp.bfloat16).astype(jnp.float32).reshape(n, h, w, cout)
    return jnp.transpose(x, (0, 3, 1, 2))


def _init_params(key, in_channels, block_channels):
    """Deterministic parameters mimicking the PyTorch module's shapes / init."""
    layers = []
    cin = in_channels
    for i, cout in enumerate(block_channels):
        if i > 0:
            c = block_channels[i - 1]
            key, k1, k2 = jax.random.split(key, 3)
            bound = 1.0 / math.sqrt(c * 2 * 2)
            layers.append(("down", {
                "w": jax.random.uniform(k1, (c, c, 2, 2), jnp.float32, -bound, bound),
                "b": jax.random.uniform(k2, (c,), jnp.float32, -bound, bound),
            }))
        key, kd1, kd2, kr1, kr2, kp1, kp2, kp3, kp4 = jax.random.split(key, 9)
        b_dw = 1.0 / math.sqrt(9.0)
        b_in = 1.0 / math.sqrt(float(cin))
        b_out = 1.0 / math.sqrt(float(cout))
        layers.append(("block", {
            "dw_w": jax.random.uniform(kd1, (cin, 1, 3, 3), jnp.float32, -b_dw, b_dw),
            "dw_b": jax.random.uniform(kd2, (cin,), jnp.float32, -b_dw, b_dw),
            "ln_w": jnp.ones((cin,), jnp.float32),
            "ln_b": jnp.zeros((cin,), jnp.float32),
            "pw1_w": jax.random.uniform(kp1, (cout, cin, 1, 1), jnp.float32, -b_in, b_in),
            "pw1_b": jax.random.uniform(kp2, (cout,), jnp.float32, -b_in, b_in),
            "pw2_w": jax.random.uniform(kp3, (cout, cout, 1, 1), jnp.float32, -b_out, b_out),
            "pw2_b": jax.random.uniform(kp4, (cout,), jnp.float32, -b_out, b_out),
            "scale": jnp.ones((cout, 1, 1), jnp.float32),   # layer_scale init
            "res_w": jax.random.uniform(kr1, (cout, cin, 1, 1), jnp.float32, -b_in, b_in),
            "res_b": jax.random.uniform(kr2, (cout,), jnp.float32, -b_in, b_in),
        }))
        cin = cout
    return layers


if __name__ == "__main__":
    root = jax.random.PRNGKey(0)
    kx, kp = jax.random.split(root)

    n, cin, hh, ww = 2, 4, 16, 16
    block_channels = [8, 16]

    x = jax.random.normal(kx, (n, cin, hh, ww), dtype=jnp.float32)
    layers = _init_params(kp, cin, block_channels)

    fwd = jax.jit(functools.partial(convnext_encoder_forward, layers=layers))
    out = jax.block_until_ready(fwd(x))

    assert out.shape == (n, block_channels[-1], hh // 2, ww // 2), out.shape
    assert bool(jnp.all(jnp.isfinite(out)))

    ref = jax.block_until_ready(_reference_forward(x, layers))
    max_err = float(jnp.max(jnp.abs(out - ref)))
    assert jnp.allclose(out, ref, atol=2e-2, rtol=2e-2), max_err

    print("KERNEL_OK")
</pallas_src>

<mosaic_0001>
module attributes {stable_mosaic.version = 11 : i64} {
  func.func @kernel(%arg0: i32, %arg1: memref<256x4xbf16, #tpu.memory_space<vmem>>, %arg2: memref<256x4xbf16, #tpu.memory_space<vmem>>, %arg3: memref<4x128xbf16, #tpu.memory_space<vmem>>, %arg4: memref<1x128xf32, #tpu.memory_space<vmem>>, %arg5: memref<1x4xf32, #tpu.memory_space<vmem>>, %arg6: memref<1x4xf32, #tpu.memory_space<vmem>>, %arg7: memref<4x128xbf16, #tpu.memory_space<vmem>>, %arg8: memref<1x128xf32, #tpu.memory_space<vmem>>, %arg9: memref<128x128xbf16, #tpu.memory_space<vmem>>, %arg10: memref<1x128xf32, #tpu.memory_space<vmem>>, %arg11: memref<1x128xf32, #tpu.memory_space<vmem>>, %arg12: memref<256x128xbf16, #tpu.memory_space<vmem>>) attributes {dimension_semantics = [#tpu.dimension_semantics<parallel>], iteration_bounds = array<i64: 2>, scalar_prefetch = 0 : i64, scratch_operands = 0 : i64, tpu.core_type = #tpu.core_type<tc>, window_params = [{transform_indices = @transform_0, window_bounds = array<i64: 256, 4>}, {transform_indices = @transform_1, window_bounds = array<i64: 256, 4>}, {pipeline_mode = #tpu.pipeline_mode<synchronous>, transform_indices = @transform_2, window_bounds = array<i64: 4, 128>}, {pipeline_mode = #tpu.pipeline_mode<synchronous>, transform_indices = @transform_3, window_bounds = array<i64: 1, 128>}, {pipeline_mode = #tpu.pipeline_mode<synchronous>, transform_indices = @transform_4, window_bounds = array<i64: 1, 4>}, {pipeline_mode = #tpu.pipeline_mode<synchronous>, transform_indices = @transform_5, window_bounds = array<i64: 1, 4>}, {pipeline_mode = #tpu.pipeline_mode<synchronous>, transform_indices = @transform_6, window_bounds = array<i64: 4, 128>}, {pipeline_mode = #tpu.pipeline_mode<synchronous>, transform_indices = @transform_7, window_bounds = array<i64: 1, 128>}, {pipeline_mode = #tpu.pipeline_mode<synchronous>, transform_indices = @transform_8, window_bounds = array<i64: 128, 128>}, {pipeline_mode = #tpu.pipeline_mode<synchronous>, transform_indices = @transform_9, window_bounds = array<i64: 1, 128>}, {pipeline_mode = #tpu.pipeline_mode<synchronous>, transform_indices = @transform_10, window_bounds = array<i64: 1, 128>}, {transform_indices = @transform_11, window_bounds = array<i64: 256, 128>}]} {
    %c0 = arith.constant 0 : index
    %c0_0 = arith.constant 0 : index
    %0 = vector.load %arg2[%c0, %c0_0] : memref<256x4xbf16, #tpu.memory_space<vmem>>, vector<256x4xbf16>
    %1 = arith.extf %0 : vector<256x4xbf16> to vector<256x4xf32>
    %cst = arith.constant dense<0.000000e+00> : vector<256xf32>
    %2 = vector.multi_reduction <add>, %1, %cst [1] : vector<256x4xf32> to vector<256xf32>
    %3 = vector.shape_cast %2 : vector<256xf32> to vector<256x1xf32>
    %cst_1 = arith.constant 4.000000e+00 : f32
    %4 = vector.broadcast %cst_1 : f32 to vector<256x1xf32>
    %5 = arith.divf %3, %4 : vector<256x1xf32>
    %6 = vector.broadcast %5 : vector<256x1xf32> to vector<256x4xf32>
    %7 = arith.subf %1, %6 : vector<256x4xf32>
    %8 = arith.mulf %7, %7 : vector<256x4xf32>
    %cst_2 = arith.constant dense<0.000000e+00> : vector<256xf32>
    %9 = vector.multi_reduction <add>, %8, %cst_2 [1] : vector<256x4xf32> to vector<256xf32>
    %10 = vector.shape_cast %9 : vector<256xf32> to vector<256x1xf32>
    %cst_3 = arith.constant 4.000000e+00 : f32
    %11 = vector.broadcast %cst_3 : f32 to vector<256x1xf32>
    %12 = arith.divf %10, %11 : vector<256x1xf32>
    %cst_4 = arith.constant 9.99999997E-7 : f32
    %13 = vector.broadcast %cst_4 : f32 to vector<256x1xf32>
    %14 = arith.addf %12, %13 : vector<256x1xf32>
    %15 = math.rsqrt %14 : vector<256x1xf32>
    %16 = vector.broadcast %15 : vector<256x1xf32> to vector<256x4xf32>
    %17 = arith.mulf %7, %16 : vector<256x4xf32>
    %c0_5 = arith.constant 0 : index
    %c0_6 = arith.constant 0 : index
    %18 = vector.load %arg5[%c0_5, %c0_6] : memref<1x4xf32, #tpu.memory_space<vmem>>, vector<1x4xf32>
    %19 = vector.broadcast %18 : vector<1x4xf32> to vector<256x4xf32>
    %20 = arith.mulf %17, %19 : vector<256x4xf32>
    %c0_7 = arith.constant 0 : index
    %c0_8 = arith.constant 0 : index
    %21 = vector.load %arg6[%c0_7, %c0_8] : memref<1x4xf32, #tpu.memory_space<vmem>>, vector<1x4xf32>
    %22 = vector.broadcast %21 : vector<1x4xf32> to vector<256x4xf32>
    %23 = arith.addf %20, %22 : vector<256x4xf32>
    %24 = arith.truncf %23 : vector<256x4xf32> to vector<256x4xbf16>
    %c0_9 = arith.constant 0 : index
    %c0_10 = arith.constant 0 : index
    %25 = vector.load %arg7[%c0_9, %c0_10] : memref<4x128xbf16, #tpu.memory_space<vmem>>, vector<4x128xbf16>
    %cst_11 = arith.constant dense<0.000000e+00> : vector<256x128xf32>
    %26 = tpu.matmul %24, %25, %cst_11 {dimension_numbers = #tpu.dot_dimension_numbers<[1], [0], [0], [1], [0, 0, 1, 1], [], []>} : vector<256x4xbf16>, vector<4x128xbf16>, vector<256x128xf32> -> vector<256x128xf32>
    %c0_12 = arith.constant 0 : index
    %c0_13 = arith.constant 0 : index
    %27 = vector.load %arg8[%c0_12, %c0_13] : memref<1x128xf32, #tpu.memory_space<vmem>>, vector<1x128xf32>
    %28 = vector.broadcast %27 : vector<1x128xf32> to vector<256x128xf32>
    %29 = arith.addf %26, %28 : vector<256x128xf32>
    %cst_14 = arith.constant 5.000000e-01 : f32
    %30 = vector.broadcast %cst_14 : f32 to vector<256x128xf32>
    %31 = arith.mulf %30, %29 : vector<256x128xf32>
    %cst_15 = arith.constant 4.471500e-02 : f32
    %32 = vector.broadcast %cst_15 : f32 to vector<256x128xf32>
    %33 = arith.mulf %32, %29 : vector<256x128xf32>
    %34 = arith.mulf %33, %29 : vector<256x128xf32>
    %35 = arith.mulf %34, %29 : vector<256x128xf32>
    %36 = arith.addf %29, %35 : vector<256x128xf32>
    %cst_16 = arith.constant 0.797884583 : f32
    %37 = vector.broadcast %cst_16 : f32 to vector<256x128xf32>
    %38 = arith.mulf %37, %36 : vector<256x128xf32>
    %39 = math.tanh %38 : vector<256x128xf32>
    %cst_17 = arith.constant 1.000000e+00 : f32
    %40 = vector.broadcast %cst_17 : f32 to vector<256x128xf32>
    %41 = arith.addf %40, %39 : vector<256x128xf32>
    %42 = arith.mulf %31, %41 : vector<256x128xf32>
    %43 = arith.truncf %42 : vector<256x128xf32> to vector<256x128xbf16>
    %c0_18 = arith.constant 0 : index
    %c0_19 = arith.constant 0 : index
    %44 = vector.load %arg9[%c0_18, %c0_19] : memref<128x128xbf16, #tpu.memory_space<vmem>>, vector<128x128xbf16>
    %cst_20 = arith.constant dense<0.000000e+00> : vector<256x128xf32>
    %45 = tpu.matmul %43, %44, %cst_20 {dimension_numbers = #tpu.dot_dimension_numbers<[1], [0], [0], [1], [0, 0, 1, 1], [], []>} : vector<256x128xbf16>, vector<128x128xbf16>, vector<256x128xf32> -> vector<256x128xf32>
    %c0_21 = arith.constant 0 : index
    %c0_22 = arith.constant 0 : index
    %46 = vector.load %arg10[%c0_21, %c0_22] : memref<1x128xf32, #tpu.memory_space<vmem>>, vector<1x128xf32>
    %47 = vector.broadcast %46 : vector<1x128xf32> to vector<256x128xf32>
    %48 = arith.addf %45, %47 : vector<256x128xf32>
    %c0_23 = arith.constant 0 : index
    %c0_24 = arith.constant 0 : index
    %49 = vector.load %arg11[%c0_23, %c0_24] : memref<1x128xf32, #tpu.memory_space<vmem>>, vector<1x128xf32>
    %50 = vector.broadcast %49 : vector<1x128xf32> to vector<256x128xf32>
    %51 = arith.mulf %48, %50 : vector<256x128xf32>
    %c0_25 = arith.constant 0 : index
    %c0_26 = arith.constant 0 : index
    %52 = vector.load %arg1[%c0_25, %c0_26] : memref<256x4xbf16, #tpu.memory_space<vmem>>, vector<256x4xbf16>
    %c0_27 = arith.constant 0 : index
    %c0_28 = arith.constant 0 : index
    %53 = vector.load %arg3[%c0_27, %c0_28] : memref<4x128xbf16, #tpu.memory_space<vmem>>, vector<4x128xbf16>
    %cst_29 = arith.constant dense<0.000000e+00> : vector<256x128xf32>
    %54 = tpu.matmul %52, %53, %cst_29 {dimension_numbers = #tpu.dot_dimension_numbers<[1], [0], [0], [1], [0, 0, 1, 1], [], []>} : vector<256x4xbf16>, vector<4x128xbf16>, vector<256x128xf32> -> vector<256x128xf32>
    %c0_30 = arith.constant 0 : index
    %c0_31 = arith.constant 0 : index
    %55 = vector.load %arg4[%c0_30, %c0_31] : memref<1x128xf32, #tpu.memory_space<vmem>>, vector<1x128xf32>
    %56 = vector.broadcast %55 : vector<1x128xf32> to vector<256x128xf32>
    %57 = arith.addf %54, %56 : vector<256x128xf32>
    %58 = arith.addf %51, %57 : vector<256x128xf32>
    %59 = arith.truncf %58 : vector<256x128xf32> to vector<256x128xbf16>
    %c0_32 = arith.constant 0 : index
    %c0_33 = arith.constant 0 : index
    %60 = vector.load %arg12[%c0_32, %c0_33] : memref<256x128xbf16, #tpu.memory_space<vmem>>, vector<256x128xbf16>
    tpu.vector_store %arg12[%c0_32, %c0_33], %59 {strides = array<i32>} : memref<256x128xbf16, #tpu.memory_space<vmem>>, vector<256x128xbf16>,
    return
  }
  func.func @transform_0(%arg0: i32) -> (i32, i32) {
    %c0_i32 = arith.constant 0 : i32
    %c0_i32_0 = arith.constant 0 : i32
    return %arg0, %c0_i32 : i32, i32
  }
  func.func @transform_1(%arg0: i32) -> (i32, i32) {
    %c0_i32 = arith.constant 0 : i32
    %c0_i32_0 = arith.constant 0 : i32
    return %arg0, %c0_i32 : i32, i32
  }
  func.func @transform_2(%arg0: i32) -> (i32, i32) {
    %c0_i32 = arith.constant 0 : i32
    %c0_i32_0 = arith.constant 0 : i32
    %c0_i32_1 = arith.constant 0 : i32
    return %c0_i32, %c0_i32_0 : i32, i32
  }
  func.func @transform_3(%arg0: i32) -> (i32, i32) {
    %c0_i32 = arith.constant 0 : i32
    %c0_i32_0 = arith.constant 0 : i32
    %c0_i32_1 = arith.constant 0 : i32
    return %c0_i32, %c0_i32_0 : i32, i32
  }
  func.func @transform_4(%arg0: i32) -> (i32, i32) {
    %c0_i32 = arith.constant 0 : i32
    %c0_i32_0 = arith.constant 0 : i32
    %c0_i32_1 = arith.constant 0 : i32
    return %c0_i32, %c0_i32_0 : i32, i32
  }
  func.func @transform_5(%arg0: i32) -> (i32, i32) {
    %c0_i32 = arith.constant 0 : i32
    %c0_i32_0 = arith.constant 0 : i32
    %c0_i32_1 = arith.constant 0 : i32
    return %c0_i32, %c0_i32_0 : i32, i32
  }
  func.func @transform_6(%arg0: i32) -> (i32, i32) {
    %c0_i32 = arith.constant 0 : i32
    %c0_i32_0 = arith.constant 0 : i32
    %c0_i32_1 = arith.constant 0 : i32
    return %c0_i32, %c0_i32_0 : i32, i32
  }
  func.func @transform_7(%arg0: i32) -> (i32, i32) {
    %c0_i32 = arith.constant 0 : i32
    %c0_i32_0 = arith.constant 0 : i32
    %c0_i32_1 = arith.constant 0 : i32
    return %c0_i32, %c0_i32_0 : i32, i32
  }
  func.func @transform_8(%arg0: i32) -> (i32, i32) {
    %c0_i32 = arith.constant 0 : i32
    %c0_i32_0 = arith.constant 0 : i32
    %c0_i32_1 = arith.constant 0 : i32
    return %c0_i32, %c0_i32_0 : i32, i32
  }
  func.func @transform_9(%arg0: i32) -> (i32, i32) {
    %c0_i32 = arith.constant 0 : i32
    %c0_i32_0 = arith.constant 0 : i32
    %c0_i32_1 = arith.constant 0 : i32
    return %c0_i32, %c0_i32_0 : i32, i32
  }
  func.func @transform_10(%arg0: i32) -> (i32, i32) {
    %c0_i32 = arith.constant 0 : i32
    %c0_i32_0 = arith.constant 0 : i32
    %c0_i32_1 = arith.constant 0 : i32
    return %c0_i32, %c0_i32_0 : i32, i32
  }
  func.func @transform_11(%arg0: i32) -> (i32, i32) {
    %c0_i32 = arith.constant 0 : i32
    %c0_i32_0 = arith.constant 0 : i32
    return %arg0, %c0_i32 : i32, i32
  }
}

module attributes {stable_mosaic.version = 11 : i64} {
  func.func @kernel(%arg0: i32, %arg1: memref<8x2x16x16xbf16, #tpu.memory_space<vmem>>, %arg2: memref<2x16x128xbf16, #tpu.memory_space<vmem>>, %arg3: memref<1x128xf32, #tpu.memory_space<vmem>>, %arg4: memref<128x128xbf16, #tpu.memory_space<vmem>>) attributes {dimension_semantics = [#tpu.dimension_semantics<parallel>], iteration_bounds = array<i64: 2>, scalar_prefetch = 0 : i64, scratch_operands = 0 : i64, tpu.core_type = #tpu.core_type<tc>, window_params = [{transform_indices = @transform_0, window_bounds = array<i64: 8, 2, 16, 16>}, {pipeline_mode = #tpu.pipeline_mode<synchronous>, transform_indices = @transform_1, window_bounds = array<i64: 2, 16, 128>}, {pipeline_mode = #tpu.pipeline_mode<synchronous>, transform_indices = @transform_2, window_bounds = array<i64: 1, 128>}, {transform_indices = @transform_3, window_bounds = array<i64: 128, 128>}]} {
    %c0 = arith.constant 0 : index
    %c0_0 = arith.constant 0 : index
    %c0_1 = arith.constant 0 : index
    %c0_2 = arith.constant 0 : index
    %0 = vector.load %arg1[%c0, %c0_0, %c0_1, %c0_2] : memref<8x2x16x16xbf16, #tpu.memory_space<vmem>>, vector<8x2x16x16xbf16>
    %1 = vector.extract_strided_slice %0 {offsets = [0, 0, 0, 0], sizes = [8, 1, 16, 16], strides = [1, 1, 1, 1]} : vector<8x2x16x16xbf16> to vector<8x1x16x16xbf16>
    %2 = vector.shape_cast %1 : vector<8x1x16x16xbf16> to vector<8x16x16xbf16>
    %3 = vector.shape_cast %2 : vector<8x16x16xbf16> to vector<128x16xbf16>
    %4 = vector.extract_strided_slice %0 {offsets = [0, 1, 0, 0], sizes = [8, 1, 16, 16], strides = [1, 1, 1, 1]} : vector<8x2x16x16xbf16> to vector<8x1x16x16xbf16>
    %5 = vector.shape_cast %4 : vector<8x1x16x16xbf16> to vector<8x16x16xbf16>
    %6 = vector.shape_cast %5 : vector<8x16x16xbf16> to vector<128x16xbf16>
    %c0_3 = arith.constant 0 : index
    %c0_4 = arith.constant 0 : index
    %c0_5 = arith.constant 0 : index
    %7 = vector.load %arg2[%c0_3, %c0_4, %c0_5] : memref<2x16x128xbf16, #tpu.memory_space<vmem>>, vector<1x16x128xbf16>
    %8 = vector.shape_cast %7 : vector<1x16x128xbf16> to vector<16x128xbf16>
    %cst = arith.constant dense<0.000000e+00> : vector<128x128xf32>
    %9 = tpu.matmul %3, %8, %cst {dimension_numbers = #tpu.dot_dimension_numbers<[1], [0], [0], [1], [0, 0, 1, 1], [], []>} : vector<128x16xbf16>, vector<16x128xbf16>, vector<128x128xf32> -> vector<128x128xf32>
    %c1 = arith.constant 1 : index
    %c0_6 = arith.constant 0 : index
    %c0_7 = arith.constant 0 : index
    %10 = vector.load %arg2[%c1, %c0_6, %c0_7] : memref<2x16x128xbf16, #tpu.memory_space<vmem>>, vector<1x16x128xbf16>
    %11 = vector.shape_cast %10 : vector<1x16x128xbf16> to vector<16x128xbf16>
    %cst_8 = arith.constant dense<0.000000e+00> : vector<128x128xf32>
    %12 = tpu.matmul %6, %11, %cst_8 {dimension_numbers = #tpu.dot_dimension_numbers<[1], [0], [0], [1], [0, 0, 1, 1], [], []>} : vector<128x16xbf16>, vector<16x128xbf16>, vector<128x128xf32> -> vector<128x128xf32>
    %13 = arith.addf %9, %12 : vector<128x128xf32>
    %c0_9 = arith.constant 0 : index
    %c0_10 = arith.constant 0 : index
    %14 = vector.load %arg3[%c0_9, %c0_10] : memref<1x128xf32, #tpu.memory_space<vmem>>, vector<1x128xf32>
    %15 = vector.broadcast %14 : vector<1x128xf32> to vector<128x128xf32>
    %16 = arith.addf %13, %15 : vector<128x128xf32>
    %17 = arith.truncf %16 : vector<128x128xf32> to vector<128x128xbf16>
    %c0_11 = arith.constant 0 : index
    %c0_12 = arith.constant 0 : index
    %18 = vector.load %arg4[%c0_11, %c0_12] : memref<128x128xbf16, #tpu.memory_space<vmem>>, vector<128x128xbf16>
    tpu.vector_store %arg4[%c0_11, %c0_12], %17 {strides = array<i32>} : memref<128x128xbf16, #tpu.memory_space<vmem>>, vector<128x128xbf16>,
    return
  }
  func.func @transform_0(%arg0: i32) -> (i32, i32, i32, i32) {
    %c0_i32 = arith.constant 0 : i32
    %c0_i32_0 = arith.constant 0 : i32
    %c0_i32_1 = arith.constant 0 : i32
    %c0_i32_2 = arith.constant 0 : i32
    return %arg0, %c0_i32, %c0_i32_0, %c0_i32_1 : i32, i32, i32, i32
  }
  func.func @transform_1(%arg0: i32) -> (i32, i32, i32) {
    %c0_i32 = arith.constant 0 : i32
    %c0_i32_0 = arith.constant 0 : i32
    %c0_i32_1 = arith.constant 0 : i32
    %c0_i32_2 = arith.constant 0 : i32
    return %c0_i32, %c0_i32_0, %c0_i32_1 : i32, i32, i32
  }
  func.func @transform_2(%arg0: i32) -> (i32, i32) {
    %c0_i32 = arith.constant 0 : i32
    %c0_i32_0 = arith.constant 0 : i32
    %c0_i32_1 = arith.constant 0 : i32
    return %c0_i32, %c0_i32_0 : i32, i32
  }
  func.func @transform_3(%arg0: i32) -> (i32, i32) {
    %c0_i32 = arith.constant 0 : i32
    %c0_i32_0 = arith.constant 0 : i32
    return %arg0, %c0_i32 : i32, i32
  }
}

module attributes {stable_mosaic.version = 11 : i64} {
  func.func @kernel(%arg0: i32, %arg1: memref<64x8xbf16, #tpu.memory_space<vmem>>, %arg2: memref<64x8xbf16, #tpu.memory_space<vmem>>, %arg3: memref<8x128xbf16, #tpu.memory_space<vmem>>, %arg4: memref<1x128xf32, #tpu.memory_space<vmem>>, %arg5: memref<1x8xf32, #tpu.memory_space<vmem>>, %arg6: memref<1x8xf32, #tpu.memory_space<vmem>>, %arg7: memref<8x128xbf16, #tpu.memory_space<vmem>>, %arg8: memref<1x128xf32, #tpu.memory_space<vmem>>, %arg9: memref<128x128xbf16, #tpu.memory_space<vmem>>, %arg10: memref<1x128xf32, #tpu.memory_space<vmem>>, %arg11: memref<1x128xf32, #tpu.memory_space<vmem>>, %arg12: memref<64x128xbf16, #tpu.memory_space<vmem>>) attributes {dimension_semantics = [#tpu.dimension_semantics<parallel>], iteration_bounds = array<i64: 2>, scalar_prefetch = 0 : i64, scratch_operands = 0 : i64, tpu.core_type = #tpu.core_type<tc>, window_params = [{transform_indices = @transform_0, window_bounds = array<i64: 64, 8>}, {transform_indices = @transform_1, window_bounds = array<i64: 64, 8>}, {pipeline_mode = #tpu.pipeline_mode<synchronous>, transform_indices = @transform_2, window_bounds = array<i64: 8, 128>}, {pipeline_mode = #tpu.pipeline_mode<synchronous>, transform_indices = @transform_3, window_bounds = array<i64: 1, 128>}, {pipeline_mode = #tpu.pipeline_mode<synchronous>, transform_indices = @transform_4, window_bounds = array<i64: 1, 8>}, {pipeline_mode = #tpu.pipeline_mode<synchronous>, transform_indices = @transform_5, window_bounds = array<i64: 1, 8>}, {pipeline_mode = #tpu.pipeline_mode<synchronous>, transform_indices = @transform_6, window_bounds = array<i64: 8, 128>}, {pipeline_mode = #tpu.pipeline_mode<synchronous>, transform_indices = @transform_7, window_bounds = array<i64: 1, 128>}, {pipeline_mode = #tpu.pipeline_mode<synchronous>, transform_indices = @transform_8, window_bounds = array<i64: 128, 128>}, {pipeline_mode = #tpu.pipeline_mode<synchronous>, transform_indices = @transform_9, window_bounds = array<i64: 1, 128>}, {pipeline_mode = #tpu.pipeline_mode<synchronous>, transform_indices = @transform_10, window_bounds = array<i64: 1, 128>}, {transform_indices = @transform_11, window_bounds = array<i64: 64, 128>}]} {
    %c0 = arith.constant 0 : index
    %c0_0 = arith.constant 0 : index
    %0 = vector.load %arg2[%c0, %c0_0] : memref<64x8xbf16, #tpu.memory_space<vmem>>, vector<64x8xbf16>
    %1 = arith.extf %0 : vector<64x8xbf16> to vector<64x8xf32>
    %cst = arith.constant dense<0.000000e+00> : vector<64xf32>
    %2 = vector.multi_reduction <add>, %1, %cst [1] : vector<64x8xf32> to vector<64xf32>
    %3 = vector.shape_cast %2 : vector<64xf32> to vector<64x1xf32>
    %cst_1 = arith.constant 8.000000e+00 : f32
    %4 = vector.broadcast %cst_1 : f32 to vector<64x1xf32>
    %5 = arith.divf %3, %4 : vector<64x1xf32>
    %6 = vector.broadcast %5 : vector<64x1xf32> to vector<64x8xf32>
    %7 = arith.subf %1, %6 : vector<64x8xf32>
    %8 = arith.mulf %7, %7 : vector<64x8xf32>
    %cst_2 = arith.constant dense<0.000000e+00> : vector<64xf32>
    %9 = vector.multi_reduction <add>, %8, %cst_2 [1] : vector<64x8xf32> to vector<64xf32>
    %10 = vector.shape_cast %9 : vector<64xf32> to vector<64x1xf32>
    %cst_3 = arith.constant 8.000000e+00 : f32
    %11 = vector.broadcast %cst_3 : f32 to vector<64x1xf32>
    %12 = arith.divf %10, %11 : vector<64x1xf32>
    %cst_4 = arith.constant 9.99999997E-7 : f32
    %13 = vector.broadcast %cst_4 : f32 to vector<64x1xf32>
    %14 = arith.addf %12, %13 : vector<64x1xf32>
    %15 = math.rsqrt %14 : vector<64x1xf32>
    %16 = vector.broadcast %15 : vector<64x1xf32> to vector<64x8xf32>
    %17 = arith.mulf %7, %16 : vector<64x8xf32>
    %c0_5 = arith.constant 0 : index
    %c0_6 = arith.constant 0 : index
    %18 = vector.load %arg5[%c0_5, %c0_6] : memref<1x8xf32, #tpu.memory_space<vmem>>, vector<1x8xf32>
    %19 = vector.broadcast %18 : vector<1x8xf32> to vector<64x8xf32>
    %20 = arith.mulf %17, %19 : vector<64x8xf32>
    %c0_7 = arith.constant 0 : index
    %c0_8 = arith.constant 0 : index
    %21 = vector.load %arg6[%c0_7, %c0_8] : memref<1x8xf32, #tpu.memory_space<vmem>>, vector<1x8xf32>
    %22 = vector.broadcast %21 : vector<1x8xf32> to vector<64x8xf32>
    %23 = arith.addf %20, %22 : vector<64x8xf32>
    %24 = arith.truncf %23 : vector<64x8xf32> to vector<64x8xbf16>
    %c0_9 = arith.constant 0 : index
    %c0_10 = arith.constant 0 : index
    %25 = vector.load %arg7[%c0_9, %c0_10] : memref<8x128xbf16, #tpu.memory_space<vmem>>, vector<8x128xbf16>
    %cst_11 = arith.constant dense<0.000000e+00> : vector<64x128xf32>
    %26 = tpu.matmul %24, %25, %cst_11 {dimension_numbers = #tpu.dot_dimension_numbers<[1], [0], [0], [1], [0, 0, 1, 1], [], []>} : vector<64x8xbf16>, vector<8x128xbf16>, vector<64x128xf32> -> vector<64x128xf32>
    %c0_12 = arith.constant 0 : index
    %c0_13 = arith.constant 0 : index
    %27 = vector.load %arg8[%c0_12, %c0_13] : memref<1x128xf32, #tpu.memory_space<vmem>>, vector<1x128xf32>
    %28 = vector.broadcast %27 : vector<1x128xf32> to vector<64x128xf32>
    %29 = arith.addf %26, %28 : vector<64x128xf32>
    %cst_14 = arith.constant 5.000000e-01 : f32
    %30 = vector.broadcast %cst_14 : f32 to vector<64x128xf32>
    %31 = arith.mulf %30, %29 : vector<64x128xf32>
    %cst_15 = arith.constant 4.471500e-02 : f32
    %32 = vector.broadcast %cst_15 : f32 to vector<64x128xf32>
    %33 = arith.mulf %32, %29 : vector<64x128xf32>
    %34 = arith.mulf %33, %29 : vector<64x128xf32>
    %35 = arith.mulf %34, %29 : vector<64x128xf32>
    %36 = arith.addf %29, %35 : vector<64x128xf32>
    %cst_16 = arith.constant 0.797884583 : f32
    %37 = vector.broadcast %cst_16 : f32 to vector<64x128xf32>
    %38 = arith.mulf %37, %36 : vector<64x128xf32>
    %39 = math.tanh %38 : vector<64x128xf32>
    %cst_17 = arith.constant 1.000000e+00 : f32
    %40 = vector.broadcast %cst_17 : f32 to vector<64x128xf32>
    %41 = arith.addf %40, %39 : vector<64x128xf32>
    %42 = arith.mulf %31, %41 : vector<64x128xf32>
    %43 = arith.truncf %42 : vector<64x128xf32> to vector<64x128xbf16>
    %c0_18 = arith.constant 0 : index
    %c0_19 = arith.constant 0 : index
    %44 = vector.load %arg9[%c0_18, %c0_19] : memref<128x128xbf16, #tpu.memory_space<vmem>>, vector<128x128xbf16>
    %cst_20 = arith.constant dense<0.000000e+00> : vector<64x128xf32>
    %45 = tpu.matmul %43, %44, %cst_20 {dimension_numbers = #tpu.dot_dimension_numbers<[1], [0], [0], [1], [0, 0, 1, 1], [], []>} : vector<64x128xbf16>, vector<128x128xbf16>, vector<64x128xf32> -> vector<64x128xf32>
    %c0_21 = arith.constant 0 : index
    %c0_22 = arith.constant 0 : index
    %46 = vector.load %arg10[%c0_21, %c0_22] : memref<1x128xf32, #tpu.memory_space<vmem>>, vector<1x128xf32>
    %47 = vector.broadcast %46 : vector<1x128xf32> to vector<64x128xf32>
    %48 = arith.addf %45, %47 : vector<64x128xf32>
    %c0_23 = arith.constant 0 : index
    %c0_24 = arith.constant 0 : index
    %49 = vector.load %arg11[%c0_23, %c0_24] : memref<1x128xf32, #tpu.memory_space<vmem>>, vector<1x128xf32>
    %50 = vector.broadcast %49 : vector<1x128xf32> to vector<64x128xf32>
    %51 = arith.mulf %48, %50 : vector<64x128xf32>
    %c0_25 = arith.constant 0 : index
    %c0_26 = arith.constant 0 : index
    %52 = vector.load %arg1[%c0_25, %c0_26] : memref<64x8xbf16, #tpu.memory_space<vmem>>, vector<64x8xbf16>
    %c0_27 = arith.constant 0 : index
    %c0_28 = arith.constant 0 : index
    %53 = vector.load %arg3[%c0_27, %c0_28] : memref<8x128xbf16, #tpu.memory_space<vmem>>, vector<8x128xbf16>
    %cst_29 = arith.constant dense<0.000000e+00> : vector<64x128xf32>
    %54 = tpu.matmul %52, %53, %cst_29 {dimension_numbers = #tpu.dot_dimension_numbers<[1], [0], [0], [1], [0, 0, 1, 1], [], []>} : vector<64x8xbf16>, vector<8x128xbf16>, vector<64x128xf32> -> vector<64x128xf32>
    %c0_30 = arith.constant 0 : index
    %c0_31 = arith.constant 0 : index
    %55 = vector.load %arg4[%c0_30, %c0_31] : memref<1x128xf32, #tpu.memory_space<vmem>>, vector<1x128xf32>
    %56 = vector.broadcast %55 : vector<1x128xf32> to vector<64x128xf32>
    %57 = arith.addf %54, %56 : vector<64x128xf32>
    %58 = arith.addf %51, %57 : vector<64x128xf32>
    %59 = arith.truncf %58 : vector<64x128xf32> to vector<64x128xbf16>
    %c0_32 = arith.constant 0 : index
    %c0_33 = arith.constant 0 : index
    %60 = vector.load %arg12[%c0_32, %c0_33] : memref<64x128xbf16, #tpu.memory_space<vmem>>, vector<64x128xbf16>
    tpu.vector_store %arg12[%c0_32, %c0_33], %59 {strides = array<i32>} : memref<64x128xbf16, #tpu.memory_space<vmem>>, vector<64x128xbf16>,
    return
  }
  func.func @transform_0(%arg0: i32) -> (i32, i32) {
    %c0_i32 = arith.constant 0 : i32
    %c0_i32_0 = arith.constant 0 : i32
    return %arg0, %c0_i32 : i32, i32
  }
  func.func @transform_1(%arg0: i32) -> (i32, i32) {
    %c0_i32 = arith.constant 0 : i32
    %c0_i32_0 = arith.constant 0 : i32
    return %arg0, %c0_i32 : i32, i32
  }
  func.func @transform_2(%arg0: i32) -> (i32, i32) {
    %c0_i32 = arith.constant 0 : i32
    %c0_i32_0 = arith.constant 0 : i32
    %c0_i32_1 = arith.constant 0 : i32
    return %c0_i32, %c0_i32_0 : i32, i32
  }
  func.func @transform_3(%arg0: i32) -> (i32, i32) {
    %c0_i32 = arith.constant 0 : i32
    %c0_i32_0 = arith.constant 0 : i32
    %c0_i32_1 = arith.constant 0 : i32
    return %c0_i32, %c0_i32_0 : i32, i32
  }
  func.func @transform_4(%arg0: i32) -> (i32, i32) {
    %c0_i32 = arith.constant 0 : i32
    %c0_i32_0 = arith.constant 0 : i32
    %c0_i32_1 = arith.constant 0 : i32
    return %c0_i32, %c0_i32_0 : i32, i32
  }
  func.func @transform_5(%arg0: i32) -> (i32, i32) {
    %c0_i32 = arith.constant 0 : i32
    %c0_i32_0 = arith.constant 0 : i32
    %c0_i32_1 = arith.constant 0 : i32
    return %c0_i32, %c0_i32_0 : i32, i32
  }
  func.func @transform_6(%arg0: i32) -> (i32, i32) {
    %c0_i32 = arith.constant 0 : i32
    %c0_i32_0 = arith.constant 0 : i32
    %c0_i32_1 = arith.constant 0 : i32
    return %c0_i32, %c0_i32_0 : i32, i32
  }
  func.func @transform_7(%arg0: i32) -> (i32, i32) {
    %c0_i32 = arith.constant 0 : i32
    %c0_i32_0 = arith.constant 0 : i32
    %c0_i32_1 = arith.constant 0 : i32
    return %c0_i32, %c0_i32_0 : i32, i32
  }
  func.func @transform_8(%arg0: i32) -> (i32, i32) {
    %c0_i32 = arith.constant 0 : i32
    %c0_i32_0 = arith.constant 0 : i32
    %c0_i32_1 = arith.constant 0 : i32
    return %c0_i32, %c0_i32_0 : i32, i32
  }
  func.func @transform_9(%arg0: i32) -> (i32, i32) {
    %c0_i32 = arith.constant 0 : i32
    %c0_i32_0 = arith.constant 0 : i32
    %c0_i32_1 = arith.constant 0 : i32
    return %c0_i32, %c0_i32_0 : i32, i32
  }
  func.func @transform_10(%arg0: i32) -> (i32, i32) {
    %c0_i32 = arith.constant 0 : i32
    %c0_i32_0 = arith.constant 0 : i32
    %c0_i32_1 = arith.constant 0 : i32
    return %c0_i32, %c0_i32_0 : i32, i32
  }
  func.func @transform_11(%arg0: i32) -> (i32, i32) {
    %c0_i32 = arith.constant 0 : i32
    %c0_i32_0 = arith.constant 0 : i32
    return %arg0, %c0_i32 : i32, i32
  }
}

</mosaic_0001>

<bundles_post_ra>
// kernel: convnext_encoder_forward.4
= control target key start
LH: loop header
LB: loop body
LE: loop exit
PB: predicated region body
PF: predicated region fallthrough
CT: control target
= control target key end

     0   :  { %s946_s12 = smov 0   ;;  %s1038_s0 = inlined_call_operand.vmem [shape: bf16[16,2,16,16], index: 0, kind: input, shape index: {}]   ;;  %s1039_s1 = inlined_call_operand.vmem [shape: bf16[2,16,128], index: 1, kind: input, shape index: {}]   ;;  %s1040_s2 = inlined_call_operand.vmem [shape: f32[1,128], index: 2, kind: input, shape index: {}]   ;;  %s1041_s3 = inlined_call_operand.vmem [shape: bf16[256,128], index: 3, kind: output, shape index: {}]  }
   0x1 LB: > { %s709_s13 = sadd.s32 4294967295, %s924_s12   ;;  %p713_p0 = scmp.ge.s32.totalorder %s924_s12, 1  ;;  %s924_s12 = sphi %s946_s12, %s13_s12  }
   0x2   : > { %p139_p1 = scmp.lt.s32.totalorder %s924_s12, 3 }
   0x4   : > { %p140_p2 = pnand %p713_p0, %p139_p1 }
   0x5   : > { %s714_s16 = sshll.u32 (!%p140_p2), %s709_s13, 3  ;;  %s717_s23 = sshll.u32 (!%p140_p2), %s709_s13, 4 }
   0x6   : > { %143 = sbr.rel (%p140_p2) target bundleno = 246 (0xf6), region = 32  ;;  %p165_p3 = scmp.lt.s32.totalorder (!%p140_p2), %s714_s16, 15 }
   0x7   : > { %p172_p4 = scmp.lt.s32.totalorder (!%p140_p2), %s717_s23, 31 }
   0xb   : > { %v900_v0 = vld [vmem:[%s1039_s1 + $0x8] sm:$0xff]   ;;  %v901_v1 = vld [vmem:[%s1039_s1] sm:$0xff]   ;;  %s1043_s16 = smov (!%p165_p3, %s714_s16), 15  ;;  %vm261_vm0 = vcmask 130048   ;;  %s1045_s23 = smov (!%p172_p4, %s717_s23), 31 }
   0xc   : > { %856 = vmatprep.subr.bf16.mxu0 %v900_v0  ;;  %874 = vmatprep.subr.bf16.mxu1 %v901_v1  ;;  %s774_s19 = sshll.u32 %s1043_s16, 4  ;;  %v1004_v24 = vld [vmem:[%s1040_s2] ss:$0 sm:$0xff]  ;;  %s718_s26 = sshll.u32 %s1045_s23, 2 }
   0xd   : > { %857 = vmatpush3.bf16.msra.mxu0 %v900_v0  ;;  %875 = vmatpush3.bf16.msra.mxu1 %v901_v1  ;;  %s965_s22 = scalar_lea.vmem %s1038_s0, %s774_s19  ;;  %s1011_s29 = scalar_lea.vmem %s1041_s3, %s718_s26 }
   0xe   : > { %v902_v2 = vld [vmem:[%s965_s22 + $0x8] sm:$0xff]   ;;  %v903_v3 = vld [vmem:[%s965_s22] sm:$0xff]   ;;  %v904_v4 = vld [vmem:[%s965_s22 + $0x18] sm:$0xff]  }
   0xf   : > { %858 = vmatprep.mubr.msk.bf16.mxu0 %vm261_vm0, %v902_v2  ;;  %876 = vmatprep.mubr.msk.bf16.mxu1 %vm261_vm0, %v903_v3  ;;  %v905_v5 = vld [vmem:[%s965_s22 + $0x10] sm:$0xff]   ;;  %v906_v6 = vld [vmem:[%s965_s22 + $0x28] sm:$0xff]   ;;  %v907_v7 = vld [vmem:[%s965_s22 + $0x20] sm:$0xff]  }
  0x10   : > { %859 = vmatmul.mubr.msk.bf16.vlgmr.msra.gmra.mxu0 %vm261_vm0, %v904_v4  ;;  %877 = vmatmul.mubr.msk.bf16.vlgmr.msra.gmra.mxu1 %vm261_vm0, %v905_v5  ;;  %v908_v8 = vld [vmem:[%s965_s22 + $0x38] sm:$0xff]   ;;  %v909_v9 = vld [vmem:[%s965_s22 + $0x30] sm:$0xff]   ;;  %v910_v10 = vld [vmem:[%s965_s22 + $0x48] sm:$0xff]  }
  0x11   : > { %862 = vmatprep.mubr.msk.bf16.mxu0 %vm261_vm0, %v906_v6  ;;  %880 = vmatprep.mubr.msk.bf16.mxu1 %vm261_vm0, %v907_v7  ;;  %v911_v11 = vld [vmem:[%s965_s22 + $0x40] sm:$0xff]   ;;  %v912_v12 = vld [vmem:[%s965_s22 + $0x58] sm:$0xff]   ;;  %v913_v13 = vld [vmem:[%s965_s22 + $0x50] sm:$0xff]  }
  0x12   : > { %v914_v14 = vld [vmem:[%s965_s22 + $0x68] sm:$0xff]   ;;  %v915_v15 = vld [vmem:[%s965_s22 + $0x60] sm:$0xff]   ;;  %v916_v16 = vld [vmem:[%s965_s22 + $0x78] sm:$0xff]  }
  0x13   : > { %v917_v17 = vld [vmem:[%s965_s22 + $0x70] sm:$0xff]  }
  0x18   : > { %863 = vmatmul.mubr.msk.bf16.gmra.mxu0 %vm261_vm0, %v908_v8  ;;  %881 = vmatmul.mubr.msk.bf16.gmra.mxu1 %vm261_vm0, %v909_v9 }
  0x19   : > { %866 = vmatprep.mubr.msk.bf16.mxu0 %vm261_vm0, %v910_v10  ;;  %884 = vmatprep.mubr.msk.bf16.mxu1 %vm261_vm0, %v911_v11 }
  0x20   : > { %867 = vmatmul.mubr.msk.bf16.gmra.mxu0 %vm261_vm0, %v912_v12  ;;  %885 = vmatmul.mubr.msk.bf16.gmra.mxu1 %vm261_vm0, %v913_v13 }
  0x21   : > { %870 = vmatprep.mubr.msk.bf16.mxu0 %vm261_vm0, %v914_v14  ;;  %888 = vmatprep.mubr.msk.bf16.mxu1 %vm261_vm0, %v915_v15 }
  0x28   : > { %871 = vmatmul.mubr.msk.bf16.gmra.mxu0 %vm261_vm0, %v916_v16  ;;  %889 = vmatmul.mubr.msk.bf16.gmra.mxu1 %vm261_vm0, %v917_v17 }
  0xd0   : > { %v860_v18 = vpop.f32.mrf.mxu0  ;;  %v878_v19 = vpop.f32.mrf.mxu1 }
  0xd1   : > { %v496_v22 = vadd.f32 %v878_v19, %v860_v18 }
  0xd2   : > { %v320_v20 = vpop.f32.mrf.mxu0  ;;  %v487_v21 = vpop.f32.mrf.mxu1 }
  0xd3   : > { %v488_v26 = vadd.f32 %v487_v21, %v320_v20  ;;  %v559_v30 = vadd.f32 %v1004_v24, %v496_v22 }
  0xd4   : > { %v861_v23 = vpop.f32.mrf.mxu0  ;;  %v879_v25 = vpop.f32.mrf.mxu1 }
  0xd5   : > { %v499_v27 = vadd.f32 %v879_v25, %v861_v23  ;;  %v557_v35 = vadd.f32 %v1004_v24, %v488_v26 }
  0xd6   : > { %v323_v28 = vpop.f32.mrf.mxu0  ;;  %v490_v29 = vpop.f32.mrf.mxu1 }
  0xd7   : > { %v560_v31 = vadd.f32 %v1004_v24, %v499_v27  ;;  %v491_v32 = vadd.f32 %v490_v29, %v323_v28 }
  0xd8   : > { %v864_v33 = vpop.f32.mrf.mxu0  ;;  %v882_v34 = vpop.f32.mrf.mxu1 }
  0xd9   : > { %v799_v36 = vpack.c.bf16 %v560_v31, %v559_v30  ;;  %v558_v37 = vadd.f32 %v1004_v24, %v491_v32  ;;  %v512_v41 = vadd.f32 %v882_v34, %v864_v33 }
  0xda   : > { %v336_v38 = vpop.f32.mrf.mxu0  ;;  %v503_v39 = vpop.f32.mrf.mxu1 }
  0xdb   : > { %831 = vst [vmem:[%s1011_s29 + $0x8] sm:$0xff] %v799_v36   ;;  %v794_v40 = vpack.c.bf16 %v558_v37, %v557_v35  ;;  %v504_v44 = vadd.f32 %v503_v39, %v336_v38  ;;  %v563_v48 = vadd.f32 %v1004_v24, %v512_v41 }
  0xdc   : > { %v865_v42 = vpop.f32.mrf.mxu0  ;;  %v883_v43 = vpop.f32.mrf.mxu1 }
  0xdd   : > { %795 = vst [vmem:[%s1011_s29] sm:$0xff] %v794_v40   ;;  %v515_v45 = vadd.f32 %v883_v43, %v865_v42  ;;  %v561_v53 = vadd.f32 %v1004_v24, %v504_v44 }
  0xde   : > { %v339_v46 = vpop.f32.mrf.mxu0  ;;  %v506_v47 = vpop.f32.mrf.mxu1 }
  0xdf   : > { %v564_v49 = vadd.f32 %v1004_v24, %v515_v45  ;;  %v507_v50 = vadd.f32 %v506_v47, %v339_v46 }
  0xe0   : > { %v868_v51 = vpop.f32.mrf.mxu0  ;;  %v886_v52 = vpop.f32.mrf.mxu1 }
  0xe1   : > { %v809_v54 = vpack.c.bf16 %v564_v49, %v563_v48  ;;  %v562_v55 = vadd.f32 %v1004_v24, %v507_v50  ;;  %v528_v59 = vadd.f32 %v886_v52, %v868_v51 }
  0xe2   : > { %v352_v56 = vpop.f32.mrf.mxu0  ;;  %v519_v57 = vpop.f32.mrf.mxu1 }
  0xe3   : > { %833 = vst [vmem:[%s1011_s29 + $0x18] sm:$0xff] %v809_v54   ;;  %v804_v58 = vpack.c.bf16 %v562_v55, %v561_v53  ;;  %v520_v62 = vadd.f32 %v519_v57, %v352_v56  ;;  %v567_v2 = vadd.f32 %v1004_v24, %v528_v59 }
  0xe4   : > { %v869_v60 = vpop.f32.mrf.mxu0  ;;  %v887_v61 = vpop.f32.mrf.mxu1 }
  0xe5   : > { %832 = vst [vmem:[%s1011_s29 + $0x10] sm:$0xff] %v804_v58   ;;  %v531_v63 = vadd.f32 %v887_v61, %v869_v60  ;;  %v565_v7 = vadd.f32 %v1004_v24, %v520_v62 }
  0xe6   : > { %v355_v0 = vpop.f32.mrf.mxu0  ;;  %v522_v1 = vpop.f32.mrf.mxu1 }
  0xe7   : > { %v568_v3 = vadd.f32 %v1004_v24, %v531_v63  ;;  %v523_v4 = vadd.f32 %v522_v1, %v355_v0 }
  0xe8   : > { %v872_v5 = vpop.f32.mrf.mxu0  ;;  %v890_v6 = vpop.f32.mrf.mxu1 }
  0xe9   : > { %v819_v8 = vpack.c.bf16 %v568_v3, %v567_v2  ;;  %v566_v9 = vadd.f32 %v1004_v24, %v523_v4  ;;  %v544_v13 = vadd.f32 %v890_v6, %v872_v5 }
  0xea   : > { %v368_v10 = vpop.f32.mrf.mxu0  ;;  %v535_v11 = vpop.f32.mrf.mxu1 }
  0xeb   : > { %835 = vst [vmem:[%s1011_s29 + $0x28] sm:$0xff] %v819_v8   ;;  %v814_v12 = vpack.c.bf16 %v566_v9, %v565_v7  ;;  %v536_v16 = vadd.f32 %v535_v11, %v368_v10  ;;  %v571_v20 = vadd.f32 %v1004_v24, %v544_v13 }
  0xec   : > { %v873_v14 = vpop.f32.mrf.mxu0  ;;  %v891_v15 = vpop.f32.mrf.mxu1 }
  0xed   : > { %834 = vst [vmem:[%s1011_s29 + $0x20] sm:$0xff] %v814_v12   ;;  %v547_v17 = vadd.f32 %v891_v15, %v873_v14  ;;  %v569_v23 = vadd.f32 %v1004_v24, %v536_v16 }
  0xee   : > { %v371_v18 = vpop.f32.mrf.mxu0  ;;  %v538_v19 = vpop.f32.mrf.mxu1 }
  0xef   : > { %v572_v21 = vadd.f32 %v1004_v24, %v547_v17  ;;  %v539_v22 = vadd.f32 %v538_v19, %v371_v18 }
  0xf1   : > { %v829_v25 = vpack.c.bf16 %v572_v21, %v571_v20  ;;  %v570_v26 = vadd.f32 %v1004_v24, %v539_v22 }
  0xf3   : > { %837 = vst [vmem:[%s1011_s29 + $0x38] sm:$0xff] %v829_v25   ;;  %v824_v27 = vpack.c.bf16 %v570_v26, %v569_v23 }
  0xf5   : > { %836 = vst [vmem:[%s1011_s29 + $0x30] sm:$0xff] %v824_v27  }
  0xf6 PF: > { %s13_s12 = sadd.s32 1, %s924_s12  }
  0xf7   : > { %p10_p5 = scmp.ge.s32.totalorder %s13_s12, 4  }
  0xf9   :  { %12 = sbr.rel (!%p10_p5) target bundleno = 1 (0x1), region = 63 }

// kernel: convnext_encoder_forward.3
= control target key start
LH: loop header
LB: loop body
LE: loop exit
PB: predicated region body
PF: predicated region fallthrough
CT: control target
= control target key end

     0   :  { %s3097_s17 = smov 0   ;;  %s4183_s0 = inlined_call_operand.vmem [shape: bf16[512,4], index: 0, kind: input, shape index: {}]   ;;  %s4184_s1 = inlined_call_operand.vmem [shape: bf16[512,4], index: 1, kind: input, shape index: {}]   ;;  %s4185_s2 = inlined_call_operand.vmem [shape: bf16[4,128], index: 2, kind: input, shape index: {}]   ;;  %s4186_s3 = inlined_call_operand.vmem [shape: f32[1,128], index: 3, kind: input, shape index: {}]   ;;  %s4187_s4 = inlined_call_operand.vmem [shape: f32[1,4], index: 4, kind: input, shape index: {}]   ;;  %s4188_s5 = inlined_call_operand.vmem [shape: f32[1,4], index: 5, kind: input, shape index: {}]   ;;  %s4189_s6 = inlined_call_operand.vmem [shape: bf16[4,128], index: 6, kind: input, shape index: {}]   ;;  %s4190_s7 = inlined_call_operand.vmem [shape: f32[1,128], index: 7, kind: input, shape index: {}]   ;;  %s4191_s8 = inlined_call_operand.vmem [shape: bf16[128,128], index: 8, kind: input, shape index: {}]   ;;  %s4192_s9 = inlined_call_operand.vmem [shape: f32[1,128], index: 9, kind: input, shape index: {}]   ;;  %s4193_s10 = inlined_call_operand.vmem [shape: f32[1,128], index: 10, kind: input, shape index: {}]   ;;  %s4194_s11 = inlined_call_operand.vmem [shape: bf16[512,128], index: 11, kind: output, shape index: {}]  }
   0x1 LB: > { %s2377_s18 = sadd.s32 4294967295, %s3035_s17   ;;  %p2381_p0 = scmp.ge.s32.totalorder %s3035_s17, 1  ;;  %s3035_s17 = sphi %s3097_s17, %s21_s17  }
   0x2   : > { %p349_p1 = scmp.lt.s32.totalorder %s3035_s17, 3 }
   0x4   : > { %p350_p2 = pnand %p2381_p0, %p349_p1 }
   0x5   : > { %s2382_s19 = sshll.u32 (!%p350_p2), %s2377_s18, 5 }
   0x6   : > { %353 = sbr.rel (%p350_p2) target bundleno = 845 (0x34d), region = 64  ;;  %p395_p3 = scmp.lt.s32.totalorder (!%p350_p2), %s2382_s19, 63 }
   0xb   : > { %s4196_s19 = smov (!%p395_p3, %s2382_s19), 63  ;;  %vm477_vm0 = vcmask 31744   ;;  %vm1045_vm1 = vcmask 1041408  }
   0xc   : > { %s3105_s20 = sshll.u32 %s4196_s19, 2 }
   0xd   : > { %s3111_s23 = scalar_lea.vmem %s4184_s1, %s3105_s20  ;;  %s3138_s26 = scalar_lea.vmem %s4183_s0, %s3105_s20 }
   0xe   : > { %v3114_v0 = vld [vmem:[%s3111_s23] sm:$0xff]   ;;  %v3117_v1 = vld [vmem:[%s3111_s23 + $0x8] sm:$0xff]   ;;  %v3124_v6 = vld [vmem:[%s3111_s23 + $0x10] sm:$0xff]   ;;  %s4060_s28 = scalar_lea.vmem %s4194_s11, %s3105_s20 }
   0xf   : > { %v2518_v2 = vunpack.c.l.bf16 %v3114_v0  ;;  %v2522_v3 = vunpack.c.l.bf16 %v3117_v1  ;;  %v2519_v4 = vunpack.c.h.bf16 %v3114_v0  ;;  %v2523_v5 = vunpack.c.h.bf16 %v3117_v1  ;;  %v3147_v13 = vld [vmem:[%s3111_s23 + $0x18] sm:$0xff]   ;;  %v3158_v18 = vld [vmem:[%s3111_s23 + $0x20] sm:$0xff]   ;;  %v3169_v23 = vld [vmem:[%s3111_s23 + $0x28] sm:$0xff]  }
  0x10   : > { %v2526_v9 = vunpack.c.l.bf16 %v3124_v6  ;;  %v2527_v10 = vunpack.c.h.bf16 %v3124_v6  ;;  %v2530_v16 = vunpack.c.l.bf16 %v3147_v13  ;;  %v2531_v17 = vunpack.c.h.bf16 %v3147_v13  ;;  %v3178_v26 = vld [vmem:[%s3111_s23 + $0x30] sm:$0xff]   ;;  %v3191_v33 = vld [vmem:[%s3111_s23 + $0x38] sm:$0xff]   ;;  %v3202_v38 = vld [vmem:[%s3111_s23 + $0x40] sm:$0xff]  }
  0x11   : > { %v478_v7 = vsel %vm477_vm0, %v2518_v2, 0.0  ;;  %v484_v8 = vsel %vm477_vm0, %v2522_v3, 0.0  ;;  %v481_v11 = vsel %vm477_vm0, %v2519_v4, 0.0  ;;  %v487_v12 = vsel %vm477_vm0, %v2523_v5, 0.0  ;;  %v3213_v43 = vld [vmem:[%s3111_s23 + $0x48] sm:$0xff]   ;;  %v3224_v48 = vld [vmem:[%s3111_s23 + $0x50] sm:$0xff]  }
  0x12   : > { %479 = vadd.xlane.f32.xlu0 %v478_v7  ;;  %485 = vadd.xlane.f32.xlu1 %v484_v8  ;;  %v490_v14 = vsel %vm477_vm0, %v2526_v9, 0.0  ;;  %v493_v15 = vsel %vm477_vm0, %v2527_v10, 0.0  ;;  %v496_v19 = vsel %vm477_vm0, %v2530_v16, 0.0  ;;  %v499_v20 = vsel %vm477_vm0, %v2531_v17, 0.0  ;;  %v3235_v53 = vld [vmem:[%s3111_s23 + $0x58] sm:$0xff]   ;;  %v3246_v58 = vld [vmem:[%s3111_s23 + $0x60] sm:$0xff]  }
  0x13   : > { %v2534_v21 = vunpack.c.l.bf16 %v3158_v18  ;;  %v2535_v22 = vunpack.c.h.bf16 %v3158_v18  ;;  %v2538_v27 = vunpack.c.l.bf16 %v3169_v23  ;;  %v2539_v28 = vunpack.c.h.bf16 %v3169_v23  ;;  %v3257_v63 = vld [vmem:[%s3111_s23 + $0x68] sm:$0xff]  }
  0x14   : > { %v2542_v31 = vunpack.c.l.bf16 %v3178_v26  ;;  %v2543_v32 = vunpack.c.h.bf16 %v3178_v26  ;;  %v2546_v36 = vunpack.c.l.bf16 %v3191_v33  ;;  %v2547_v37 = vunpack.c.h.bf16 %v3191_v33 }
  0x15   : > { %v502_v24 = vsel %vm477_vm0, %v2534_v21, 0.0  ;;  %v505_v25 = vsel %vm477_vm0, %v2535_v22, 0.0  ;;  %v508_v29 = vsel %vm477_vm0, %v2538_v27, 0.0  ;;  %v511_v30 = vsel %vm477_vm0, %v2539_v28, 0.0 }
  0x16   : > { %482 = vadd.xlane.f32.xlu0 %v481_v11  ;;  %488 = vadd.xlane.f32.xlu1 %v487_v12  ;;  %v514_v34 = vsel %vm477_vm0, %v2542_v31, 0.0  ;;  %v517_v35 = vsel %vm477_vm0, %v2543_v32, 0.0  ;;  %v520_v39 = vsel %vm477_vm0, %v2546_v36, 0.0  ;;  %v523_v40 = vsel %vm477_vm0, %v2547_v37, 0.0 }
  0x17   : > { %v2550_v41 = vunpack.c.l.bf16 %v3202_v38  ;;  %v2551_v42 = vunpack.c.h.bf16 %v3202_v38  ;;  %v2554_v46 = vunpack.c.l.bf16 %v3213_v43  ;;  %v2555_v47 = vunpack.c.h.bf16 %v3213_v43 }
  0x18   : > { %v2558_v51 = vunpack.c.l.bf16 %v3224_v48  ;;  %v2559_v52 = vunpack.c.h.bf16 %v3224_v48  ;;  %v2562_v56 = vunpack.c.l.bf16 %v3235_v53  ;;  %v2563_v57 = vunpack.c.h.bf16 %v3235_v53 }
  0x19   : > { %v526_v44 = vsel %vm477_vm0, %v2550_v41, 0.0  ;;  %v529_v45 = vsel %vm477_vm0, %v2551_v42, 0.0  ;;  %v532_v49 = vsel %vm477_vm0, %v2554_v46, 0.0  ;;  %v535_v50 = vsel %vm477_vm0, %v2555_v47, 0.0 }
  0x1a   : > { %491 = vadd.xlane.f32.xlu0 %v490_v14  ;;  %494 = vadd.xlane.f32.xlu1 %v493_v15  ;;  %v538_v54 = vsel %vm477_vm0, %v2558_v51, 0.0  ;;  %v541_v55 = vsel %vm477_vm0, %v2559_v52, 0.0  ;;  %v544_v59 = vsel %vm477_vm0, %v2562_v56, 0.0  ;;  %v547_v60 = vsel %vm477_vm0, %v2563_v57, 0.0  ;;  %v3268_v14 = vld [vmem:[%s3111_s23 + $0x70] sm:$0xff]  }
  0x1b   : > { %v2566_v61 = vunpack.c.l.bf16 %v3246_v58  ;;  %v2567_v62 = vunpack.c.h.bf16 %v3246_v58  ;;  %v2570_v11 = vunpack.c.l.bf16 %v3257_v63  ;;  %v2571_v12 = vunpack.c.h.bf16 %v3257_v63 }
  0x1d   : > { %v550_v7 = vsel %vm477_vm0, %v2566_v61, 0.0  ;;  %v553_v8 = vsel %vm477_vm0, %v2567_v62, 0.0  ;;  %v556_v15 = vsel %vm477_vm0, %v2570_v11, 0.0 }
  0x1e   : > { %497 = vadd.xlane.f32.xlu0 %v496_v19  ;;  %500 = vadd.xlane.f32.xlu1 %v499_v20  ;;  %v559_v19 = vsel %vm477_vm0, %v2571_v12, 0.0  ;;  %v2574_v20 = vunpack.c.l.bf16 %v3268_v14 }
  0x22   : > { %503 = vadd.xlane.f32.xlu0 %v502_v24  ;;  %506 = vadd.xlane.f32.xlu1 %v505_v25  ;;  %v2575_v24 = vunpack.c.h.bf16 %v3268_v14  ;;  %v3279_v25 = vld [vmem:[%s3111_s23 + $0x78] sm:$0xff]  }
  0x26   : > { %509 = vadd.xlane.f32.xlu0 %v508_v29  ;;  %512 = vadd.xlane.f32.xlu1 %v511_v30  ;;  %v562_v29 = vsel %vm477_vm0, %v2574_v20, 0.0  ;;  %v565_v30 = vsel %vm477_vm0, %v2575_v24, 0.0 }
  0x2a   : > { %515 = vadd.xlane.f32.xlu0 %v514_v34  ;;  %518 = vadd.xlane.f32.xlu1 %v517_v35  ;;  %v2578_v34 = vunpack.c.l.bf16 %v3279_v25  ;;  %v2579_v35 = vunpack.c.h.bf16 %v3279_v25 }
  0x2e   : > { %521 = vadd.xlane.f32.xlu0 %v520_v39  ;;  %524 = vadd.xlane.f32.xlu1 %v523_v40  ;;  %v568_v39 = vsel %vm477_vm0, %v2578_v34, 0.0  ;;  %v571_v40 = vsel %vm477_vm0, %v2579_v35, 0.0 }
  0x32   : > { %527 = vadd.xlane.f32.xlu0 %v526_v44  ;;  %530 = vadd.xlane.f32.xlu1 %v529_v45 }
  0x36   : > { %533 = vadd.xlane.f32.xlu0 %v532_v49  ;;  %536 = vadd.xlane.f32.xlu1 %v535_v50 }
  0x3a   : > { %539 = vadd.xlane.f32.xlu0 %v538_v54  ;;  %542 = vadd.xlane.f32.xlu1 %v541_v55 }
  0x3e   : > { %545 = vadd.xlane.f32.xlu0 %v544_v59  ;;  %548 = vadd.xlane.f32.xlu1 %v547_v60 }
  0x42   : > { %551 = vadd.xlane.f32.xlu0 %v550_v7  ;;  %554 = vadd.xlane.f32.xlu1 %v553_v8 }
  0x46   : > { %557 = vadd.xlane.f32.xlu0 %v556_v15  ;;  %560 = vadd.xlane.f32.xlu1 %v559_v19 }
  0x4a   : > { %563 = vadd.xlane.f32.xlu0 %v562_v29  ;;  %566 = vadd.xlane.f32.xlu1 %v565_v30 }
  0x4e   : > { %569 = vadd.xlane.f32.xlu0 %v568_v39  ;;  %572 = vadd.xlane.f32.xlu1 %v571_v40 }
  0x9b   : > { %v480_v44 = vpop.xlane.xlu0 %479  ;;  %v486_v45 = vpop.xlane.xlu1 %485 }
  0x9c   : > { %v575_v49 = vmul.f32 0.25, %v480_v44  ;;  %v577_v50 = vmul.f32 0.25, %v486_v45 }
  0x9e   : > { %v3297_v54 = vsub.f32 %v2518_v2, %v575_v49  ;;  %v3301_v55 = vsub.f32 %v2522_v3, %v577_v50 }
  0x9f   : > { %v483_v59 = vpop.xlane.xlu0 %482  ;;  %v489_v60 = vpop.xlane.xlu1 %488 }
  0xa0   : > { %v576_v7 = vmul.f32 0.25, %v483_v59  ;;  %v578_v8 = vmul.f32 0.25, %v489_v60  ;;  %v639_v15 = vmul.f32 %v3297_v54, %v3297_v54  ;;  %v641_v19 = vmul.f32 %v3301_v55, %v3301_v55 }
  0xa2   : > { %v3309_v29 = vsub.f32 %v2519_v4, %v576_v7  ;;  %v3313_v2 = vsub.f32 %v2523_v5, %v578_v8  ;;  %v671_v3 = vsel %vm477_vm0, %v639_v15, 0.0  ;;  %v677_v40 = vsel %vm477_vm0, %v641_v19, 0.0 }
  0xa3   : > { %672 = vadd.xlane.f32.xlu0 %v671_v3  ;;  %v492_v30 = vpop.xlane.xlu0 %491  ;;  %v495_v39 = vpop.xlane.xlu1 %494 }
  0xa4   : > { %v579_v44 = vmul.f32 0.25, %v492_v30  ;;  %v580_v45 = vmul.f32 0.25, %v495_v39  ;;  %v640_v49 = vmul.f32 %v3309_v29, %v3309_v29  ;;  %v642_v0 = vmul.f32 %v3313_v2, %v3313_v2 }
  0xa6   : > { %v3323_v1 = vsub.f32 %v2526_v9, %v579_v44  ;;  %v3327_v4 = vsub.f32 %v2527_v10, %v580_v45  ;;  %v674_v5 = vsel %vm477_vm0, %v640_v49, 0.0  ;;  %v680_v60 = vsel %vm477_vm0, %v642_v0, 0.0 }
  0xa7   : > { %678 = vadd.xlane.f32.xlu0 %v677_v40  ;;  %675 = vadd.xlane.f32.xlu1 %v674_v5  ;;  %v498_v50 = vpop.xlane.xlu0 %497  ;;  %v501_v59 = vpop.xlane.xlu1 %500 }
  0xa8   : > { %v581_v7 = vmul.f32 0.25, %v498_v50  ;;  %v582_v8 = vmul.f32 0.25, %v501_v59  ;;  %v643_v15 = vmul.f32 %v3323_v1, %v3323_v1  ;;  %v644_v9 = vmul.f32 %v3327_v4, %v3327_v4 }
  0xaa   : > { %v3337_v6 = vsub.f32 %v2530_v16, %v581_v7  ;;  %v3341_v10 = vsub.f32 %v2531_v17, %v582_v8  ;;  %v683_v19 = vsel %vm477_vm0, %v643_v15, 0.0  ;;  %v686_v39 = vsel %vm477_vm0, %v644_v9, 0.0 }
  0xab   : > { %681 = vadd.xlane.f32.xlu1 %v680_v60  ;;  %684 = vadd.xlane.f32.xlu0 %v683_v19  ;;  %v504_v3 = vpop.xlane.xlu0 %503  ;;  %v507_v30 = vpop.xlane.xlu1 %506 }
  0xac   : > { %v583_v40 = vmul.f32 0.25, %v504_v3  ;;  %v584_v44 = vmul.f32 0.25, %v507_v30  ;;  %v645_v45 = vmul.f32 %v3337_v6, %v3337_v6  ;;  %v646_v16 = vmul.f32 %v3341_v10, %v3341_v10 }
  0xae   : > { %v3351_v13 = vsub.f32 %v2534_v21, %v583_v40  ;;  %v3355_v17 = vsub.f32 %v2535_v22, %v584_v44  ;;  %v689_v49 = vsel %vm477_vm0, %v645_v45, 0.0  ;;  %v692_v50 = vsel %vm477_vm0, %v646_v16, 0.0 }
  0xaf   : > { %687 = vadd.xlane.f32.xlu1 %v686_v39  ;;  %690 = vadd.xlane.f32.xlu0 %v689_v49  ;;  %v510_v0 = vpop.xlane.xlu0 %509  ;;  %v513_v5 = vpop.xlane.xlu1 %512 }
  0xb0   : > { %v585_v59 = vmul.f32 0.25, %v510_v0  ;;  %v586_v60 = vmul.f32 0.25, %v513_v5  ;;  %v647_v7 = vmul.f32 %v3351_v13, %v3351_v13  ;;  %v648_v21 = vmul.f32 %v3355_v17, %v3355_v17 }
  0xb2   : > { %v3365_v18 = vsub.f32 %v2538_v27, %v585_v59  ;;  %v3369_v22 = vsub.f32 %v2539_v28, %v586_v60  ;;  %v695_v8 = vsel %vm477_vm0, %v647_v7, 0.0  ;;  %v698_v19 = vsel %vm477_vm0, %v648_v21, 0.0 }
  0xb3   : > { %693 = vadd.xlane.f32.xlu1 %v692_v50  ;;  %696 = vadd.xlane.f32.xlu0 %v695_v8  ;;  %v516_v15 = vpop.xlane.xlu0 %515  ;;  %v519_v9 = vpop.xlane.xlu1 %518 }
  0xb4   : > { %v587_v3 = vmul.f32 0.25, %v516_v15  ;;  %v588_v30 = vmul.f32 0.25, %v519_v9  ;;  %v649_v39 = vmul.f32 %v3365_v18, %v3365_v18  ;;  %v650_v27 = vmul.f32 %v3369_v22, %v3369_v22 }
  0xb6   : > { %v3379_v23 = vsub.f32 %v2542_v31, %v587_v3  ;;  %v3383_v28 = vsub.f32 %v2543_v32, %v588_v30  ;;  %v701_v40 = vsel %vm477_vm0, %v649_v39, 0.0  ;;  %v704_v16 = vsel %vm477_vm0, %v650_v27, 0.0 }
  0xb7   : > { %699 = vadd.xlane.f32.xlu1 %v698_v19  ;;  %702 = vadd.xlane.f32.xlu0 %v701_v40  ;;  %v522_v44 = vpop.xlane.xlu0 %521  ;;  %v525_v45 = vpop.xlane.xlu1 %524 }
  0xb8   : > { %v589_v49 = vmul.f32 0.25, %v522_v44  ;;  %v590_v0 = vmul.f32 0.25, %v525_v45  ;;  %v651_v5 = vmul.f32 %v3379_v23, %v3379_v23  ;;  %v652_v31 = vmul.f32 %v3383_v28, %v3383_v28 }
  0xba   : > { %v3393_v26 = vsub.f32 %v2546_v36, %v589_v49  ;;  %v3397_v32 = vsub.f32 %v2547_v37, %v590_v0  ;;  %v707_v50 = vsel %vm477_vm0, %v651_v5, 0.0  ;;  %v710_v7 = vsel %vm477_vm0, %v652_v31, 0.0 }
  0xbb   : > { %705 = vadd.xlane.f32.xlu1 %v704_v16  ;;  %708 = vadd.xlane.f32.xlu0 %v707_v50  ;;  %v528_v59 = vpop.xlane.xlu0 %527  ;;  %v531_v60 = vpop.xlane.xlu1 %530 }
  0xbc   : > { %v591_v21 = vmul.f32 0.25, %v528_v59  ;;  %v592_v8 = vmul.f32 0.25, %v531_v60  ;;  %v653_v15 = vmul.f32 %v3393_v26, %v3393_v26  ;;  %v654_v36 = vmul.f32 %v3397_v32, %v3397_v32 }
  0xbe   : > { %v3407_v33 = vsub.f32 %v2550_v41, %v591_v21  ;;  %v3411_v37 = vsub.f32 %v2551_v42, %v592_v8  ;;  %v713_v9 = vsel %vm477_vm0, %v653_v15, 0.0  ;;  %v716_v30 = vsel %vm477_vm0, %v654_v36, 0.0 }
  0xbf   : > { %711 = vadd.xlane.f32.xlu1 %v710_v7  ;;  %714 = vadd.xlane.f32.xlu0 %v713_v9  ;;  %v534_v19 = vpop.xlane.xlu0 %533  ;;  %v537_v3 = vpop.xlane.xlu1 %536 }
  0xc0   : > { %v593_v39 = vmul.f32 0.25, %v534_v19  ;;  %v594_v27 = vmul.f32 0.25, %v537_v3  ;;  %v655_v40 = vmul.f32 %v3407_v33, %v3407_v33  ;;  %v656_v41 = vmul.f32 %v3411_v37, %v3411_v37 }
  0xc2   : > { %v3421_v38 = vsub.f32 %v2554_v46, %v593_v39  ;;  %v3425_v42 = vsub.f32 %v2555_v47, %v594_v27  ;;  %v719_v44 = vsel %vm477_vm0, %v655_v40, 0.0  ;;  %v722_v49 = vsel %vm477_vm0, %v656_v41, 0.0 }
  0xc3   : > { %717 = vadd.xlane.f32.xlu1 %v716_v30  ;;  %720 = vadd.xlane.f32.xlu0 %v719_v44  ;;  %v540_v45 = vpop.xlane.xlu0 %539  ;;  %v543_v16 = vpop.xlane.xlu1 %542  ;;  %v989_v30 = vld [vmem:[%s4189_s6] sm:$0x3] }
  0xc4   : > { %v595_v0 = vmul.f32 0.25, %v540_v45  ;;  %v596_v5 = vmul.f32 0.25, %v543_v16  ;;  %v657_v31 = vmul.f32 %v3421_v38, %v3421_v38  ;;  %v658_v46 = vmul.f32 %v3425_v42, %v3425_v42  ;;  %2866 = vmatprep.subr.msk.bf16.mxu0 %vm1045_vm1, %v989_v30  ;;  %2867 = vmatprep.subr.msk.bf16.mxu1 %vm1045_vm1, %v989_v30 }
  0xc5   : > { %v1047_v27 = vsel %vm1045_vm1, %v989_v30, 0 }
  0xc6   : > { %v3435_v43 = vsub.f32 %v2558_v51, %v595_v0  ;;  %v3439_v47 = vsub.f32 %v2559_v52, %v596_v5  ;;  %v725_v50 = vsel %vm477_vm0, %v657_v31, 0.0  ;;  %v728_v7 = vsel %vm477_vm0, %v658_v46, 0.0  ;;  %2749 = vmatpush3.bf16.msra.mxu0 %v1047_v27  ;;  %2865 = vmatpush3.bf16.msra.mxu1 %v1047_v27 }
  0xc7   : > { %723 = vadd.xlane.f32.xlu1 %v722_v49  ;;  %726 = vadd.xlane.f32.xlu0 %v725_v50  ;;  %v546_v59 = vpop.xlane.xlu0 %545  ;;  %v549_v60 = vpop.xlane.xlu1 %548 }
  0xc8   : > { %v597_v21 = vmul.f32 0.25, %v546_v59  ;;  %v598_v8 = vmul.f32 0.25, %v549_v60  ;;  %v659_v15 = vmul.f32 %v3435_v43, %v3435_v43  ;;  %v660_v51 = vmul.f32 %v3439_v47, %v3439_v47 }
  0xca   : > { %v3449_v48 = vsub.f32 %v2562_v56, %v597_v21  ;;  %v3453_v52 = vsub.f32 %v2563_v57, %v598_v8  ;;  %v731_v36 = vsel %vm477_vm0, %v659_v15, 0.0  ;;  %v734_v3 = vsel %vm477_vm0, %v660_v51, 0.0 }
  0xcb   : > { %729 = vadd.xlane.f32.xlu1 %v728_v7  ;;  %732 = vadd.xlane.f32.xlu0 %v731_v36  ;;  %v552_v9 = vpop.xlane.xlu0 %551  ;;  %v555_v19 = vpop.xlane.xlu1 %554 }
  0xcc   : > { %v599_v39 = vmul.f32 0.25, %v552_v9  ;;  %v600_v56 = vmul.f32 0.25, %v555_v19  ;;  %v661_v53 = vmul.f32 %v3449_v48, %v3449_v48  ;;  %v662_v57 = vmul.f32 %v3453_v52, %v3453_v52 }
  0xce   : > { %v3469_v40 = vsub.f32 %v2566_v61, %v599_v39  ;;  %v3473_v41 = vsub.f32 %v2567_v62, %v600_v56  ;;  %v737_v44 = vsel %vm477_vm0, %v661_v53, 0.0  ;;  %v740_v49 = vsel %vm477_vm0, %v662_v57, 0.0 }
  0xcf   : > { %735 = vadd.xlane.f32.xlu1 %v734_v3  ;;  %738 = vadd.xlane.f32.xlu0 %v737_v44  ;;  %v558_v45 = vpop.xlane.xlu0 %557  ;;  %v561_v16 = vpop.xlane.xlu1 %560 }
  0xd0   : > { %v601_v0 = vmul.f32 0.25, %v558_v45  ;;  %v602_v5 = vmul.f32 0.25, %v561_v16  ;;  %v663_v61 = vmul.f32 %v3469_v40, %v3469_v40  ;;  %v664_v58 = vmul.f32 %v3473_v41, %v3473_v41 }
  0xd2   : > { %v3483_v62 = vsub.f32 %v2570_v11, %v601_v0  ;;  %v3487_v31 = vsub.f32 %v2571_v12, %v602_v5  ;;  %v743_v46 = vsel %vm477_vm0, %v663_v61, 0.0  ;;  %v746_v60 = vsel %vm477_vm0, %v664_v58, 0.0 }
  0xd3   : > { %741 = vadd.xlane.f32.xlu1 %v740_v49  ;;  %744 = vadd.xlane.f32.xlu0 %v743_v46  ;;  %v564_v50 = vpop.xlane.xlu0 %563  ;;  %v567_v59 = vpop.xlane.xlu1 %566 }
  0xd4   : > { %v603_v7 = vmul.f32 0.25, %v564_v50  ;;  %v604_v21 = vmul.f32 0.25, %v567_v59  ;;  %v665_v8 = vmul.f32 %v3483_v62, %v3483_v62  ;;  %v666_v11 = vmul.f32 %v3487_v31, %v3487_v31 }
  0xd6   : > { %v3497_v63 = vsub.f32 %v2574_v20, %v603_v7  ;;  %v3501_v12 = vsub.f32 %v2575_v24, %v604_v21  ;;  %v749_v15 = vsel %vm477_vm0, %v665_v8, 0.0  ;;  %v752_v9 = vsel %vm477_vm0, %v666_v11, 0.0 }
  0xd7   : > { %747 = vadd.xlane.f32.xlu1 %v746_v60  ;;  %750 = vadd.xlane.f32.xlu0 %v749_v15  ;;  %v570_v51 = vpop.xlane.xlu0 %569  ;;  %v573_v36 = vpop.xlane.xlu1 %572 }
  0xd8   : > { %v605_v19 = vmul.f32 0.25, %v570_v51  ;;  %v606_v3 = vmul.f32 0.25, %v573_v36  ;;  %v667_v30 = vmul.f32 %v3497_v63, %v3497_v63  ;;  %v668_v20 = vmul.f32 %v3501_v12, %v3501_v12 }
  0xda   : > { %v3511_v14 = vsub.f32 %v2578_v34, %v605_v19  ;;  %v3515_v24 = vsub.f32 %v2579_v35, %v606_v3  ;;  %v755_v39 = vsel %vm477_vm0, %v667_v30, 0.0  ;;  %v758_v56 = vsel %vm477_vm0, %v668_v20, 0.0 }
  0xdb   : > { %753 = vadd.xlane.f32.xlu1 %v752_v9  ;;  %756 = vadd.xlane.f32.xlu0 %v755_v39 }
  0xdc   : > { %v669_v53 = vmul.f32 %v3511_v14, %v3511_v14  ;;  %v670_v57 = vmul.f32 %v3515_v24, %v3515_v24 }
  0xde   : > { %v761_v27 = vsel %vm477_vm0, %v669_v53, 0.0  ;;  %v764_v25 = vsel %vm477_vm0, %v670_v57, 0.0  ;;  %v3529_v57 = vld [vmem:[%s4187_s4] ss:$0 sm:$0xff] }
  0xdf   : > { %759 = vadd.xlane.f32.xlu1 %v758_v56  ;;  %762 = vadd.xlane.f32.xlu0 %v761_v27 }
  0xe3   : > { %765 = vadd.xlane.f32.xlu1 %v764_v25 }
 0x12c   : > { %v673_v34 = vpop.xlane.xlu0 %672 }
 0x12d   : > { %v767_v35 = vmul.f32 0.25, %v673_v34 }
 0x12f   : > { %v799_v44 = vadd.f32 1e-06, %v767_v35 }
 0x130   : > { %v676_v45 = vpop.xlane.xlu1 %675  ;;  %v679_v16 = vpop.xlane.xlu0 %678 }
 0x131   : > { %2901 = vrsqrt.f32 %v799_v44  ;;  %v768_v49 = vmul.f32 0.25, %v676_v45  ;;  %v769_v0 = vmul.f32 0.25, %v679_v16 }
 0x133   : > { %v800_v5 = vadd.f32 1e-06, %v768_v49  ;;  %v801_v61 = vadd.f32 1e-06, %v769_v0 }
 0x134   : > { %v682_v58 = vpop.xlane.xlu1 %681  ;;  %v685_v46 = vpop.xlane.xlu0 %684 }
 0x135   : > { %2903 = vrsqrt.f32 %v800_v5  ;;  %v770_v50 = vmul.f32 0.25, %v682_v58  ;;  %v771_v59 = vmul.f32 0.25, %v685_v46 }
 0x136   : > { %2905 = vrsqrt.f32 %v801_v61 }
 0x137   : > { %v802_v60 = vadd.f32 1e-06, %v770_v50  ;;  %v803_v7 = vadd.f32 1e-06, %v771_v59 }
 0x138   : > { %v688_v21 = vpop.xlane.xlu1 %687  ;;  %v691_v8 = vpop.xlane.xlu0 %690 }
 0x139   : > { %2907 = vrsqrt.f32 %v802_v60  ;;  %v772_v11 = vmul.f32 0.25, %v688_v21  ;;  %v773_v15 = vmul.f32 0.25, %v691_v8 }
 0x13a   : > { %2909 = vrsqrt.f32 %v803_v7 }
 0x13b   : > { %v804_v51 = vadd.f32 1e-06, %v772_v11  ;;  %v805_v36 = vadd.f32 1e-06, %v773_v15 }
 0x13c   : > { %v694_v9 = vpop.xlane.xlu1 %693  ;;  %v697_v19 = vpop.xlane.xlu0 %696 }
 0x13d   : > { %2911 = vrsqrt.f32 %v804_v51  ;;  %v774_v3 = vmul.f32 0.25, %v694_v9  ;;  %v775_v30 = vmul.f32 0.25, %v697_v19 }
 0x13e   : > { %v2902_v20 = vpop.eup %2901  ;;  %2913 = vrsqrt.f32 %v805_v36 }
 0x13f   : > { %v806_v39 = vadd.f32 1e-06, %v774_v3  ;;  %v807_v56 = vadd.f32 1e-06, %v775_v30  ;;  %v863_v53 = vmul.f32 %v2902_v20, %v3297_v54  ;;  %v3536_v54 = vld [vmem:[%s4188_s5] ss:$0 sm:$0xff] }
 0x140   : > { %v700_v27 = vpop.xlane.xlu1 %699  ;;  %v703_v25 = vpop.xlane.xlu0 %702 }
 0x141   : > { %2915 = vrsqrt.f32 %v806_v39  ;;  %v776_v34 = vmul.f32 0.25, %v700_v27  ;;  %v777_v35 = vmul.f32 0.25, %v703_v25  ;;  %v902_v45 = vmul.f32 %v3529_v57, %v863_v53 }
 0x142   : > { %v2904_v44 = vpop.eup %2903  ;;  %2917 = vrsqrt.f32 %v807_v56 }
 0x143   : > { %v2906_v16 = vpop.eup %2905  ;;  %v808_v49 = vadd.f32 1e-06, %v776_v34  ;;  %v809_v0 = vadd.f32 1e-06, %v777_v35  ;;  %v864_v5 = vmul.f32 %v2904_v44, %v3309_v29  ;;  %v941_v21 = vadd.f32 %v3536_v54, %v902_v45 }
 0x144   : > { %v706_v61 = vpop.xlane.xlu1 %705  ;;  %v709_v58 = vpop.xlane.xlu0 %708  ;;  %v865_v46 = vmul.f32 %v2906_v16, %v3301_v55 }
 0x145   : > { %2919 = vrsqrt.f32 %v808_v49  ;;  %v778_v50 = vmul.f32 0.25, %v706_v61  ;;  %v779_v59 = vmul.f32 0.25, %v709_v58  ;;  %v903_v60 = vmul.f32 %v3529_v57, %v864_v5 }
 0x146   : > { %v2908_v7 = vpop.eup %2907  ;;  %2921 = vrsqrt.f32 %v809_v0  ;;  %v904_v55 = vmul.f32 %v3529_v57, %v865_v46 }
 0x147   : > { %v2910_v8 = vpop.eup %2909  ;;  %v810_v29 = vadd.f32 1e-06, %v778_v50  ;;  %v811_v11 = vadd.f32 1e-06, %v779_v59  ;;  %v942_v15 = vadd.f32 %v3536_v54, %v903_v60  ;;  %v866_v51 = vmul.f32 %v2908_v7, %v3313_v2 }
 0x148   : > { %v712_v36 = vpop.xlane.xlu1 %711  ;;  %v715_v9 = vpop.xlane.xlu0 %714  ;;  %v867_v19 = vmul.f32 %v2910_v8, %v3323_v1  ;;  %v943_v1 = vadd.f32 %v3536_v54, %v904_v55 }
 0x149   : > { %2923 = vrsqrt.f32 %v810_v29  ;;  %v780_v3 = vmul.f32 0.25, %v712_v36  ;;  %v781_v30 = vmul.f32 0.25, %v715_v9  ;;  %v973_v20 = vpack.c.bf16 %v942_v15, %v941_v21 }
 0x14a   : > { %v2912_v39 = vpop.eup %2911  ;;  %2925 = vrsqrt.f32 %v811_v11  ;;  %v905_v56 = vmul.f32 %v3529_v57, %v866_v51  ;;  %v906_v53 = vmul.f32 %v3529_v57, %v867_v19 }
 0x14b   : > { %v2914_v27 = vpop.eup %2913  ;;  %v812_v25 = vadd.f32 1e-06, %v780_v3  ;;  %v813_v34 = vadd.f32 1e-06, %v781_v30  ;;  %2750 = vmatprep.mubr.msk.bf16.mxu0 %vm477_vm0, %v973_v20  ;;  %v868_v2 = vmul.f32 %v2912_v39, %v3327_v4 }
 0x14c   : > { %v718_v35 = vpop.xlane.xlu1 %717  ;;  %v721_v44 = vpop.xlane.xlu0 %720  ;;  %v944_v45 = vadd.f32 %v3536_v54, %v905_v56  ;;  %v869_v16 = vmul.f32 %v2914_v27, %v3337_v6  ;;  %v945_v46 = vadd.f32 %v3536_v54, %v906_v53 }
 0x14d   : > { %2927 = vrsqrt.f32 %v812_v25  ;;  %v782_v49 = vmul.f32 0.25, %v718_v35  ;;  %v783_v0 = vmul.f32 0.25, %v721_v44  ;;  %v907_v5 = vmul.f32 %v3529_v57, %v868_v2 }
 0x14e   : > { %v2916_v61 = vpop.eup %2915  ;;  %2929 = vrsqrt.f32 %v813_v34  ;;  %v974_v58 = vpack.c.bf16 %v944_v45, %v943_v1  ;;  %v908_v8 = vmul.f32 %v3529_v57, %v869_v16 }
 0x14f   : > { %v2918_v50 = vpop.eup %2917  ;;  %v814_v4 = vadd.f32 1e-06, %v782_v49  ;;  %v815_v59 = vadd.f32 1e-06, %v783_v0  ;;  %v946_v60 = vadd.f32 %v3536_v54, %v907_v5  ;;  %v870_v7 = vmul.f32 %v2916_v61, %v3341_v10 }
 0x150   : > { %2751 = vmatmul.mubr.msk.bf16.vlgmr.msra.gmra.mxu0 %vm477_vm0, %v974_v58  ;;  %v724_v6 = vpop.xlane.xlu1 %723  ;;  %v727_v21 = vpop.xlane.xlu0 %726  ;;  %v871_v29 = vmul.f32 %v2918_v50, %v3351_v13  ;;  %v947_v13 = vadd.f32 %v3536_v54, %v908_v8 }
 0x151   : > { %2931 = vrsqrt.f32 %v814_v4  ;;  %v784_v11 = vmul.f32 0.25, %v724_v6  ;;  %v785_v15 = vmul.f32 0.25, %v727_v21  ;;  %v975_v51 = vpack.c.bf16 %v946_v60, %v945_v46 }
 0x152   : > { %v2920_v36 = vpop.eup %2919  ;;  %2933 = vrsqrt.f32 %v815_v59  ;;  %v909_v9 = vmul.f32 %v3529_v57, %v870_v7  ;;  %v910_v55 = vmul.f32 %v3529_v57, %v871_v29 }
 0x153   : > { %v2922_v19 = vpop.eup %2921  ;;  %v816_v10 = vadd.f32 1e-06, %v784_v11  ;;  %v817_v3 = vadd.f32 1e-06, %v785_v15  ;;  %2754 = vmatprep.mubr.msk.bf16.mxu0 %vm477_vm0, %v975_v51  ;;  %v872_v30 = vmul.f32 %v2920_v36, %v3355_v17 }
 0x154   : > { %v730_v20 = vpop.xlane.xlu1 %729  ;;  %v733_v39 = vpop.xlane.xlu0 %732  ;;  %v948_v56 = vadd.f32 %v3536_v54, %v909_v9  ;;  %v873_v53 = vmul.f32 %v2922_v19, %v3365_v18  ;;  %v949_v44 = vadd.f32 %v3536_v54, %v910_v55 }
 0x155   : > { %2935 = vrsqrt.f32 %v816_v10  ;;  %v786_v27 = vmul.f32 0.25, %v730_v20  ;;  %v787_v25 = vmul.f32 0.25, %v733_v39  ;;  %v911_v34 = vmul.f32 %v3529_v57, %v872_v30 }
 0x156   : > { %v2924_v2 = vpop.eup %2923  ;;  %2937 = vrsqrt.f32 %v817_v3  ;;  %v976_v35 = vpack.c.bf16 %v948_v56, %v947_v13  ;;  %v912_v5 = vmul.f32 %v3529_v57, %v873_v53 }
 0x157   : > { %v2926_v1 = vpop.eup %2925  ;;  %v818_v17 = vadd.f32 1e-06, %v786_v27  ;;  %v819_v45 = vadd.f32 1e-06, %v787_v25  ;;  %v950_v16 = vadd.f32 %v3536_v54, %v911_v34  ;;  %v874_v49 = vmul.f32 %v2924_v2, %v3369_v22 }
 0x158   : > { %2755 = vmatmul.mubr.msk.bf16.gmra.mxu0 %vm477_vm0, %v976_v35  ;;  %v736_v18 = vpop.xlane.xlu1 %735  ;;  %v739_v0 = vpop.xlane.xlu0 %738  ;;  %v875_v61 = vmul.f32 %v2926_v1, %v3379_v23  ;;  %v951_v23 = vadd.f32 %v3536_v54, %v912_v5 }
 0x159   : > { %2939 = vrsqrt.f32 %v818_v17  ;;  %v788_v58 = vmul.f32 0.25, %v736_v18  ;;  %v789_v46 = vmul.f32 0.25, %v739_v0  ;;  %v977_v50 = vpack.c.bf16 %v950_v16, %v949_v44 }
 0x15a   : > { %v2928_v4 = vpop.eup %2927  ;;  %2941 = vrsqrt.f32 %v819_v45  ;;  %v913_v59 = vmul.f32 %v3529_v57, %v874_v49  ;;  %v914_v60 = vmul.f32 %v3529_v57, %v875_v61 }
 0x15b   : > { %v2930_v7 = vpop.eup %2929  ;;  %v820_v22 = vadd.f32 1e-06, %v788_v58  ;;  %v821_v6 = vadd.f32 1e-06, %v789_v46  ;;  %2758 = vmatprep.mubr.msk.bf16.mxu0 %vm477_vm0, %v977_v50  ;;  %v876_v21 = vmul.f32 %v2928_v4, %v3383_v28 }
 0x15c   : > { %v742_v8 = vpop.xlane.xlu1 %741  ;;  %v745_v29 = vpop.xlane.xlu0 %744  ;;  %v952_v11 = vadd.f32 %v3536_v54, %v913_v59  ;;  %v877_v15 = vmul.f32 %v2930_v7, %v3393_v26  ;;  %v953_v10 = vadd.f32 %v3536_v54, %v914_v60 }
 0x15d   : > { %2943 = vrsqrt.f32 %v820_v22  ;;  %v790_v51 = vmul.f32 0.25, %v742_v8  ;;  %v791_v36 = vmul.f32 0.25, %v745_v29  ;;  %v915_v9 = vmul.f32 %v3529_v57, %v876_v21 }
 0x15e   : > { %v2932_v55 = vpop.eup %2931  ;;  %2945 = vrsqrt.f32 %v821_v6  ;;  %v978_v19 = vpack.c.bf16 %v952_v11, %v951_v23  ;;  %v916_v56 = vmul.f32 %v3529_v57, %v877_v15 }
 0x15f   : > { %v2934_v3 = vpop.eup %2933  ;;  %v822_v28 = vadd.f32 1e-06, %v790_v51  ;;  %v823_v30 = vadd.f32 1e-06, %v791_v36  ;;  %v954_v20 = vadd.f32 %v3536_v54, %v915_v9  ;;  %v878_v39 = vmul.f32 %v2932_v55, %v3397_v32 }
 0x160   : > { %2759 = vmatmul.mubr.msk.bf16.gmra.mxu0 %vm477_vm0, %v978_v19  ;;  %v748_v26 = vpop.xlane.xlu1 %747  ;;  %v751_v13 = vpop.xlane.xlu0 %750  ;;  %v879_v53 = vmul.f32 %v2934_v3, %v3407_v33  ;;  %v955_v33 = vadd.f32 %v3536_v54, %v916_v56 }
 0x161   : > { %2947 = vrsqrt.f32 %v822_v28  ;;  %v792_v27 = vmul.f32 0.25, %v748_v26  ;;  %v793_v25 = vmul.f32 0.25, %v751_v13  ;;  %v979_v34 = vpack.c.bf16 %v954_v20, %v953_v10 }
 0x162   : > { %v2936_v2 = vpop.eup %2935  ;;  %2949 = vrsqrt.f32 %v823_v30  ;;  %v917_v35 = vmul.f32 %v3529_v57, %v878_v39  ;;  %v918_v44 = vmul.f32 %v3529_v57, %v879_v53 }
 0x163   : > { %v2938_v1 = vpop.eup %2937  ;;  %v824_v32 = vadd.f32 1e-06, %v792_v27  ;;  %v825_v17 = vadd.f32 1e-06, %v793_v25  ;;  %2762 = vmatprep.mubr.msk.bf16.mxu0 %vm477_vm0, %v979_v34  ;;  %v880_v45 = vmul.f32 %v2936_v2, %v3411_v37 }
 0x164   : > { %v754_v16 = vpop.xlane.xlu1 %753  ;;  %v757_v49 = vpop.xlane.xlu0 %756  ;;  %v956_v18 = vadd.f32 %v3536_v54, %v917_v35  ;;  %v881_v0 = vmul.f32 %v2938_v1, %v3421_v38  ;;  %v957_v4 = vadd.f32 %v3536_v54, %v918_v44 }
 0x165   : > { %2951 = vrsqrt.f32 %v824_v32  ;;  %v794_v5 = vmul.f32 0.25, %v754_v16  ;;  %v795_v61 = vmul.f32 0.25, %v757_v49  ;;  %v919_v58 = vmul.f32 %v3529_v57, %v880_v45 }
 0x166   : > { %v2940_v46 = vpop.eup %2939  ;;  %2953 = vrsqrt.f32 %v825_v17  ;;  %v980_v50 = vpack.c.bf16 %v956_v18, %v955_v33  ;;  %v920_v21 = vmul.f32 %v3529_v57, %v881_v0 }
 0x167   : > { %v2942_v59 = vpop.eup %2941  ;;  %v826_v37 = vadd.f32 1e-06, %v794_v5  ;;  %v827_v60 = vadd.f32 1e-06, %v795_v61  ;;  %v958_v7 = vadd.f32 %v3536_v54, %v919_v58  ;;  %v882_v22 = vmul.f32 %v2940_v46, %v3425_v42 }
 0x168   : > { %2763 = vmatmul.mubr.msk.bf16.gmra.mxu0 %vm477_vm0, %v980_v50  ;;  %v760_v38 = vpop.xlane.xlu1 %759  ;;  %v763_v6 = vpop.xlane.xlu0 %762  ;;  %v883_v8 = vmul.f32 %v2942_v59, %v3435_v43  ;;  %v959_v43 = vadd.f32 %v3536_v54, %v920_v21 }
 0x169   : > { %2955 = vrsqrt.f32 %v826_v37  ;;  %v796_v29 = vmul.f32 0.25, %v760_v38  ;;  %v797_v23 = vmul.f32 0.25, %v763_v6  ;;  %v981_v11 = vpack.c.bf16 %v958_v7, %v957_v4 }
 0x16a   : > { %v2944_v15 = vpop.eup %2943  ;;  %2957 = vrsqrt.f32 %v827_v60  ;;  %v921_v51 = vmul.f32 %v3529_v57, %v882_v22  ;;  %v922_v36 = vmul.f32 %v3529_v57, %v883_v8 }
 0x16b   : > { %v2946_v9 = vpop.eup %2945  ;;  %v828_v42 = vadd.f32 1e-06, %v796_v29  ;;  %v829_v55 = vadd.f32 1e-06, %v797_v23  ;;  %2766 = vmatprep.mubr.msk.bf16.mxu1 %vm477_vm0, %v981_v11  ;;  %v884_v19 = vmul.f32 %v2944_v15, %v3439_v47  ;;  %v2878_v15 = vld [vmem:[%s4191_s8 + $0x30] sm:$0xff]  }
 0x16c   : > { %v766_v10 = vpop.xlane.xlu1 %765  ;;  %v960_v3 = vadd.f32 %v3536_v54, %v921_v51  ;;  %v885_v28 = vmul.f32 %v2946_v9, %v3449_v48  ;;  %v961_v13 = vadd.f32 %v3536_v54, %v922_v36  ;;  %v2880_v36 = vld [vmem:[%s4191_s8 + $0x20] sm:$0xff]   ;;  %v2881_v9 = vld [vmem:[%s4191_s8 + $0x18] sm:$0xff]  }
 0x16d   : > { %2959 = vrsqrt.f32 %v828_v42  ;;  %v798_v30 = vmul.f32 0.25, %v766_v10  ;;  %v923_v20 = vmul.f32 %v3529_v57, %v884_v19  ;;  %v2882_v42 = vld [vmem:[%s4191_s8 + $0x10] sm:$0xff]   ;;  %v2885_v19 = vld [vmem:[%s3138_s26] sm:$0xff]  }
 0x16e   : > { %v2948_v39 = vpop.eup %2947  ;;  %2961 = vrsqrt.f32 %v829_v55  ;;  %v982_v26 = vpack.c.bf16 %v960_v3, %v959_v43  ;;  %v924_v25 = vmul.f32 %v3529_v57, %v885_v28  ;;  %v2883_v55 = vld [vmem:[%s4191_s8 + $0x8] sm:$0xff]   ;;  %v2884_v10 = vld [vmem:[%s4191_s8] sm:$0xff]   ;;  %2832 = vmatprep.mubr.msk.bf16.mxu0 %vm477_vm0, %v2885_v19  ;;  %v2887_v3 = vld [vmem:[%s3138_s26 + $0x10] sm:$0xff]  }
 0x16f   : > { %v2950_v56 = vpop.eup %2949  ;;  %v830_v53 = vadd.f32 1e-06, %v798_v30  ;;  %v962_v47 = vadd.f32 %v3536_v54, %v923_v20  ;;  %v886_v27 = vmul.f32 %v2948_v39, %v3453_v52  ;;  %v2886_v43 = vld [vmem:[%s3138_s26 + $0x8] sm:$0xff]   ;;  %v2888_v28 = vld [vmem:[%s3138_s26 + $0x18] sm:$0xff]   ;;  %v2889_v30 = vld [vmem:[%s3138_s26 + $0x20] sm:$0xff]  }
 0x170   : > { %2767 = vmatmul.mubr.msk.bf16.vlgmr.msra.gmra.mxu1 %vm477_vm0, %v982_v26  ;;  %v887_v48 = vmul.f32 %v2950_v56, %v3469_v40  ;;  %v963_v1 = vadd.f32 %v3536_v54, %v924_v25  ;;  %v2890_v20 = vld [vmem:[%s3138_s26 + $0x28] sm:$0xff]   ;;  %v2891_v39 = vld [vmem:[%s3138_s26 + $0x30] sm:$0xff]   ;;  %v2892_v26 = vld [vmem:[%s3138_s26 + $0x38] sm:$0xff]  }
 0x171   : > { %2963 = vrsqrt.f32 %v830_v53  ;;  %v983_v34 = vpack.c.bf16 %v962_v47, %v961_v13  ;;  %v925_v2 = vmul.f32 %v3529_v57, %v886_v27  ;;  %v2893_v13 = vld [vmem:[%s3138_s26 + $0x40] sm:$0xff]   ;;  %v2894_v56 = vld [vmem:[%s3138_s26 + $0x48] sm:$0xff]   ;;  %v2895_v53 = vld [vmem:[%s3138_s26 + $0x50] sm:$0xff]  }
 0x172   : > { %v2952_v35 = vpop.eup %2951  ;;  %v926_v17 = vmul.f32 %v3529_v57, %v887_v48  ;;  %v2896_v47 = vld [vmem:[%s3138_s26 + $0x58] sm:$0xff]   ;;  %v2897_v27 = vld [vmem:[%s3138_s26 + $0x60] sm:$0xff]   ;;  %v2898_v25 = vld [vmem:[%s3138_s26 + $0x68] sm:$0xff]  }
 0x173   : > { %v2954_v44 = vpop.eup %2953  ;;  %2770 = vmatprep.mubr.msk.bf16.mxu1 %vm477_vm0, %v983_v34  ;;  %v964_v32 = vadd.f32 %v3536_v54, %v925_v2  ;;  %v888_v52 = vmul.f32 %v2952_v35, %v3473_v41  ;;  %v2899_v48 = vld [vmem:[%s3138_s26 + $0x70] sm:$0xff]   ;;  %v2900_v34 = vld [vmem:[%s3138_s26 + $0x78] sm:$0xff]   ;;  %v3711_v2 = vld [vmem:[%s4190_s7] ss:$0 sm:$0xff] }
 0x174   : > { %v889_v45 = vmul.f32 %v2954_v44, %v3483_v62  ;;  %v965_v18 = vadd.f32 %v3536_v54, %v926_v17 }
 0x175   : > { %v984_v16 = vpack.c.bf16 %v964_v32, %v963_v1  ;;  %v927_v40 = vmul.f32 %v3529_v57, %v888_v52 }
 0x176   : > { %v2956_v49 = vpop.eup %2955  ;;  %v928_v61 = vmul.f32 %v3529_v57, %v889_v45 }
 0x177   : > { %v2958_v33 = vpop.eup %2957  ;;  %v966_v0 = vadd.f32 %v3536_v54, %v927_v40  ;;  %v890_v5 = vmul.f32 %v2956_v49, %v3487_v31 }
 0x178   : > { %2771 = vmatmul.mubr.msk.bf16.gmra.mxu1 %vm477_vm0, %v984_v16  ;;  %v891_v41 = vmul.f32 %v2958_v33, %v3497_v63  ;;  %v967_v4 = vadd.f32 %v3536_v54, %v928_v61 }
 0x179   : > { %v985_v58 = vpack.c.bf16 %v966_v0, %v965_v18  ;;  %v929_v62 = vmul.f32 %v3529_v57, %v890_v5 }
 0x17a   : > { %v2960_v46 = vpop.eup %2959  ;;  %v930_v31 = vmul.f32 %v3529_v57, %v891_v41 }
 0x17b   : > { %v2962_v50 = vpop.eup %2961  ;;  %2774 = vmatprep.mubr.msk.bf16.mxu1 %vm477_vm0, %v985_v58  ;;  %v968_v59 = vadd.f32 %v3536_v54, %v929_v62  ;;  %v892_v37 = vmul.f32 %v2960_v46, %v3501_v12 }
 0x17c   : > { %v893_v60 = vmul.f32 %v2962_v50, %v3511_v14  ;;  %v969_v38 = vadd.f32 %v3536_v54, %v930_v31 }
 0x17d   : > { %v986_v7 = vpack.c.bf16 %v968_v59, %v967_v4  ;;  %v931_v63 = vmul.f32 %v3529_v57, %v892_v37 }
 0x17e   : > { %v2964_v22 = vpop.eup %2963  ;;  %v932_v8 = vmul.f32 %v3529_v57, %v893_v60 }
 0x17f   : > { %v970_v6 = vadd.f32 %v3536_v54, %v931_v63  ;;  %v894_v21 = vmul.f32 %v2964_v22, %v3515_v24  ;;  %v2877_v24 = vld [vmem:[%s4191_s8 + $0x38] sm:$0xff]  }
 0x180   : > { %2775 = vmatmul.mubr.msk.bf16.gmra.mxu1 %vm477_vm0, %v986_v7  ;;  %v971_v14 = vadd.f32 %v3536_v54, %v932_v8  ;;  %2782 = vmatprep.subr.bf16.mxu1 %v2877_v24 }
 0x181   : > { %v987_v29 = vpack.c.bf16 %v970_v6, %v969_v38  ;;  %v933_v12 = vmul.f32 %v3529_v57, %v894_v21  ;;  %2783 = vmatpush3.bf16.msra.mxu1 %v2877_v24  ;;  %v2879_v57 = vld [vmem:[%s4191_s8 + $0x28] sm:$0xff]  }
 0x182   : > { %2784 = vmatprep.subr.bf16.mxu1 %v2878_v15 }
 0x183   : > { %2778 = vmatprep.mubr.msk.bf16.mxu1 %vm477_vm0, %v987_v29  ;;  %v972_v23 = vadd.f32 %v3536_v54, %v933_v12  ;;  %v1817_v54 = vld [vmem:[%s4185_s2] sm:$0x3] }
 0x184   : > { %2868 = vmatprep.subr.msk.bf16.mxu0 %vm1045_vm1, %v1817_v54  ;;  %v1954_v51 = vsel %vm1045_vm1, %v1817_v54, 0 }
 0x185   : > { %v988_v11 = vpack.c.bf16 %v972_v23, %v971_v14  ;;  %2785 = vmatpush3.bf16.msra.mxu1 %v2878_v15  ;;  %2831 = vmatpush3.bf16.msra.mxu0 %v1954_v51 }
 0x186   : > { %2786 = vmatprep.subr.bf16.mxu1 %v2879_v57 }
 0x188   : > { %2779 = vmatmul.mubr.msk.bf16.gmra.mxu1 %vm477_vm0, %v988_v11  ;;  %2833 = vmatmul.mubr.msk.bf16.vlgmr.msra.gmra.mxu0 %vm477_vm0, %v2886_v43 }
 0x189   : > { %2787 = vmatpush3.bf16.msra.mxu1 %v2879_v57  ;;  %2836 = vmatprep.mubr.msk.bf16.mxu0 %vm477_vm0, %v2887_v3 }
 0x18a   : > { %2788 = vmatprep.subr.bf16.mxu1 %v2880_v36 }
 0x18d   : > { %2789 = vmatpush3.bf16.msra.mxu1 %v2880_v36 }
 0x18e   : > { %2790 = vmatprep.subr.bf16.mxu1 %v2881_v9 }
 0x190   : > { %2837 = vmatmul.mubr.msk.bf16.gmra.mxu0 %vm477_vm0, %v2888_v28 }
 0x191   : > { %2791 = vmatpush3.bf16.msra.mxu1 %v2881_v9  ;;  %2840 = vmatprep.mubr.msk.bf16.mxu0 %vm477_vm0, %v2889_v30 }
 0x192   : > { %2792 = vmatprep.subr.bf16.mxu1 %v2882_v42 }
 0x195   : > { %2793 = vmatpush3.bf16.msra.mxu1 %v2882_v42 }
 0x196   : > { %2794 = vmatprep.subr.bf16.mxu1 %v2883_v55 }
 0x198   : > { %2841 = vmatmul.mubr.msk.bf16.gmra.mxu0 %vm477_vm0, %v2890_v20 }
 0x199   : > { %2795 = vmatpush3.bf16.msra.mxu1 %v2883_v55  ;;  %2844 = vmatprep.mubr.msk.bf16.mxu0 %vm477_vm0, %v2891_v39 }
 0x19a   : > { %2796 = vmatprep.subr.bf16.mxu1 %v2884_v10 }
 0x19d   : > { %2797 = vmatpush3.bf16.msra.mxu1 %v2884_v10 }
 0x1a0   : > { %2845 = vmatmul.mubr.msk.bf16.gmra.mxu0 %vm477_vm0, %v2892_v26 }
 0x1a1   : > { %2848 = vmatprep.mubr.msk.bf16.mxu0 %vm477_vm0, %v2893_v13 }
 0x1a8   : > { %2849 = vmatmul.mubr.msk.bf16.gmra.mxu0 %vm477_vm0, %v2894_v56 }
 0x1a9   : > { %2852 = vmatprep.mubr.msk.bf16.mxu0 %vm477_vm0, %v2895_v53 }
 0x1b0   : > { %2853 = vmatmul.mubr.msk.bf16.gmra.mxu0 %vm477_vm0, %v2896_v47 }
 0x1b1   : > { %2856 = vmatprep.mubr.msk.bf16.mxu0 %vm477_vm0, %v2897_v27 }
 0x1b8   : > { %2857 = vmatmul.mubr.msk.bf16.gmra.mxu0 %vm477_vm0, %v2898_v25 }
 0x1b9   : > { %2860 = vmatprep.mubr.msk.bf16.mxu0 %vm477_vm0, %v2899_v48 }
 0x1c0   : > { %2861 = vmatmul.mubr.msk.bf16.gmra.mxu0 %vm477_vm0, %v2900_v34 }
 0x210   : > { %v2752_v35 = vpop.f32.mrf.mxu0 }
 0x211   : > { %v3714_v44 = vadd.f32 %v2752_v35, %v3711_v2 }
 0x212   : > { %v1083_v1 = vpop.f32.mrf.mxu0 }
 0x213   : > { %v1244_v32 = vmul.f32 0.044715, %v3714_v44  ;;  %v3718_v52 = vadd.f32 %v3711_v2, %v1083_v1 }
 0x214   : > { %v2753_v17 = vpop.f32.mrf.mxu0 }
 0x215   : > { %v1276_v45 = vmul.f32 %v1244_v32, %v3714_v44  ;;  %v1242_v16 = vmul.f32 0.044715, %v3718_v52  ;;  %v3723_v40 = vadd.f32 %v2753_v17, %v3711_v2 }
 0x216   : > { %v1086_v49 = vpop.f32.mrf.mxu0 }
 0x217   : > { %v1308_v33 = vmul.f32 %v1276_v45, %v3714_v44  ;;  %v1274_v18 = vmul.f32 %v1242_v16, %v3718_v52  ;;  %v1245_v0 = vmul.f32 0.044715, %v3723_v40  ;;  %v3729_v5 = vadd.f32 %v3711_v2, %v1086_v49 }
 0x218   : > { %v2756_v61 = vpop.f32.mrf.mxu0 }
 0x219   : > { %v1340_v41 = vadd.f32 %v1308_v33, %v3714_v44  ;;  %v1306_v58 = vmul.f32 %v1274_v18, %v3718_v52  ;;  %v1277_v62 = vmul.f32 %v1245_v0, %v3723_v40  ;;  %v3735_v46 = vadd.f32 %v2756_v61, %v3711_v2 }
 0x21a   : > { %v1243_v50 = vmul.f32 0.044715, %v3729_v5  ;;  %v1099_v4 = vpop.f32.mrf.mxu0  ;;  %v1212_v61 = vmul.f32 0.5, %v3714_v44  ;;  %v1211_v44 = vmul.f32 0.5, %v3729_v5 }
 0x21b   : > { %v1372_v59 = vmul.f32 0.7978846, %v1340_v41  ;;  %v1309_v37 = vmul.f32 %v1277_v62, %v3723_v40  ;;  %v1248_v31 = vmul.f32 0.044715, %v3735_v46  ;;  %v3741_v60 = vadd.f32 %v3711_v2, %v1099_v4 }
 0x21c   : > { %v1275_v7 = vmul.f32 %v1243_v50, %v3729_v5  ;;  %v2757_v63 = vpop.f32.mrf.mxu0  ;;  %v1338_v22 = vadd.f32 %v1306_v58, %v3718_v52  ;;  %v1210_v58 = vmul.f32 0.5, %v3718_v52  ;;  %v1213_v4 = vmul.f32 0.5, %v3723_v40 }
 0x21d   : > { %v1341_v38 = vadd.f32 %v1309_v37, %v3723_v40  ;;  %v1280_v6 = vmul.f32 %v1248_v31, %v3735_v46  ;;  %v1246_v21 = vmul.f32 0.044715, %v3741_v60  ;;  %2965 = vtanh.f32 %v1372_v59 }
 0x21e   : > { %v1307_v8 = vmul.f32 %v1275_v7, %v3729_v5  ;;  %v3750_v29 = vadd.f32 %v2757_v63, %v3711_v2  ;;  %v1102_v12 = vpop.f32.mrf.mxu0  ;;  %v1370_v14 = vmul.f32 0.7978846, %v1338_v22  ;;  %v3805_v40 = vmul.f32 0.5, %v3741_v60 }
 0x21f   : > { %v1373_v23 = vmul.f32 0.7978846, %v1341_v38  ;;  %v1312_v11 = vmul.f32 %v1280_v6, %v3735_v46  ;;  %v1278_v24 = vmul.f32 %v1246_v21, %v3741_v60  ;;  %v3755_v15 = vadd.f32 %v3711_v2, %v1102_v12 }
 0x220   : > { %v1249_v57 = vmul.f32 0.044715, %v3750_v29  ;;  %v2760_v54 = vpop.f32.mrf.mxu0  ;;  %v1339_v51 = vadd.f32 %v1307_v8, %v3729_v5  ;;  %2967 = vtanh.f32 %v1370_v14  ;;  %v3808_v6 = vmul.f32 0.5, %v3735_v46 }
 0x221   : > { %2969 = vtanh.f32 %v1373_v23  ;;  %v1310_v36 = vmul.f32 %v1278_v24, %v3741_v60  ;;  %v1247_v9 = vmul.f32 0.044715, %v3755_v15  ;;  %v3762_v42 = vadd.f32 %v2760_v54, %v3711_v2 }
 0x222   : > { %v1281_v55 = vmul.f32 %v1249_v57, %v3750_v29  ;;  %v1115_v19 = vpop.f32.mrf.mxu0  ;;  %v1371_v10 = vmul.f32 0.7978846, %v1339_v51  ;;  %v1344_v43 = vadd.f32 %v1312_v11, %v3735_v46  ;;  %v3816_v23 = vmul.f32 0.5, %v3750_v29 }
 0x223   : > { %v1279_v3 = vmul.f32 %v1247_v9, %v3755_v15  ;;  %v1252_v28 = vmul.f32 0.044715, %v3762_v42  ;;  %v3769_v30 = vadd.f32 %v3711_v2, %v1115_v19  ;;  %v1342_v20 = vadd.f32 %v1310_v36, %v3741_v60 }
 0x224   : > { %v1313_v39 = vmul.f32 %v1281_v55, %v3750_v29  ;;  %v2761_v26 = vpop.f32.mrf.mxu0  ;;  %2971 = vtanh.f32 %v1371_v10  ;;  %v1376_v13 = vmul.f32 0.7978846, %v1344_v43  ;;  %v3823_v57 = vmul.f32 0.5, %v3755_v15 }
 0x225   : > { %v1311_v56 = vmul.f32 %v1279_v3, %v3755_v15  ;;  %v1284_v53 = vmul.f32 %v1252_v28, %v3762_v42  ;;  %v1250_v47 = vmul.f32 0.044715, %v3769_v30  ;;  %v3777_v27 = vadd.f32 %v2761_v26, %v3711_v2 }
 0x226   : > { %v1118_v25 = vpop.f32.mrf.mxu0  ;;  %v1374_v48 = vmul.f32 0.7978846, %v1342_v20  ;;  %v1345_v34 = vadd.f32 %v1313_v39, %v3750_v29  ;;  %2973 = vtanh.f32 %v1376_v13  ;;  %v3829_v10 = vmul.f32 0.5, %v3762_v42 }
 0x227   : > { %v1282_v35 = vmul.f32 %v1250_v47, %v3769_v30  ;;  %v1253_v1 = vmul.f32 0.044715, %v3777_v27  ;;  %v3783_v32 = vadd.f32 %v3711_v2, %v1118_v25  ;;  %v1343_v45 = vadd.f32 %v1311_v56, %v3755_v15 }
 0x228   : > { %v2764_v17 = vpop.f32.mrf.mxu0  ;;  %2975 = vtanh.f32 %v1374_v48  ;;  %v1377_v16 = vmul.f32 0.7978846, %v1345_v34  ;;  %v1316_v49 = vmul.f32 %v1284_v53, %v3762_v42  ;;  %v3837_v53 = vmul.f32 0.5, %v3769_v30 }
 0x229   : > { %v1314_v33 = vmul.f32 %v1282_v35, %v3769_v30  ;;  %v1285_v18 = vmul.f32 %v1253_v1, %v3777_v27  ;;  %v1251_v0 = vmul.f32 0.044715, %v3783_v32  ;;  %v1375_v62 = vmul.f32 0.7978846, %v1343_v45 }
 0x22a   : > { %v1131_v41 = vpop.f32.mrf.mxu0  ;;  %2977 = vtanh.f32 %v1377_v16  ;;  %v2966_v50 = vpop.eup %2965  ;;  %v3795_v37 = vadd.f32 %v2764_v17, %v3711_v2  ;;  %v1348_v21 = vadd.f32 %v1316_v49, %v3762_v42 }
 0x22b   : > { %v1283_v59 = vmul.f32 %v1251_v0, %v3783_v32  ;;  %v3798_v31 = vadd.f32 %v3711_v2, %v1131_v41  ;;  %v1317_v7 = vmul.f32 %v1285_v18, %v3777_v27  ;;  %2979 = vtanh.f32 %v1375_v62 }
 0x22c   : > { %v2765_v63 = vpop.f32.mrf.mxu0  ;;  %v1346_v52 = vadd.f32 %v1314_v33, %v3769_v30  ;;  %v1256_v24 = vmul.f32 0.044715, %v3795_v37  ;;  %v1436_v19 = vadd.f32 1.0, %v2966_v50  ;;  %v1380_v43 = vmul.f32 0.7978846, %v1348_v21 }
 0x22d   : > { %v2968_v22 = vpop.eup %2967  ;;  %v1315_v38 = vmul.f32 %v1283_v59, %v3783_v32  ;;  %v1254_v12 = vmul.f32 0.044715, %v3798_v31  ;;  %v3813_v14 = vadd.f32 %v2765_v63, %v3711_v2  ;;  %v1349_v9 = vadd.f32 %v1317_v7, %v3777_v27 }
 0x22e   : > { %v2970_v8 = vpop.eup %2969  ;;  %v1134_v5 = vpop.f32.mrf.mxu0  ;;  %v1378_v11 = vmul.f32 0.7978846, %v1346_v52  ;;  %v1434_v46 = vadd.f32 1.0, %v2968_v22  ;;  %v1288_v1 = vmul.f32 %v1256_v24, %v3795_v37  ;;  %v1468_v16 = vmul.f32 %v1436_v19, %v1212_v61 }
 0x22f   : > { %v3820_v60 = vadd.f32 %v3711_v2, %v1134_v5  ;;  %v1437_v51 = vadd.f32 1.0, %v2970_v8  ;;  %v1347_v36 = vadd.f32 %v1315_v38, %v3783_v32  ;;  %v1286_v3 = vmul.f32 %v1254_v12, %v3798_v31 }
 0x230   : > { %v2768_v54 = vpop.f32.mrf.mxu1  ;;  %2981 = vtanh.f32 %v1378_v11  ;;  %v1257_v15 = vmul.f32 0.044715, %v3813_v14  ;;  %v1466_v13 = vmul.f32 %v1434_v46, %v1210_v58  ;;  %v1381_v34 = vmul.f32 0.7978846, %v1349_v9 }
 0x231   : > { %v2972_v55 = vpop.eup %2971  ;;  %v1255_v29 = vmul.f32 0.044715, %v3820_v60  ;;  %v1379_v39 = vmul.f32 0.7978846, %v1347_v36  ;;  %v3834_v26 = vadd.f32 %v2768_v54, %v3711_v2  ;;  %v1469_v56 = vmul.f32 %v1437_v51, %v1213_v4 }
 0x232   : > { %v1147_v28 = vpop.f32.mrf.mxu1  ;;  %v1435_v20 = vadd.f32 1.0, %v2972_v55  ;;  %v1318_v30 = vmul.f32 %v1286_v3, %v3798_v31  ;;  %v1289_v49 = vmul.f32 %v1257_v15, %v3813_v14  ;;  %v3860_v38 = vmul.f32 0.5, %v3777_v27 }
 0x233   : > { %v2974_v47 = vpop.eup %2973  ;;  %v1287_v42 = vmul.f32 %v1255_v29, %v3820_v60  ;;  %2983 = vtanh.f32 %v1379_v39  ;;  %v3842_v17 = vadd.f32 %v3711_v2, %v1147_v28  ;;  %v1260_v41 = vmul.f32 0.044715, %v3834_v26 }
 0x234   : > { %v2769_v25 = vpop.f32.mrf.mxu1  ;;  %v1467_v48 = vmul.f32 %v1435_v20, %v1211_v44  ;;  %2985 = vtanh.f32 %v1380_v43  ;;  %v1499_v62 = vpack.c.bf16 %v1469_v56, %v1468_v16  ;;  %v1440_v50 = vadd.f32 1.0, %v2974_v47 }
 0x235   : > { %v2976_v35 = vpop.eup %2975  ;;  %v3845_v45 = vadd.f32 %v2769_v25, %v3711_v2  ;;  %v1319_v4 = vmul.f32 %v1287_v42, %v3820_v60  ;;  %2987 = vtanh.f32 %v1381_v34  ;;  %v1258_v44 = vmul.f32 0.044715, %v3842_v17 }
 0x236   : > { %v1150_v33 = vpop.f32.mrf.mxu1  ;;  %v1498_v18 = vpack.c.bf16 %v1467_v48, %v1466_v13  ;;  %v1438_v61 = vadd.f32 1.0, %v2976_v35  ;;  %v1320_v21 = vmul.f32 %v1288_v1, %v3795_v37  ;;  %v1350_v11 = vadd.f32 %v1318_v30, %v3798_v31 }
 0x237   : > { %v2978_v0 = vpop.eup %2977  ;;  %v3851_v58 = vadd.f32 %v3711_v2, %v1150_v33  ;;  %v1261_v52 = vmul.f32 0.044715, %v3845_v45  ;;  %v1321_v24 = vmul.f32 %v1289_v49, %v3813_v14  ;;  %v1292_v46 = vmul.f32 %v1260_v41, %v3834_v26 }
 0x238   : > { %2798 = vmatprep.mubr.bf16.mxu1 %v1498_v18  ;;  %v2772_v59 = vpop.f32.mrf.mxu1  ;;  %v1441_v7 = vadd.f32 1.0, %v2978_v0  ;;  %v2980_v63 = vpop.eup %2979  ;;  %v1472_v54 = vmul.f32 %v1440_v50, %v3808_v6  ;;  %v1470_v27 = vmul.f32 %v1438_v61, %v3805_v40  ;;  %v1351_v55 = vadd.f32 %v1319_v4, %v3820_v60 }
 0x239   : > { %v3857_v22 = vadd.f32 %v2772_v59, %v3711_v2  ;;  %2799 = vmatmul.mubr.bf16.vlgmr.msra.gmra.mxu1 %v1499_v62  ;;  %v1259_v8 = vmul.f32 0.044715, %v3851_v58  ;;  %v1439_v5 = vadd.f32 1.0, %v2980_v63  ;;  %v1382_v29 = vmul.f32 0.7978846, %v1350_v11 }
 0x23a   : > { %v1163_v12 = vpop.f32.mrf.mxu1  ;;  %v1473_v51 = vmul.f32 %v1441_v7, %v3816_v23  ;;  %v1290_v43 = vmul.f32 %v1258_v44, %v3842_v17  ;;  %v1293_v3 = vmul.f32 %v1261_v52, %v3845_v45  ;;  %v1383_v40 = vmul.f32 0.7978846, %v1351_v55 }
 0x23b   : > { %v1471_v9 = vmul.f32 %v1439_v5, %v3823_v57  ;;  %v1264_v15 = vmul.f32 0.044715, %v3857_v22  ;;  %v3876_v28 = vadd.f32 %v3711_v2, %v1163_v12  ;;  %v1291_v6 = vmul.f32 %v1259_v8, %v3851_v58 }
 0x23c   : > { %v2773_v36 = vpop.f32.mrf.mxu1  ;;  %2989 = vtanh.f32 %v1382_v29  ;;  %v1501_v13 = vpack.c.bf16 %v1473_v51, %v1472_v54  ;;  %v3886_v47 = vmul.f32 %v1292_v46, %v3834_v26  ;;  %v1219_v25 = vmul.f32 0.5, %v3783_v32 }
 0x23d   : > { %v2982_v19 = vpop.eup %2981  ;;  %v1500_v20 = vpack.c.bf16 %v1471_v9, %v1470_v27  ;;  %v3880_v57 = vadd.f32 %v2773_v36, %v3711_v2  ;;  %v3890_v48 = vmul.f32 0.5, %v3798_v31  ;;  %2991 = vtanh.f32 %v1383_v40 }
 0x23e   : > { %v1166_v23 = vpop.f32.mrf.mxu1  ;;  %v1442_v56 = vadd.f32 1.0, %v2982_v19  ;;  %v1322_v35 = vmul.f32 %v1290_v43, %v3842_v17  ;;  %v1296_v1 = vmul.f32 %v1264_v15, %v3857_v22  ;;  %v1262_v16 = vmul.f32 0.044715, %v3876_v28 }
 0x23f   : > { %v3883_v39 = vadd.f32 %v3711_v2, %v1166_v23  ;;  %2802 = vmatprep.mubr.bf16.mxu1 %v1500_v20  ;;  %v3896_v30 = vmul.f32 0.5, %v3820_v60  ;;  %v3899_v49 = vmul.f32 %v1293_v3, %v3845_v45  ;;  %v1352_v31 = vadd.f32 %v1320_v21, %v3795_v37 }
 0x240   : > { %v2776_v42 = vpop.f32.mrf.mxu1  ;;  %v2984_v34 = vpop.eup %2983  ;;  %v1353_v18 = vadd.f32 %v1321_v24, %v3813_v14  ;;  %v1323_v41 = vmul.f32 %v1291_v6, %v3851_v58  ;;  %v1265_v62 = vmul.f32 0.044715, %v3880_v57  ;;  %v1474_v4 = vmul.f32 %v1442_v56, %v3837_v53 }
 0x241   : > { %2803 = vmatmul.mubr.bf16.gmra.mxu1 %v1501_v13  ;;  %v1443_v32 = vadd.f32 1.0, %v2984_v34  ;;  %v2986_v0 = vpop.eup %2985  ;;  %v1263_v50 = vmul.f32 0.044715, %v3883_v39  ;;  %v1384_v7 = vmul.f32 0.7978846, %v1352_v31  ;;  %v3908_v52 = vmul.f32 %v1296_v1, %v3857_v22 }
 0x242   : > { %v1179_v33 = vpop.f32.mrf.mxu1  ;;  %v1444_v61 = vadd.f32 1.0, %v2986_v0  ;;  %v1385_v63 = vmul.f32 0.7978846, %v1353_v18  ;;  %v2988_v44 = vpop.eup %2987  ;;  %v1294_v21 = vmul.f32 %v1262_v16, %v3876_v28  ;;  %v3912_v8 = vadd.f32 %v2776_v42, %v3711_v2 }
 0x243   : > { %v1475_v59 = vmul.f32 %v1443_v32, %v1219_v25  ;;  %v3915_v12 = vmul.f32 0.5, %v3795_v37  ;;  %v3918_v5 = vadd.f32 %v3711_v2, %v1179_v33  ;;  %v1445_v24 = vadd.f32 1.0, %v2988_v44 }
 0x244   : > { %v2777_v60 = vpop.f32.mrf.mxu1  ;;  %2993 = vtanh.f32 %v1384_v7  ;;  %v1297_v46 = vmul.f32 %v1265_v62, %v3880_v57  ;;  %v1295_v54 = vmul.f32 %v1263_v50, %v3883_v39  ;;  %v1476_v27 = vmul.f32 %v1444_v61, %v3829_v10 }
 0x245   : > { %v1502_v11 = vpack.c.bf16 %v1475_v59, %v1474_v4  ;;  %v3923_v51 = vadd.f32 %v2777_v60, %v3711_v2  ;;  %v1477_v9 = vmul.f32 %v1445_v24, %v3860_v38  ;;  %2995 = vtanh.f32 %v1385_v63 }
 0x246   : > { %v1182_v53 = vpop.f32.mrf.mxu1  ;;  %v1354_v55 = vadd.f32 %v1322_v35, %v3842_v17  ;;  %v1326_v29 = vmul.f32 %v1294_v21, %v3876_v28  ;;  %v1268_v19 = vmul.f32 0.044715, %v3912_v8  ;;  %v3934_v43 = vmul.f32 0.5, %v3813_v14 }
 0x247   : > { %v3926_v36 = vadd.f32 %v3711_v2, %v1182_v53  ;;  %2806 = vmatprep.mubr.bf16.mxu1 %v1502_v11  ;;  %v3937_v3 = vmul.f32 0.5, %v3842_v17  ;;  %v1266_v15 = vmul.f32 0.044715, %v3918_v5  ;;  %v1503_v6 = vpack.c.bf16 %v1477_v9, %v1476_v27 }
 0x248   : > { %v2780_v37 = vpop.f32.mrf.mxu1  ;;  %v1355_v10 = vadd.f32 %v1323_v41, %v3851_v58  ;;  %v1386_v38 = vmul.f32 0.7978846, %v1354_v55  ;;  %v1329_v40 = vmul.f32 %v1297_v46, %v3880_v57  ;;  %v1269_v13 = vmul.f32 0.044715, %v3923_v51 }
 0x249   : > { %v2990_v20 = vpop.eup %2989  ;;  %v1267_v56 = vmul.f32 0.044715, %v3926_v36  ;;  %v1327_v17 = vmul.f32 %v1295_v54, %v3883_v39  ;;  %2807 = vmatmul.mubr.bf16.gmra.mxu1 %v1503_v6  ;;  %v1300_v1 = vmul.f32 %v1268_v19, %v3912_v8  ;;  %v3950_v16 = vadd.f32 %v2780_v37, %v3711_v2 }
 0x24a   : > { %v1195_v23 = vpop.f32.mrf.mxu1  ;;  %v1446_v25 = vadd.f32 1.0, %v2990_v20  ;;  %v1387_v34 = vmul.f32 0.7978846, %v1355_v10  ;;  %2997 = vtanh.f32 %v1386_v38  ;;  %v2992_v35 = vpop.eup %2991  ;;  %v1298_v31 = vmul.f32 %v1266_v15, %v3918_v5 }
 0x24b   : > { %v3945_v14 = vadd.f32 %v3711_v2, %v1195_v23  ;;  %v1447_v0 = vadd.f32 1.0, %v2992_v35  ;;  %v1356_v41 = vadd.f32 %v3886_v47, %v3834_v26  ;;  %v1301_v62 = vmul.f32 %v1269_v13, %v3923_v51 }
 0x24c   : > { %v2781_v42 = vpop.f32.mrf.mxu1  ;;  %2999 = vtanh.f32 %v1387_v34  ;;  %v1299_v50 = vmul.f32 %v1267_v56, %v3926_v36  ;;  %v1478_v59 = vmul.f32 %v1446_v25, %v3890_v48  ;;  %v1357_v7 = vadd.f32 %v3899_v49, %v3845_v45 }
 0x24d   : > { %v1270_v33 = vmul.f32 0.044715, %v3945_v14  ;;  %v3954_v32 = vadd.f32 %v2781_v42, %v3711_v2  ;;  %v1479_v61 = vmul.f32 %v1447_v0, %v3896_v30  ;;  %v1388_v63 = vmul.f32 0.7978846, %v1356_v41 }
 0x24e   : > { %v1198_v18 = vpop.f32.mrf.mxu1  ;;  %v1332_v44 = vmul.f32 %v1300_v1, %v3912_v8  ;;  %v1272_v47 = vmul.f32 0.044715, %v3950_v16  ;;  %v1389_v24 = vmul.f32 0.7978846, %v1357_v7  ;;  %v1330_v30 = vmul.f32 %v1298_v31, %v3918_v5 }
 0x24f   : > { %v1273_v4 = vmul.f32 0.044715, %v3954_v32  ;;  %v3963_v60 = vadd.f32 %v3711_v2, %v1198_v18  ;;  %v1302_v21 = vmul.f32 %v1270_v33, %v3945_v14  ;;  %v1504_v11 = vpack.c.bf16 %v1479_v61, %v1478_v59 }
 0x250   : > { %3001 = vtanh.f32 %v1388_v63  ;;  %v1358_v2 = vadd.f32 %v1326_v29, %v3876_v28  ;;  %v1333_v46 = vmul.f32 %v1301_v62, %v3923_v51  ;;  %v1359_v54 = vadd.f32 %v1327_v17, %v3883_v39 }
 0x251   : > { %v1271_v53 = vmul.f32 0.044715, %v3963_v60  ;;  %v2994_v48 = vpop.eup %2993  ;;  %v1305_v49 = vmul.f32 %v1273_v4, %v3954_v32  ;;  %v1331_v37 = vmul.f32 %v1299_v50, %v3926_v36  ;;  %2810 = vmatprep.mubr.bf16.mxu1 %v1504_v11  ;;  %3003 = vtanh.f32 %v1389_v24 }
 0x252   : > { %v1448_v27 = vadd.f32 1.0, %v2994_v48  ;;  %v1390_v9 = vmul.f32 0.7978846, %v1358_v2  ;;  %v2996_v55 = vpop.eup %2995  ;;  %v1391_v15 = vmul.f32 0.7978846, %v1359_v54  ;;  %v1360_v29 = vadd.f32 %v3908_v52, %v3857_v22 }
 0x253   : > { %v1303_v19 = vmul.f32 %v1271_v53, %v3963_v60  ;;  %v1361_v6 = vadd.f32 %v1329_v40, %v3880_v57  ;;  %v1304_v23 = vmul.f32 %v1272_v47, %v3950_v16  ;;  %v1334_v10 = vmul.f32 %v1302_v21, %v3945_v14 }
 0x254   : > { %v1449_v38 = vadd.f32 1.0, %v2996_v55  ;;  %3005 = vtanh.f32 %v1390_v9  ;;  %v1337_v20 = vmul.f32 %v1305_v49, %v3954_v32  ;;  %v1392_v13 = vmul.f32 0.7978846, %v1360_v29 }
 0x255   : > { %3007 = vtanh.f32 %v1391_v15  ;;  %v1393_v56 = vmul.f32 0.7978846, %v1361_v6  ;;  %v1480_v17 = vmul.f32 %v1448_v27, %v3915_v12  ;;  %v1362_v25 = vadd.f32 %v1330_v30, %v3918_v5 }
 0x256   : > { %v1481_v42 = vmul.f32 %v1449_v38, %v3934_v43  ;;  %v1363_v52 = vadd.f32 %v1331_v37, %v3926_v36  ;;  %v1335_v34 = vmul.f32 %v1303_v19, %v3963_v60  ;;  %3009 = vtanh.f32 %v1392_v13 }
 0x257   : > { %v2998_v40 = vpop.eup %2997  ;;  %v1364_v35 = vadd.f32 %v1332_v44, %v3912_v8  ;;  %v1365_v1 = vadd.f32 %v1333_v46, %v3923_v51  ;;  %3011 = vtanh.f32 %v1393_v56  ;;  %v1394_v18 = vmul.f32 0.7978846, %v1362_v25 }
 0x258   : > { %v1505_v33 = vpack.c.bf16 %v1481_v42, %v1480_v17  ;;  %v1450_v31 = vadd.f32 1.0, %v2998_v40  ;;  %v1395_v12 = vmul.f32 0.7978846, %v1363_v52  ;;  %v1366_v62 = vadd.f32 %v1334_v10, %v3945_v14 }
 0x259   : > { %v3000_v0 = vpop.eup %2999  ;;  %v1396_v41 = vmul.f32 0.7978846, %v1364_v35  ;;  %v1397_v43 = vmul.f32 0.7978846, %v1365_v1  ;;  %v1336_v50 = vmul.f32 %v1304_v23, %v3950_v16  ;;  %v1227_v4 = vmul.f32 0.5, %v3851_v58 }
 0x25a   : > { %2811 = vmatmul.mubr.bf16.gmra.mxu1 %v1505_v33  ;;  %v1451_v59 = vadd.f32 1.0, %v3000_v0  ;;  %3013 = vtanh.f32 %v1394_v18  ;;  %v1367_v61 = vadd.f32 %v1335_v34, %v3963_v60  ;;  %v1398_v7 = vmul.f32 0.7978846, %v1366_v62 }
 0x25b   : > { %3015 = vtanh.f32 %v1395_v12  ;;  %v1482_v63 = vmul.f32 %v1450_v31, %v3937_v3  ;;  %v1369_v53 = vadd.f32 %v1337_v20, %v3954_v32  ;;  %v1368_v58 = vadd.f32 %v1336_v50, %v3950_v16 }
 0x25c   : > { %v1483_v44 = vmul.f32 %v1451_v59, %v1227_v4  ;;  %3017 = vtanh.f32 %v1396_v41  ;;  %v1399_v21 = vmul.f32 0.7978846, %v1367_v61  ;;  %v1228_v48 = vmul.f32 0.5, %v3834_v26 }
 0x25d   : > { %v3002_v47 = vpop.eup %3001  ;;  %3019 = vtanh.f32 %v1397_v43  ;;  %v1229_v30 = vmul.f32 0.5, %v3845_v45  ;;  %v1401_v46 = vmul.f32 0.7978846, %v1369_v53  ;;  %v1400_v55 = vmul.f32 0.7978846, %v1368_v58 }
 0x25e   : > { %v1506_v11 = vpack.c.bf16 %v1483_v44, %v1482_v63  ;;  %v1452_v24 = vadd.f32 1.0, %v3002_v47  ;;  %3021 = vtanh.f32 %v1398_v7  ;;  %v3004_v2 = vpop.eup %3003  ;;  %v1230_v19 = vmul.f32 0.5, %v3876_v28 }
 0x25f   : > { %3023 = vtanh.f32 %v1399_v21  ;;  %v1453_v3 = vadd.f32 1.0, %v3004_v2  ;;  %v1231_v15 = vmul.f32 0.5, %v3883_v39  ;;  %v1233_v45 = vmul.f32 0.5, %v3880_v57 }
 0x260   : > { %2814 = vmatprep.mubr.bf16.mxu1 %v1506_v11  ;;  %v1484_v37 = vmul.f32 %v1452_v24, %v1228_v48  ;;  %3025 = vtanh.f32 %v1401_v46  ;;  %v1232_v28 = vmul.f32 0.5, %v3857_v22  ;;  %v1234_v40 = vmul.f32 0.5, %v3918_v5 }
 0x261   : > { %v3006_v49 = vpop.eup %3005  ;;  %v1485_v27 = vmul.f32 %v1453_v3, %v1229_v30  ;;  %3027 = vtanh.f32 %v1400_v55  ;;  %v1235_v34 = vmul.f32 0.5, %v3926_v36  ;;  %v1239_v22 = vmul.f32 0.5, %v3963_v60 }
 0x262   : > { %v3008_v54 = vpop.eup %3007  ;;  %v1454_v9 = vadd.f32 1.0, %v3006_v49  ;;  %v1237_v4 = vmul.f32 0.5, %v3923_v51  ;;  %v1238_v36 = vmul.f32 0.5, %v3945_v14  ;;  %v1236_v61 = vmul.f32 0.5, %v3912_v8  ;;  %v2834_v8 = vpop.f32.mrf.mxu0 }
 0x263   : > { %v1455_v29 = vadd.f32 1.0, %v3008_v54  ;;  %v3010_v6 = vpop.eup %3009  ;;  %v1507_v23 = vpack.c.bf16 %v1485_v27, %v1484_v37  ;;  %v1241_v24 = vmul.f32 0.5, %v3954_v32  ;;  %v1240_v51 = vmul.f32 0.5, %v3950_v16  ;;  %v4025_v16 = vld [vmem:[%s4192_s9] ss:$0 sm:$0xff] }
 0x264   : > { %v3012_v10 = vpop.eup %3011  ;;  %v1486_v26 = vmul.f32 %v1454_v9, %v1230_v19  ;;  %v1456_v20 = vadd.f32 1.0, %v3010_v6  ;;  %v1990_v30 = vpop.f32.mrf.mxu0 }
 0x265   : > { %v1487_v38 = vmul.f32 %v1455_v29, %v1231_v15  ;;  %2815 = vmatmul.mubr.bf16.gmra.mxu1 %v1507_v23  ;;  %v1457_v13 = vadd.f32 1.0, %v3012_v10  ;;  %v4033_v23 = vld [vmem:[%s4186_s3] ss:$0 sm:$0xff] }
 0x266   : > { %v1488_v33 = vmul.f32 %v1456_v20, %v1232_v28  ;;  %v2835_v3 = vpop.f32.mrf.mxu0  ;;  %v4038_v10 = vld [vmem:[%s4193_s10] ss:$0 sm:$0xff]  ;;  %v1999_v20 = vadd.f32 %v2834_v8, %v4033_v23 }
 0x267   : > { %v3014_v56 = vpop.eup %3013  ;;  %v1508_v17 = vpack.c.bf16 %v1487_v38, %v1486_v26  ;;  %v1489_v25 = vmul.f32 %v1457_v13, %v1233_v45  ;;  %v2002_v28 = vadd.f32 %v2835_v3, %v4033_v23 }
 0x268   : > { %v3016_v42 = vpop.eup %3015  ;;  %v1458_v39 = vadd.f32 1.0, %v3014_v56  ;;  %v1993_v46 = vpop.f32.mrf.mxu0 }
 0x269   : > { %v3018_v52 = vpop.eup %3017  ;;  %2818 = vmatprep.mubr.bf16.mxu1 %v1508_v17  ;;  %v1459_v35 = vadd.f32 1.0, %v3016_v42  ;;  %v1509_v12 = vpack.c.bf16 %v1489_v25, %v1488_v33 }
 0x26a   : > { %v3020_v1 = vpop.eup %3019  ;;  %v1490_v31 = vmul.f32 %v1458_v39, %v1234_v40  ;;  %v1460_v5 = vadd.f32 1.0, %v3018_v52  ;;  %v2838_v49 = vpop.f32.mrf.mxu0  ;;  %v1991_v40 = vadd.f32 %v4033_v23, %v1990_v30 }
 0x26b   : > { %v3022_v57 = vpop.eup %3021  ;;  %v1491_v18 = vmul.f32 %v1459_v35, %v1235_v34  ;;  %v1461_v41 = vadd.f32 1.0, %v3020_v1  ;;  %v1994_v34 = vadd.f32 %v4033_v23, %v1993_v46 }
 0x26c   : > { %v3024_v0 = vpop.eup %3023  ;;  %v1462_v62 = vadd.f32 1.0, %v3022_v57  ;;  %v1492_v47 = vmul.f32 %v1460_v5, %v1236_v61  ;;  %v2006_v54 = vpop.f32.mrf.mxu0 }
 0x26d   : > { %v1510_v43 = vpack.c.bf16 %v1491_v18, %v1490_v31  ;;  %v1463_v50 = vadd.f32 1.0, %v3024_v0  ;;  %2819 = vmatmul.mubr.bf16.gmra.mxu1 %v1509_v12  ;;  %v1493_v7 = vmul.f32 %v1461_v41, %v1237_v4  ;;  %v3026_v63 = vpop.eup %3025 }
 0x26e   : > { %v1494_v44 = vmul.f32 %v1462_v62, %v1238_v36  ;;  %v3028_v21 = vpop.eup %3027  ;;  %v1465_v60 = vadd.f32 1.0, %v3026_v63  ;;  %v2839_v37 = vpop.f32.mrf.mxu0 }
 0x26f   : > { %2822 = vmatprep.mubr.bf16.mxu1 %v1510_v43  ;;  %v1495_v59 = vmul.f32 %v1463_v50, %v1239_v22  ;;  %v1511_v11 = vpack.c.bf16 %v1493_v7, %v1492_v47  ;;  %v1464_v58 = vadd.f32 1.0, %v3028_v21  ;;  %v2015_v50 = vadd.f32 %v2838_v49, %v4033_v23 }
 0x270   : > { %v1497_v2 = vmul.f32 %v1465_v60, %v1241_v24  ;;  %v2009_v27 = vpop.f32.mrf.mxu0  ;;  %v2018_v7 = vadd.f32 %v2839_v37, %v4033_v23  ;;  %v2007_v21 = vadd.f32 %v4033_v23, %v2006_v54 }
 0x271   : > { %v1512_v53 = vpack.c.bf16 %v1495_v59, %v1494_v44  ;;  %v1496_v14 = vmul.f32 %v1464_v58, %v1240_v51 }
 0x272   : > { %v4014_v9 = vpop.f32.mrf.mxu0 }
 0x273   : > { %v1513_v48 = vpack.c.bf16 %v1497_v2, %v1496_v14  ;;  %v2031_v37 = vadd.f32 %v4014_v9, %v4033_v23 }
 0x274   : > { %v4016_v55 = vpop.f32.mrf.mxu0 }
 0x275   : > { %2823 = vmatmul.mubr.bf16.gmra.mxu1 %v1511_v11  ;;  %v2010_v11 = vadd.f32 %v4033_v23, %v2009_v27  ;;  %v2023_v9 = vadd.f32 %v4033_v23, %v4016_v55 }
 0x276   : > { %2826 = vmatprep.mubr.bf16.mxu1 %v1512_v53  ;;  %v4018_v32 = vpop.f32.mrf.mxu0 }
 0x278   : > { %v4020_v19 = vpop.f32.mrf.mxu0 }
 0x27a   : > { %v4028_v6 = vpop.f32.mrf.mxu0 }
 0x27c   : > { %v4044_v17 = vpop.f32.mrf.mxu0 }
 0x27d   : > { %2827 = vmatmul.mubr.bf16.gmra.mxu1 %v1513_v48 }
 0x27e   : > { %v4054_v18 = vpop.f32.mrf.mxu0 }
 0x280   : > { %v4067_v59 = vpop.f32.mrf.mxu0 }
 0x282   : > { %v4077_v58 = vpop.f32.mrf.mxu0 }
 0x284   : > { %v4081_v46 = vpop.f32.mrf.mxu0 }
 0x2f9   : > { %v2800_v15 = vpop.f32.mrf.mxu1 }
 0x2fa   : > { %v1628_v29 = vadd.f32 %v2800_v15, %v4025_v16 }
 0x2fb   : > { %v1619_v26 = vpop.f32.mrf.mxu1 }
 0x2fc   : > { %v1620_v38 = vadd.f32 %v4025_v16, %v1619_v26  ;;  %v1755_v13 = vmul.f32 %v4038_v10, %v1628_v29  ;;  %v2851_v26 = vpop.f32.mrf.mxu0 }
 0x2fd   : > { %v2801_v45 = vpop.f32.mrf.mxu1 }
 0x2fe   : > { %v1631_v56 = vadd.f32 %v2801_v45, %v4025_v16  ;;  %v1753_v25 = vmul.f32 %v4038_v10, %v1620_v38  ;;  %v2119_v1 = vadd.f32 %v1999_v20, %v1755_v13  ;;  %v2034_v38 = vadd.f32 %v4018_v32, %v4033_v23 }
 0x2ff   : > { %v1622_v42 = vpop.f32.mrf.mxu1 }
 0x300   : > { %v1756_v39 = vmul.f32 %v4038_v10, %v1631_v56  ;;  %v1623_v52 = vadd.f32 %v4025_v16, %v1622_v42  ;;  %v2117_v12 = vadd.f32 %v1991_v40, %v1753_v25  ;;  %v2026_v42 = vadd.f32 %v4033_v23, %v4020_v19 }
 0x301   : > { %v2804_v35 = vpop.f32.mrf.mxu1 }
 0x302   : > { %v2120_v33 = vadd.f32 %v2002_v28, %v1756_v39  ;;  %v1754_v57 = vmul.f32 %v4038_v10, %v1623_v52  ;;  %v1644_v31 = vadd.f32 %v2804_v35, %v4025_v16  ;;  %v2057_v39 = vpop.f32.mrf.mxu0 }
 0x303   : > { %v1635_v0 = vpop.f32.mrf.mxu1 }
 0x304   : > { %v2588_v41 = vpack.c.bf16 %v2120_v33, %v2119_v1  ;;  %v2118_v43 = vadd.f32 %v1994_v34, %v1754_v57  ;;  %v1636_v22 = vadd.f32 %v4025_v16, %v1635_v0  ;;  %v1759_v5 = vmul.f32 %v4038_v10, %v1644_v31  ;;  %v2854_v35 = vpop.f32.mrf.mxu0 }
 0x305   : > { %v2805_v62 = vpop.f32.mrf.mxu1  ;;  %v2047_v0 = vadd.f32 %v4028_v6, %v4033_v23  ;;  %v2039_v6 = vadd.f32 %v4033_v23, %v4044_v17 }
 0x306   : > { %2675 = vst [vmem:[%s4060_s28 + $0x8] sm:$0xff] %v2588_v41   ;;  %v2583_v4 = vpack.c.bf16 %v2118_v43, %v2117_v12  ;;  %v1647_v36 = vadd.f32 %v2805_v62, %v4025_v16  ;;  %v1757_v63 = vmul.f32 %v4038_v10, %v1636_v22  ;;  %v2123_v53 = vadd.f32 %v2015_v50, %v1759_v5  ;;  %v4102_v55 = vpop.f32.mrf.mxu0 }
 0x307   : > { %v1638_v61 = vpop.f32.mrf.mxu1  ;;  %v2050_v62 = vadd.f32 %v4054_v18, %v4033_v23 }
 0x308   : > { %2584 = vst [vmem:[%s4060_s28] sm:$0xff] %v2583_v4   ;;  %v1760_v44 = vmul.f32 %v4038_v10, %v1647_v36  ;;  %v1639_v47 = vadd.f32 %v4025_v16, %v1638_v61  ;;  %v2121_v51 = vadd.f32 %v2007_v21, %v1757_v63  ;;  %v2855_v22 = vpop.f32.mrf.mxu0  ;;  %v2042_v61 = vadd.f32 %v4033_v23, %v4067_v59 }
 0x309   : > { %v2808_v48 = vpop.f32.mrf.mxu1  ;;  %v2063_v59 = vadd.f32 %v4077_v58, %v4033_v23  ;;  %v2058_v58 = vadd.f32 %v4033_v23, %v2057_v39 }
 0x30a   : > { %v2124_v60 = vadd.f32 %v2018_v7, %v1760_v44  ;;  %v1758_v24 = vmul.f32 %v4038_v10, %v1639_v47  ;;  %v1660_v8 = vadd.f32 %v2808_v48, %v4025_v16  ;;  %v2073_v44 = vpop.f32.mrf.mxu0 }
 0x30b   : > { %v1651_v3 = vpop.f32.mrf.mxu1 }
 0x30c   : > { %v2598_v2 = vpack.c.bf16 %v2124_v60, %v2123_v53  ;;  %v2122_v14 = vadd.f32 %v2010_v11, %v1758_v24  ;;  %v1652_v49 = vadd.f32 %v4025_v16, %v1651_v3  ;;  %v1763_v27 = vmul.f32 %v4038_v10, %v1660_v8 }
 0x30d   : > { %v2809_v54 = vpop.f32.mrf.mxu1  ;;  %v2066_v3 = vadd.f32 %v2851_v26, %v4033_v23 }
 0x30e   : > { %2677 = vst [vmem:[%s4060_s28 + $0x18] sm:$0xff] %v2598_v2   ;;  %v2593_v30 = vpack.c.bf16 %v2122_v14, %v2121_v51  ;;  %v1663_v15 = vadd.f32 %v2809_v54, %v4025_v16  ;;  %v1761_v45 = vmul.f32 %v4038_v10, %v1652_v49  ;;  %v2127_v56 = vadd.f32 %v2031_v37, %v1763_v27  ;;  %v2858_v51 = vpop.f32.mrf.mxu0 }
 0x30f   : > { %v1654_v29 = vpop.f32.mrf.mxu1  ;;  %v2055_v27 = vadd.f32 %v4033_v23, %v4081_v46  ;;  %v2079_v46 = vadd.f32 %v2854_v35, %v4033_v23  ;;  %v2071_v35 = vadd.f32 %v4033_v23, %v4102_v55  ;;  %v2095_v55 = vadd.f32 %v2858_v51, %v4033_v23 }
 0x310   : > { %2676 = vst [vmem:[%s4060_s28 + $0x10] sm:$0xff] %v2593_v30   ;;  %v1764_v20 = vmul.f32 %v4038_v10, %v1663_v15  ;;  %v1655_v13 = vadd.f32 %v4025_v16, %v1654_v29  ;;  %v2125_v52 = vadd.f32 %v2023_v9, %v1761_v45  ;;  %v2086_v30 = vpop.f32.mrf.mxu0 }
 0x312   : > { %v2128_v28 = vadd.f32 %v2034_v38, %v1764_v20  ;;  %v1762_v25 = vmul.f32 %v4038_v10, %v1655_v13  ;;  %v2859_v13 = vpop.f32.mrf.mxu0 }
 0x314   : > { %v2608_v32 = vpack.c.bf16 %v2128_v28, %v2127_v56  ;;  %v2126_v40 = vadd.f32 %v2026_v42, %v1762_v25 }
 0x316   : > { %2679 = vst [vmem:[%s4060_s28 + $0x28] sm:$0xff] %v2608_v32   ;;  %v2603_v34 = vpack.c.bf16 %v2126_v40, %v2125_v52 }
 0x318   : > { %2678 = vst [vmem:[%s4060_s28 + $0x20] sm:$0xff] %v2603_v34   ;;  %v2089_v34 = vpop.f32.mrf.mxu0 }
 0x319   : > { %v2090_v51 = vadd.f32 %v4033_v23, %v2089_v34 }
 0x31a   : > { %v2812_v1 = vpop.f32.mrf.mxu1 }
 0x31b   : > { %v1676_v33 = vadd.f32 %v2812_v1, %v4025_v16  ;;  %v2082_v1 = vadd.f32 %v2855_v22, %v4033_v23 }
 0x31c   : > { %v1667_v57 = vpop.f32.mrf.mxu1 }
 0x31d   : > { %v1668_v31 = vadd.f32 %v4025_v16, %v1667_v57  ;;  %v1767_v12 = vmul.f32 %v4038_v10, %v1676_v33 }
 0x31e   : > { %v2813_v19 = vpop.f32.mrf.mxu1 }
 0x31f   : > { %v1679_v41 = vadd.f32 %v2813_v19, %v4025_v16  ;;  %v1765_v50 = vmul.f32 %v4038_v10, %v1668_v31  ;;  %v2131_v36 = vadd.f32 %v2047_v0, %v1767_v12  ;;  %v2074_v19 = vadd.f32 %v4033_v23, %v2073_v44 }
 0x320   : > { %v1670_v43 = vpop.f32.mrf.mxu1 }
 0x321   : > { %v1768_v4 = vmul.f32 %v4038_v10, %v1679_v41  ;;  %v1671_v5 = vadd.f32 %v4025_v16, %v1670_v43  ;;  %v2129_v47 = vadd.f32 %v2039_v6, %v1765_v50  ;;  %v2862_v50 = vpop.f32.mrf.mxu0 }
 0x323   : > { %v2132_v7 = vadd.f32 %v2050_v62, %v1768_v4  ;;  %v1766_v63 = vmul.f32 %v4038_v10, %v1671_v5 }
 0x325   : > { %v2618_v18 = vpack.c.bf16 %v2132_v7, %v2131_v36  ;;  %v2130_v21 = vadd.f32 %v2042_v61, %v1766_v63  ;;  %v2816_v53 = vpop.f32.mrf.mxu1 }
 0x326   : > { %v1692_v60 = vadd.f32 %v2816_v53, %v4025_v16 }
 0x327   : > { %2681 = vst [vmem:[%s4060_s28 + $0x38] sm:$0xff] %v2618_v18   ;;  %v2613_v11 = vpack.c.bf16 %v2130_v21, %v2129_v47  ;;  %v1683_v24 = vpop.f32.mrf.mxu1  ;;  %v2102_v18 = vpop.f32.mrf.mxu0  ;;  %v2098_v21 = vadd.f32 %v2859_v13, %v4033_v23 }
 0x328   : > { %v1684_v17 = vadd.f32 %v4025_v16, %v1683_v24  ;;  %v1771_v14 = vmul.f32 %v4038_v10, %v1692_v60  ;;  %v2087_v24 = vadd.f32 %v4033_v23, %v2086_v30  ;;  %v2111_v30 = vadd.f32 %v2862_v50, %v4033_v23 }
 0x329   : > { %2680 = vst [vmem:[%s4060_s28 + $0x30] sm:$0xff] %v2613_v11   ;;  %v2817_v2 = vpop.f32.mrf.mxu1 }
 0x32a   : > { %v1695_v48 = vadd.f32 %v2817_v2, %v4025_v16  ;;  %v1769_v49 = vmul.f32 %v4038_v10, %v1684_v17  ;;  %v2135_v29 = vadd.f32 %v2063_v59, %v1771_v14 }
 0x32b   : > { %v1686_v8 = vpop.f32.mrf.mxu1 }
 0x32c   : > { %v1772_v54 = vmul.f32 %v4038_v10, %v1695_v48  ;;  %v1687_v37 = vadd.f32 %v4025_v16, %v1686_v8  ;;  %v2133_v9 = vadd.f32 %v2055_v27, %v1769_v49  ;;  %v2863_v8 = vpop.f32.mrf.mxu0 }
 0x32d   : > { %v2820_v15 = vpop.f32.mrf.mxu1 }
 0x32e   : > { %v2136_v38 = vadd.f32 %v2066_v3, %v1772_v54  ;;  %v1770_v45 = vmul.f32 %v4038_v10, %v1687_v37  ;;  %v1708_v26 = vadd.f32 %v2820_v15, %v4025_v16 }
 0x32f   : > { %v1699_v20 = vpop.f32.mrf.mxu1 }
 0x330   : > { %v2628_v56 = vpack.c.bf16 %v2136_v38, %v2135_v29  ;;  %v2134_v42 = vadd.f32 %v2058_v58, %v1770_v45  ;;  %v1700_v28 = vadd.f32 %v4025_v16, %v1699_v20  ;;  %v1775_v52 = vmul.f32 %v4038_v10, %v1708_v26  ;;  %v2105_v45 = vpop.f32.mrf.mxu0 }
 0x331   : > { %v2821_v25 = vpop.f32.mrf.mxu1  ;;  %v2114_v20 = vadd.f32 %v2863_v8, %v4033_v23 }
 0x332   : > { %2683 = vst [vmem:[%s4060_s28 + $0x48] sm:$0xff] %v2628_v56   ;;  %v2623_v39 = vpack.c.bf16 %v2134_v42, %v2133_v9  ;;  %v1711_v32 = vadd.f32 %v2821_v25, %v4025_v16  ;;  %v1773_v33 = vmul.f32 %v4038_v10, %v1700_v28  ;;  %v2139_v12 = vadd.f32 %v2079_v46, %v1775_v52 }
 0x333   : > { %v1702_v40 = vpop.f32.mrf.mxu1  ;;  %v2103_v42 = vadd.f32 %v4033_v23, %v2102_v18  ;;  %v2106_v25 = vadd.f32 %v4033_v23, %v2105_v45 }
 0x334   : > { %2682 = vst [vmem:[%s4060_s28 + $0x40] sm:$0xff] %v2623_v39   ;;  %v1776_v57 = vmul.f32 %v4038_v10, %v1711_v32  ;;  %v1703_v31 = vadd.f32 %v4025_v16, %v1702_v40  ;;  %v2137_v4 = vadd.f32 %v2071_v35, %v1773_v33 }
 0x335   : > { %v2824_v0 = vpop.f32.mrf.mxu1 }
 0x336   : > { %v2140_v41 = vadd.f32 %v2082_v1, %v1776_v57  ;;  %v1774_v43 = vmul.f32 %v4038_v10, %v1703_v31  ;;  %v1724_v22 = vadd.f32 %v2824_v0, %v4025_v16 }
 0x337   : > { %v1715_v62 = vpop.f32.mrf.mxu1 }
 0x338   : > { %v2638_v5 = vpack.c.bf16 %v2140_v41, %v2139_v12  ;;  %v2138_v6 = vadd.f32 %v2074_v19, %v1774_v43  ;;  %v1716_v36 = vadd.f32 %v4025_v16, %v1715_v62  ;;  %v1779_v63 = vmul.f32 %v4038_v10, %v1724_v22 }
 0x339   : > { %v2825_v61 = vpop.f32.mrf.mxu1 }
 0x33a   : > { %2685 = vst [vmem:[%s4060_s28 + $0x58] sm:$0xff] %v2638_v5   ;;  %v2633_v7 = vpack.c.bf16 %v2138_v6, %v2137_v4  ;;  %v1727_v44 = vadd.f32 %v2825_v61, %v4025_v16  ;;  %v1777_v53 = vmul.f32 %v4038_v10, %v1716_v36  ;;  %v2143_v2 = vadd.f32 %v2095_v55, %v1779_v63 }
 0x33b   : > { %v1718_v47 = vpop.f32.mrf.mxu1 }
 0x33c   : > { %2684 = vst [vmem:[%s4060_s28 + $0x50] sm:$0xff] %v2633_v7   ;;  %v1780_v11 = vmul.f32 %v4038_v10, %v1727_v44  ;;  %v1719_v60 = vadd.f32 %v4025_v16, %v1718_v47  ;;  %v2141_v49 = vadd.f32 %v2087_v24, %v1777_v53 }
 0x33d   : > { %v2828_v17 = vpop.f32.mrf.mxu1 }
 0x33e   : > { %v2144_v59 = vadd.f32 %v2098_v21, %v1780_v11  ;;  %v1778_v14 = vmul.f32 %v4038_v10, %v1719_v60  ;;  %v1740_v48 = vadd.f32 %v2828_v17, %v4025_v16 }
 0x33f   : > { %v1731_v3 = vpop.f32.mrf.mxu1 }
 0x340   : > { %v2648_v54 = vpack.c.bf16 %v2144_v59, %v2143_v2  ;;  %v2142_v37 = vadd.f32 %v2090_v51, %v1778_v14  ;;  %v1732_v27 = vadd.f32 %v4025_v16, %v1731_v3  ;;  %v1783_v29 = vmul.f32 %v4038_v10, %v1740_v48 }
 0x341   : > { %v2829_v58 = vpop.f32.mrf.mxu1 }
 0x342   : > { %2687 = vst [vmem:[%s4060_s28 + $0x68] sm:$0xff] %v2648_v54   ;;  %v2643_v15 = vpack.c.bf16 %v2142_v37, %v2141_v49  ;;  %v1743_v38 = vadd.f32 %v2829_v58, %v4025_v16  ;;  %v1781_v13 = vmul.f32 %v4038_v10, %v1732_v27  ;;  %v2147_v28 = vadd.f32 %v2111_v30, %v1783_v29 }
 0x343   : > { %v1734_v26 = vpop.f32.mrf.mxu1 }
 0x344   : > { %2686 = vst [vmem:[%s4060_s28 + $0x60] sm:$0xff] %v2643_v15   ;;  %v1784_v9 = vmul.f32 %v4038_v10, %v1743_v38  ;;  %v1735_v56 = vadd.f32 %v4025_v16, %v1734_v26  ;;  %v2145_v52 = vadd.f32 %v2103_v42, %v1781_v13 }
 0x346   : > { %v2148_v46 = vadd.f32 %v2114_v20, %v1784_v9  ;;  %v1782_v39 = vmul.f32 %v4038_v10, %v1735_v56 }
 0x348   : > { %v2658_v32 = vpack.c.bf16 %v2148_v46, %v2147_v28  ;;  %v2146_v40 = vadd.f32 %v2106_v25, %v1782_v39 }
 0x34a   : > { %2689 = vst [vmem:[%s4060_s28 + $0x78] sm:$0xff] %v2658_v32   ;;  %v2653_v34 = vpack.c.bf16 %v2146_v40, %v2145_v52 }
 0x34c   : > { %2688 = vst [vmem:[%s4060_s28 + $0x70] sm:$0xff] %v2653_v34  }
 0x34d PF: > { %s21_s17 = sadd.s32 1, %s3035_s17  }
 0x34e   : > { %p18_p4 = scmp.ge.s32.totalorder %s21_s17, 4  }
 0x350   :  { %20 = sbr.rel (!%p18_p4) target bundleno = 1 (0x1), region = 97 }

// kernel: convnext_encoder_forward.5
= control target key start
LH: loop header
LB: loop body
LE: loop exit
PB: predicated region body
PF: predicated region fallthrough
CT: control target
= control target key end

     0   :  { %s1402_s17 = smov 0   ;;  %s1577_s0 = inlined_call_operand.vmem [shape: bf16[128,8], index: 0, kind: input, shape index: {}]   ;;  %s1578_s1 = inlined_call_operand.vmem [shape: bf16[128,8], index: 1, kind: input, shape index: {}]   ;;  %s1579_s2 = inlined_call_operand.vmem [shape: bf16[8,128], index: 2, kind: input, shape index: {}]   ;;  %s1580_s3 = inlined_call_operand.vmem [shape: f32[1,128], index: 3, kind: input, shape index: {}]   ;;  %s1581_s4 = inlined_call_operand.vmem [shape: f32[1,8], index: 4, kind: input, shape index: {}]   ;;  %s1582_s5 = inlined_call_operand.vmem [shape: f32[1,8], index: 5, kind: input, shape index: {}]   ;;  %s1583_s6 = inlined_call_operand.vmem [shape: bf16[8,128], index: 6, kind: input, shape index: {}]   ;;  %s1584_s7 = inlined_call_operand.vmem [shape: f32[1,128], index: 7, kind: input, shape index: {}]   ;;  %s1585_s8 = inlined_call_operand.vmem [shape: bf16[128,128], index: 8, kind: input, shape index: {}]   ;;  %s1586_s9 = inlined_call_operand.vmem [shape: f32[1,128], index: 9, kind: input, shape index: {}]   ;;  %s1587_s10 = inlined_call_operand.vmem [shape: f32[1,128], index: 10, kind: input, shape index: {}]   ;;  %s1588_s11 = inlined_call_operand.vmem [shape: bf16[128,128], index: 11, kind: output, shape index: {}]  }
   0x1 LB: > { %s1117_s18 = sadd.s32 4294967295, %s1340_s17   ;;  %p1121_p0 = scmp.ge.s32.totalorder %s1340_s17, 1  ;;  %s1340_s17 = sphi %s1402_s17, %s21_s17  }
   0x2   : > { %p349_p1 = scmp.lt.s32.totalorder %s1340_s17, 3 }
   0x4   : > { %p350_p2 = pnand %p1121_p0, %p349_p1 }
   0x5   : > { %s1122_s19 = sshll.u32 (!%p350_p2), %s1117_s18, 3 }
   0x6   : > { %353 = sbr.rel (%p350_p2) target bundleno = 784 (0x310), region = 64  ;;  %p395_p3 = scmp.lt.s32.totalorder (!%p350_p2), %s1122_s19, 15 }
   0xb   : > { %s1590_s19 = smov (!%p395_p3, %s1122_s19), 15  ;;  %vm429_vm0 = vcmask 64512   ;;  %v569_v60 = vld [vmem:[%s1583_s6] sm:$0xf]  ;;  %vm589_vm1 = vcmask 1043456  }
   0xc   : > { %s1410_s20 = sshll.u32 %s1590_s19, 2  ;;  %1280 = vmatprep.subr.msk.bf16.mxu0 %vm589_vm1, %v569_v60  ;;  %v591_v61 = vsel %vm589_vm1, %v569_v60, 0 }
   0xd   : > { %s404_s23 = scalar_lea.vmem %s1578_s1, %s1410_s20  ;;  %s1420_s26 = scalar_lea.vmem %s1577_s0, %s1410_s20  ;;  %1237 = vmatpush3.bf16.msra.mxu0 %v591_v61 }
   0xe   : > { %v1173_v0 = vld [vmem:[%s404_s23] sm:$0xff]   ;;  %v1208_v1 = vld [vmem:[%s404_s23 + $0x8] sm:$0xff]   ;;  %v1209_v6 = vld [vmem:[%s404_s23 + $0x10] sm:$0xff]   ;;  %s410_s28 = scalar_lea.vmem %s1588_s11, %s1410_s20 }
   0xf   : > { %v1174_v2 = vunpack.c.l.bf16 %v1173_v0  ;;  %v1178_v3 = vunpack.c.l.bf16 %v1208_v1  ;;  %v1175_v4 = vunpack.c.h.bf16 %v1173_v0  ;;  %v1179_v5 = vunpack.c.h.bf16 %v1208_v1  ;;  %v1210_v13 = vld [vmem:[%s404_s23 + $0x18] sm:$0xff]  }
  0x10   : > { %v1182_v11 = vunpack.c.l.bf16 %v1209_v6  ;;  %v1183_v12 = vunpack.c.h.bf16 %v1209_v6  ;;  %v1186_v16 = vunpack.c.l.bf16 %v1210_v13  ;;  %v1187_v17 = vunpack.c.h.bf16 %v1210_v13 }
  0x11   : > { %v430_v7 = vsel %vm429_vm0, %v1174_v2, 0.0  ;;  %v436_v8 = vsel %vm429_vm0, %v1178_v3, 0.0  ;;  %v433_v9 = vsel %vm429_vm0, %v1175_v4, 0.0  ;;  %v439_v10 = vsel %vm429_vm0, %v1179_v5, 0.0 }
  0x12   : > { %431 = vadd.xlane.f32.xlu0 %v430_v7  ;;  %437 = vadd.xlane.f32.xlu1 %v436_v8  ;;  %v442_v14 = vsel %vm429_vm0, %v1182_v11, 0.0  ;;  %v445_v15 = vsel %vm429_vm0, %v1183_v12, 0.0  ;;  %v448_v18 = vsel %vm429_vm0, %v1186_v16, 0.0  ;;  %v451_v19 = vsel %vm429_vm0, %v1187_v17, 0.0 }
  0x16   : > { %434 = vadd.xlane.f32.xlu0 %v433_v9  ;;  %440 = vadd.xlane.f32.xlu1 %v439_v10 }
  0x1a   : > { %443 = vadd.xlane.f32.xlu0 %v442_v14  ;;  %446 = vadd.xlane.f32.xlu1 %v445_v15 }
  0x1e   : > { %449 = vadd.xlane.f32.xlu0 %v448_v18  ;;  %452 = vadd.xlane.f32.xlu1 %v451_v19 }
  0x9b   : > { %v432_v20 = vpop.xlane.xlu0 %431  ;;  %v438_v21 = vpop.xlane.xlu1 %437 }
  0x9c   : > { %v455_v22 = vmul.f32 0.125, %v432_v20  ;;  %v457_v23 = vmul.f32 0.125, %v438_v21 }
  0x9e   : > { %v1430_v24 = vsub.f32 %v1174_v2, %v455_v22  ;;  %v1432_v25 = vsub.f32 %v1178_v3, %v457_v23 }
  0x9f   : > { %v435_v26 = vpop.xlane.xlu0 %434  ;;  %v441_v27 = vpop.xlane.xlu1 %440 }
  0xa0   : > { %v456_v28 = vmul.f32 0.125, %v435_v26  ;;  %v458_v29 = vmul.f32 0.125, %v441_v27  ;;  %v471_v30 = vmul.f32 %v1430_v24, %v1430_v24  ;;  %v473_v31 = vmul.f32 %v1432_v25, %v1432_v25  ;;  %v1128_v26 = vld [vmem:[%s1581_s4] ss:$0 sm:$0xff] }
  0xa2   : > { %v1438_v32 = vsub.f32 %v1175_v4, %v456_v28  ;;  %v1440_v33 = vsub.f32 %v1179_v5, %v458_v29  ;;  %v479_v34 = vsel %vm429_vm0, %v471_v30, 0.0  ;;  %v485_v37 = vsel %vm429_vm0, %v473_v31, 0.0  ;;  %v1129_v31 = vld [vmem:[%s1582_s5] ss:$0 sm:$0xff] }
  0xa3   : > { %480 = vadd.xlane.f32.xlu0 %v479_v34  ;;  %v444_v35 = vpop.xlane.xlu0 %443  ;;  %v447_v36 = vpop.xlane.xlu1 %446 }
  0xa4   : > { %v459_v38 = vmul.f32 0.125, %v444_v35  ;;  %v460_v39 = vmul.f32 0.125, %v447_v36  ;;  %v472_v40 = vmul.f32 %v1438_v32, %v1438_v32  ;;  %v474_v41 = vmul.f32 %v1440_v33, %v1440_v33 }
  0xa6   : > { %v1448_v42 = vsub.f32 %v1182_v11, %v459_v38  ;;  %v1450_v43 = vsub.f32 %v1183_v12, %v460_v39  ;;  %v482_v44 = vsel %vm429_vm0, %v472_v40, 0.0  ;;  %v488_v47 = vsel %vm429_vm0, %v474_v41, 0.0 }
  0xa7   : > { %486 = vadd.xlane.f32.xlu0 %v485_v37  ;;  %483 = vadd.xlane.f32.xlu1 %v482_v44  ;;  %v450_v45 = vpop.xlane.xlu0 %449  ;;  %v453_v46 = vpop.xlane.xlu1 %452 }
  0xa8   : > { %v461_v48 = vmul.f32 0.125, %v450_v45  ;;  %v462_v49 = vmul.f32 0.125, %v453_v46  ;;  %v475_v50 = vmul.f32 %v1448_v42, %v1448_v42  ;;  %v476_v51 = vmul.f32 %v1450_v43, %v1450_v43 }
  0xaa   : > { %v1458_v52 = vsub.f32 %v1186_v16, %v461_v48  ;;  %v1460_v53 = vsub.f32 %v1187_v17, %v462_v49  ;;  %v491_v54 = vsel %vm429_vm0, %v475_v50, 0.0  ;;  %v494_v55 = vsel %vm429_vm0, %v476_v51, 0.0 }
  0xab   : > { %489 = vadd.xlane.f32.xlu1 %v488_v47  ;;  %492 = vadd.xlane.f32.xlu0 %v491_v54 }
  0xac   : > { %v477_v56 = vmul.f32 %v1458_v52, %v1458_v52  ;;  %v478_v57 = vmul.f32 %v1460_v53, %v1460_v53 }
  0xae   : > { %v497_v58 = vsel %vm429_vm0, %v477_v56, 0.0  ;;  %v500_v59 = vsel %vm429_vm0, %v478_v57, 0.0 }
  0xaf   : > { %495 = vadd.xlane.f32.xlu1 %v494_v55  ;;  %498 = vadd.xlane.f32.xlu0 %v497_v58 }
  0xb3   : > { %501 = vadd.xlane.f32.xlu1 %v500_v59 }
 0x12c   : > { %v481_v62 = vpop.xlane.xlu0 %480 }
 0x12d   : > { %v503_v63 = vmul.f32 0.125, %v481_v62  ;;  %v1292_v62 = vld [vmem:[%s1585_s8 + $0x28] sm:$0xff]  }
 0x12f   : > { %v511_v0 = vadd.f32 1e-06, %v503_v63  ;;  %v1293_v63 = vld [vmem:[%s1585_s8 + $0x20] sm:$0xff]  }
 0x130   : > { %v484_v1 = vpop.xlane.xlu1 %483  ;;  %v487_v2 = vpop.xlane.xlu0 %486 }
 0x131   : > { %1302 = vrsqrt.f32 %v511_v0  ;;  %v504_v3 = vmul.f32 0.125, %v484_v1  ;;  %v505_v4 = vmul.f32 0.125, %v487_v2  ;;  %v1294_v0 = vld [vmem:[%s1585_s8 + $0x18] sm:$0xff]   ;;  %v893_v1 = vld [vmem:[%s1579_s2] sm:$0xf] }
 0x132   : > { %1281 = vmatprep.subr.msk.bf16.mxu0 %vm589_vm1, %v893_v1  ;;  %v934_v2 = vsel %vm589_vm1, %v893_v1, 0 }
 0x133   : > { %v512_v5 = vadd.f32 1e-06, %v504_v3  ;;  %v513_v6 = vadd.f32 1e-06, %v505_v4  ;;  %v1297_v3 = vld [vmem:[%s1420_s26] sm:$0xff]   ;;  %v1295_v4 = vld [vmem:[%s1585_s8 + $0x10] sm:$0xff]  }
 0x134   : > { %v490_v7 = vpop.xlane.xlu1 %489  ;;  %v493_v8 = vpop.xlane.xlu0 %492 }
 0x135   : > { %1304 = vrsqrt.f32 %v512_v5  ;;  %v506_v9 = vmul.f32 0.125, %v490_v7  ;;  %v507_v10 = vmul.f32 0.125, %v493_v8  ;;  %v1299_v5 = vld [vmem:[%s1420_s26 + $0x8] sm:$0xff]   ;;  %v1298_v7 = vld [vmem:[%s1585_s8] sm:$0xff]   ;;  %v1300_v8 = vld [vmem:[%s1420_s26 + $0x10] sm:$0xff]  }
 0x136   : > { %1306 = vrsqrt.f32 %v513_v6  ;;  %v1296_v6 = vld [vmem:[%s1585_s8 + $0x8] sm:$0xff]  }
 0x137   : > { %v514_v11 = vadd.f32 1e-06, %v506_v9  ;;  %v515_v12 = vadd.f32 1e-06, %v507_v10  ;;  %v1301_v9 = vld [vmem:[%s1420_s26 + $0x18] sm:$0xff]  }
 0x138   : > { %v496_v13 = vpop.xlane.xlu1 %495  ;;  %v499_v14 = vpop.xlane.xlu0 %498  ;;  %v1130_v10 = vld [vmem:[%s1584_s7] ss:$0 sm:$0xff] }
 0x139   : > { %1308 = vrsqrt.f32 %v514_v11  ;;  %v508_v15 = vmul.f32 0.125, %v496_v13  ;;  %v509_v16 = vmul.f32 0.125, %v499_v14 }
 0x13a   : > { %1310 = vrsqrt.f32 %v515_v12 }
 0x13b   : > { %v516_v17 = vadd.f32 1e-06, %v508_v15  ;;  %v517_v18 = vadd.f32 1e-06, %v509_v16 }
 0x13c   : > { %v502_v19 = vpop.xlane.xlu1 %501 }
 0x13d   : > { %1312 = vrsqrt.f32 %v516_v17  ;;  %v510_v20 = vmul.f32 0.125, %v502_v19 }
 0x13e   : > { %v1303_v21 = vpop.eup %1302  ;;  %1314 = vrsqrt.f32 %v517_v18 }
 0x13f   : > { %v518_v22 = vadd.f32 1e-06, %v510_v20  ;;  %v527_v23 = vmul.f32 %v1303_v21, %v1430_v24 }
 0x141   : > { %1316 = vrsqrt.f32 %v518_v22  ;;  %v542_v30 = vmul.f32 %v1128_v26, %v527_v23 }
 0x142   : > { %v1305_v27 = vpop.eup %1304 }
 0x143   : > { %v1307_v28 = vpop.eup %1306  ;;  %v528_v29 = vmul.f32 %v1305_v27, %v1438_v32  ;;  %v557_v24 = vadd.f32 %v1129_v31, %v542_v30 }
 0x144   : > { %v529_v34 = vmul.f32 %v1307_v28, %v1432_v25 }
 0x145   : > { %v543_v35 = vmul.f32 %v1128_v26, %v528_v29 }
 0x146   : > { %v1309_v36 = vpop.eup %1308  ;;  %v544_v40 = vmul.f32 %v1128_v26, %v529_v34 }
 0x147   : > { %v1311_v37 = vpop.eup %1310  ;;  %v558_v38 = vadd.f32 %v1129_v31, %v543_v35  ;;  %v530_v39 = vmul.f32 %v1309_v36, %v1440_v33 }
 0x148   : > { %v531_v41 = vmul.f32 %v1311_v37, %v1448_v42  ;;  %v559_v47 = vadd.f32 %v1129_v31, %v544_v40 }
 0x149   : > { %v565_v44 = vpack.c.bf16 %v558_v38, %v557_v24  ;;  %v545_v45 = vmul.f32 %v1128_v26, %v530_v39 }
 0x14a   : > { %v1313_v32 = vpop.eup %1312  ;;  %v546_v49 = vmul.f32 %v1128_v26, %v531_v41 }
 0x14b   : > { %v1315_v46 = vpop.eup %1314  ;;  %1238 = vmatprep.mubr.msk.bf16.mxu0 %vm429_vm0, %v565_v44  ;;  %v560_v48 = vadd.f32 %v1129_v31, %v545_v45  ;;  %v532_v25 = vmul.f32 %v1313_v32, %v1450_v43 }
 0x14c   : > { %v533_v50 = vmul.f32 %v1315_v46, %v1458_v52  ;;  %v561_v33 = vadd.f32 %v1129_v31, %v546_v49  ;;  %v1290_v52 = vld [vmem:[%s1585_s8 + $0x38] sm:$0xff]  }
 0x14d   : > { %v566_v51 = vpack.c.bf16 %v560_v48, %v559_v47  ;;  %v547_v54 = vmul.f32 %v1128_v26, %v532_v25  ;;  %1246 = vmatprep.subr.bf16.mxu1 %v1290_v52 }
 0x14e   : > { %v1317_v55 = vpop.eup %1316  ;;  %v548_v57 = vmul.f32 %v1128_v26, %v533_v50  ;;  %1247 = vmatpush3.bf16.msra.mxu1 %v1290_v52 }
 0x14f   : > { %1239 = vmatmul.mubr.msk.bf16.vlgmr.msra.gmra.mxu0 %vm429_vm0, %v566_v51  ;;  %v562_v42 = vadd.f32 %v1129_v31, %v547_v54  ;;  %v534_v56 = vmul.f32 %v1317_v55, %v1460_v53  ;;  %v1291_v53 = vld [vmem:[%s1585_s8 + $0x30] sm:$0xff]  }
 0x150   : > { %v563_v60 = vadd.f32 %v1129_v31, %v548_v57  ;;  %1248 = vmatprep.subr.bf16.mxu1 %v1291_v53  ;;  %1271 = vmatpush3.bf16.msra.mxu0 %v934_v2 }
 0x151   : > { %v567_v58 = vpack.c.bf16 %v562_v42, %v561_v33  ;;  %v549_v59 = vmul.f32 %v1128_v26, %v534_v56 }
 0x152   : > { %1249 = vmatpush3.bf16.msra.mxu1 %v1291_v53 }
 0x153   : > { %1242 = vmatprep.mubr.msk.bf16.mxu0 %vm429_vm0, %v567_v58  ;;  %v564_v61 = vadd.f32 %v1129_v31, %v549_v59  ;;  %1250 = vmatprep.subr.bf16.mxu1 %v1292_v62 }
 0x155   : > { %v568_v43 = vpack.c.bf16 %v564_v61, %v563_v60 }
 0x156   : > { %1251 = vmatpush3.bf16.msra.mxu1 %v1292_v62 }
 0x157   : > { %1243 = vmatmul.mubr.msk.bf16.gmra.mxu0 %vm429_vm0, %v568_v43  ;;  %1252 = vmatprep.subr.bf16.mxu1 %v1293_v63 }
 0x158   : > { %1272 = vmatprep.mubr.msk.bf16.mxu0 %vm429_vm0, %v1297_v3 }
 0x15a   : > { %1253 = vmatpush3.bf16.msra.mxu1 %v1293_v63 }
 0x15b   : > { %1254 = vmatprep.subr.bf16.mxu1 %v1294_v0 }
 0x15e   : > { %1255 = vmatpush3.bf16.msra.mxu1 %v1294_v0 }
 0x15f   : > { %1273 = vmatmul.mubr.msk.bf16.vlgmr.msra.gmra.mxu0 %vm429_vm0, %v1299_v5  ;;  %1256 = vmatprep.subr.bf16.mxu1 %v1295_v4 }
 0x160   : > { %1276 = vmatprep.mubr.msk.bf16.mxu0 %vm429_vm0, %v1300_v8 }
 0x162   : > { %1257 = vmatpush3.bf16.msra.mxu1 %v1295_v4 }
 0x163   : > { %1258 = vmatprep.subr.bf16.mxu1 %v1296_v6 }
 0x166   : > { %1259 = vmatpush3.bf16.msra.mxu1 %v1296_v6 }
 0x167   : > { %1260 = vmatprep.subr.bf16.mxu1 %v1298_v7  ;;  %1277 = vmatmul.mubr.msk.bf16.gmra.mxu0 %vm429_vm0, %v1301_v9 }
 0x16a   : > { %1261 = vmatpush3.bf16.msra.mxu1 %v1298_v7 }
 0x20f   : > { %v1240_v11 = vpop.f32.mrf.mxu0 }
 0x210   : > { %v1533_v12 = vadd.f32 %v1240_v11, %v1130_v10 }
 0x211   : > { %v627_v13 = vpop.f32.mrf.mxu0 }
 0x212   : > { %v668_v14 = vmul.f32 0.044715, %v1533_v12  ;;  %v1536_v15 = vadd.f32 %v1130_v10, %v627_v13 }
 0x213   : > { %v1241_v16 = vpop.f32.mrf.mxu0 }
 0x214   : > { %v676_v17 = vmul.f32 %v668_v14, %v1533_v12  ;;  %v666_v18 = vmul.f32 0.044715, %v1536_v15  ;;  %v639_v19 = vadd.f32 %v1241_v16, %v1130_v10  ;;  %v658_v11 = vmul.f32 0.5, %v1536_v15 }
 0x215   : > { %v630_v20 = vpop.f32.mrf.mxu0  ;;  %v660_v16 = vmul.f32 0.5, %v1533_v12 }
 0x216   : > { %v684_v21 = vmul.f32 %v676_v17, %v1533_v12  ;;  %v669_v22 = vmul.f32 0.044715, %v639_v19  ;;  %v631_v23 = vadd.f32 %v1130_v10, %v630_v20  ;;  %v674_v26 = vmul.f32 %v666_v18, %v1536_v15 }
 0x217   : > { %v1244_v27 = vpop.f32.mrf.mxu0  ;;  %v661_v9 = vmul.f32 0.5, %v639_v19 }
 0x218   : > { %v677_v28 = vmul.f32 %v669_v22, %v639_v19  ;;  %v667_v29 = vmul.f32 0.044715, %v631_v23  ;;  %v1542_v30 = vadd.f32 %v1244_v27, %v1130_v10  ;;  %v682_v34 = vmul.f32 %v674_v26, %v1536_v15 }
 0x219   : > { %v643_v31 = vpop.f32.mrf.mxu0  ;;  %v692_v35 = vadd.f32 %v684_v21, %v1533_v12  ;;  %v659_v13 = vmul.f32 0.5, %v631_v23 }
 0x21a   : > { %v685_v36 = vmul.f32 %v677_v28, %v639_v19  ;;  %v672_v37 = vmul.f32 0.044715, %v1542_v30  ;;  %v1547_v24 = vadd.f32 %v1130_v10, %v643_v31  ;;  %v675_v38 = vmul.f32 %v667_v29, %v631_v23 }
 0x21b   : > { %v1245_v39 = vpop.f32.mrf.mxu0  ;;  %v690_v40 = vadd.f32 %v682_v34, %v1536_v15  ;;  %v700_v41 = vmul.f32 0.7978846, %v692_v35 }
 0x21c   : > { %v680_v44 = vmul.f32 %v672_v37, %v1542_v30  ;;  %v670_v45 = vmul.f32 0.044715, %v1547_v24  ;;  %v655_v32 = vadd.f32 %v1245_v39, %v1130_v10  ;;  %v683_v46 = vmul.f32 %v675_v38, %v631_v23 }
 0x21d   : > { %v646_v47 = vpop.f32.mrf.mxu0  ;;  %v698_v48 = vmul.f32 0.7978846, %v690_v40  ;;  %v693_v25 = vadd.f32 %v685_v36, %v639_v19  ;;  %v662_v19 = vmul.f32 0.5, %v1547_v24  ;;  %v664_v39 = vmul.f32 0.5, %v1542_v30 }
 0x21e   : > { %v688_v49 = vmul.f32 %v680_v44, %v1542_v30  ;;  %v678_v50 = vmul.f32 %v670_v45, %v1547_v24  ;;  %v673_v51 = vmul.f32 0.044715, %v655_v32  ;;  %v647_v54 = vadd.f32 %v1130_v10, %v646_v47 }
 0x21f   : > { %v691_v55 = vadd.f32 %v683_v46, %v631_v23  ;;  %1318 = vtanh.f32 %v698_v48  ;;  %v701_v33 = vmul.f32 0.7978846, %v693_v25  ;;  %v665_v36 = vmul.f32 0.5, %v655_v32  ;;  %v1274_v46 = vpop.f32.mrf.mxu0 }
 0x220   : > { %v686_v42 = vmul.f32 %v678_v50, %v1547_v24  ;;  %v681_v56 = vmul.f32 %v673_v51, %v655_v32  ;;  %v671_v57 = vmul.f32 0.044715, %v647_v54  ;;  %1320 = vtanh.f32 %v700_v41  ;;  %v1144_v50 = vld [vmem:[%s1587_s10] ss:$0 sm:$0xff] }
 0x221   : > { %v699_v58 = vmul.f32 0.7978846, %v691_v55  ;;  %1322 = vtanh.f32 %v701_v33  ;;  %v696_v59 = vadd.f32 %v688_v49, %v1542_v30  ;;  %v663_v15 = vmul.f32 0.5, %v647_v54  ;;  %v970_v47 = vpop.f32.mrf.mxu0  ;;  %v1145_v30 = vld [vmem:[%s1580_s3] ss:$0 sm:$0xff] }
 0x222   : > { %v689_v60 = vmul.f32 %v681_v56, %v655_v32  ;;  %v679_v61 = vmul.f32 %v671_v57, %v647_v54  ;;  %v694_v43 = vadd.f32 %v686_v42, %v1547_v24  ;;  %v1135_v24 = vld [vmem:[%s1586_s9] ss:$0 sm:$0xff]  ;;  %v979_v42 = vadd.f32 %v1274_v46, %v1145_v30 }
 0x223   : > { %1324 = vtanh.f32 %v699_v58  ;;  %v704_v52 = vmul.f32 0.7978846, %v696_v59  ;;  %v1275_v48 = vpop.f32.mrf.mxu0 }
 0x224   : > { %v687_v53 = vmul.f32 %v679_v61, %v647_v54  ;;  %v702_v62 = vmul.f32 0.7978846, %v694_v43  ;;  %v697_v63 = vadd.f32 %v689_v60, %v655_v32  ;;  %v982_v60 = vadd.f32 %v1275_v48, %v1145_v30 }
 0x225   : > { %v973_v25 = vpop.f32.mrf.mxu0 }
 0x226   : > { %v695_v0 = vadd.f32 %v687_v53, %v647_v54  ;;  %1326 = vtanh.f32 %v702_v62  ;;  %v705_v1 = vmul.f32 0.7978846, %v697_v63  ;;  %v971_v53 = vadd.f32 %v1145_v30, %v970_v47 }
 0x227   : > { %1328 = vtanh.f32 %v704_v52  ;;  %v1278_v54 = vpop.f32.mrf.mxu0  ;;  %v974_v62 = vadd.f32 %v1145_v30, %v973_v25 }
 0x228   : > { %v703_v2 = vmul.f32 0.7978846, %v695_v0  ;;  %1330 = vtanh.f32 %v705_v1 }
 0x229   : > { %v986_v59 = vpop.f32.mrf.mxu0 }
 0x22a   : > { %1332 = vtanh.f32 %v703_v2 }
 0x22c   : > { %v1319_v3 = vpop.eup %1318 }
 0x22d   : > { %v1321_v4 = vpop.eup %1320  ;;  %v714_v6 = vadd.f32 1.0, %v1319_v3 }
 0x22e   : > { %v1323_v5 = vpop.eup %1322  ;;  %v716_v10 = vadd.f32 1.0, %v1321_v4  ;;  %v1279_v4 = vpop.f32.mrf.mxu0 }
 0x22f   : > { %v717_v7 = vadd.f32 1.0, %v1323_v5  ;;  %v722_v20 = vmul.f32 %v714_v6, %v658_v11  ;;  %v995_v11 = vadd.f32 %v1278_v54, %v1145_v30 }
 0x230   : > { %v1325_v8 = vpop.eup %1324  ;;  %v724_v26 = vmul.f32 %v716_v10, %v660_v16 }
 0x231   : > { %v715_v14 = vadd.f32 1.0, %v1325_v8  ;;  %v725_v17 = vmul.f32 %v717_v7, %v661_v9 }
 0x233   : > { %v1327_v18 = vpop.eup %1326  ;;  %v723_v21 = vmul.f32 %v715_v14, %v659_v13  ;;  %v731_v29 = vpack.c.bf16 %v725_v17, %v724_v26  ;;  %v989_v17 = vpop.f32.mrf.mxu0 }
 0x234   : > { %v1329_v22 = vpop.eup %1328  ;;  %v718_v31 = vadd.f32 1.0, %v1327_v18 }
 0x235   : > { %v1331_v27 = vpop.eup %1330  ;;  %v730_v28 = vpack.c.bf16 %v723_v21, %v722_v20  ;;  %v720_v12 = vadd.f32 1.0, %v1329_v22  ;;  %v998_v20 = vadd.f32 %v1279_v4, %v1145_v30 }
 0x236   : > { %v721_v34 = vadd.f32 1.0, %v1331_v27  ;;  %v726_v37 = vmul.f32 %v718_v31, %v662_v19  ;;  %v987_v27 = vadd.f32 %v1145_v30, %v986_v59 }
 0x237   : > { %v1333_v35 = vpop.eup %1332  ;;  %1262 = vmatprep.mubr.bf16.mxu1 %v730_v28  ;;  %v728_v44 = vmul.f32 %v720_v12, %v664_v39 }
 0x238   : > { %1263 = vmatmul.mubr.bf16.vlgmr.msra.gmra.mxu1 %v731_v29  ;;  %v719_v23 = vadd.f32 1.0, %v1333_v35  ;;  %v729_v40 = vmul.f32 %v721_v34, %v665_v36  ;;  %v990_v29 = vadd.f32 %v1145_v30, %v989_v17 }
 0x23a   : > { %v727_v38 = vmul.f32 %v719_v23, %v663_v15  ;;  %v733_v45 = vpack.c.bf16 %v729_v40, %v728_v44 }
 0x23c   : > { %v732_v41 = vpack.c.bf16 %v727_v38, %v726_v37 }
 0x23e   : > { %1266 = vmatprep.mubr.bf16.mxu1 %v732_v41 }
 0x240   : > { %1267 = vmatmul.mubr.bf16.gmra.mxu1 %v733_v45 }
 0x2f8   : > { %v1264_v32 = vpop.f32.mrf.mxu1 }
 0x2f9   : > { %v848_v49 = vadd.f32 %v1264_v32, %v1135_v24 }
 0x2fa   : > { %v839_v51 = vpop.f32.mrf.mxu1 }
 0x2fb   : > { %v840_v55 = vadd.f32 %v1135_v24, %v839_v51  ;;  %v879_v56 = vmul.f32 %v1144_v50, %v848_v49 }
 0x2fc   : > { %v1265_v33 = vpop.f32.mrf.mxu1 }
 0x2fd   : > { %v851_v57 = vadd.f32 %v1265_v33, %v1135_v24  ;;  %v877_v61 = vmul.f32 %v1144_v50, %v840_v55  ;;  %v1003_v0 = vadd.f32 %v979_v42, %v879_v56 }
 0x2fe   : > { %v842_v58 = vpop.f32.mrf.mxu1 }
 0x2ff   : > { %v880_v43 = vmul.f32 %v1144_v50, %v851_v57  ;;  %v843_v52 = vadd.f32 %v1135_v24, %v842_v58  ;;  %v1001_v6 = vadd.f32 %v971_v53, %v877_v61 }
 0x300   : > { %v1268_v63 = vpop.f32.mrf.mxu1 }
 0x301   : > { %v1004_v1 = vadd.f32 %v982_v60, %v880_v43  ;;  %v878_v2 = vmul.f32 %v1144_v50, %v843_v52  ;;  %v864_v3 = vadd.f32 %v1268_v63, %v1135_v24 }
 0x302   : > { %v855_v5 = vpop.f32.mrf.mxu1 }
 0x303   : > { %v1196_v7 = vpack.c.bf16 %v1004_v1, %v1003_v0  ;;  %v1002_v8 = vadd.f32 %v974_v62, %v878_v2  ;;  %v856_v9 = vadd.f32 %v1135_v24, %v855_v5  ;;  %v883_v14 = vmul.f32 %v1144_v50, %v864_v3 }
 0x304   : > { %v1269_v10 = vpop.f32.mrf.mxu1 }
 0x305   : > { %1211 = vst [vmem:[%s410_s28 + $0x8] sm:$0xff] %v1196_v7   ;;  %v1191_v13 = vpack.c.bf16 %v1002_v8, %v1001_v6  ;;  %v867_v16 = vadd.f32 %v1269_v10, %v1135_v24  ;;  %v881_v21 = vmul.f32 %v1144_v50, %v856_v9  ;;  %v1007_v28 = vadd.f32 %v995_v11, %v883_v14 }
 0x306   : > { %v858_v18 = vpop.f32.mrf.mxu1 }
 0x307   : > { %1192 = vst [vmem:[%s410_s28] sm:$0xff] %v1191_v13   ;;  %v884_v22 = vmul.f32 %v1144_v50, %v867_v16  ;;  %v859_v26 = vadd.f32 %v1135_v24, %v858_v18  ;;  %v1005_v35 = vadd.f32 %v987_v27, %v881_v21 }
 0x309   : > { %v1008_v31 = vadd.f32 %v998_v20, %v884_v22  ;;  %v882_v34 = vmul.f32 %v1144_v50, %v859_v26 }
 0x30b   : > { %v1206_v19 = vpack.c.bf16 %v1008_v31, %v1007_v28  ;;  %v1006_v15 = vadd.f32 %v990_v29, %v882_v34 }
 0x30d   : > { %1213 = vst [vmem:[%s410_s28 + $0x18] sm:$0xff] %v1206_v19   ;;  %v1201_v23 = vpack.c.bf16 %v1006_v15, %v1005_v35 }
 0x30f   : > { %1212 = vst [vmem:[%s410_s28 + $0x10] sm:$0xff] %v1201_v23  }
 0x310 PF: > { %s21_s17 = sadd.s32 1, %s1340_s17  }
 0x311   : > { %p18_p4 = scmp.ge.s32.totalorder %s21_s17, 4  }
 0x313   :  { %20 = sbr.rel (!%p18_p4) target bundleno = 1 (0x1), region = 97 }

</bundles_post_ra>
